<compile_context>
chip_gen: v6e
topology: v6e:2x2x1
jax: 0.10.0
libtpu: 0.0.40
codegen_flags: <defaults>
</compile_context>

<pallas_src>
import functools

import jax
import jax.numpy as jnp
from jax import lax
from jax.experimental import pallas as pl
from jax.experimental.pallas import tpu as pltpu

_VMEM_LIMIT = 32 * 1024 * 1024  # explicit scoped-VMEM limit (safe on v5e/v6e/v7x)


def _round_up(x, m):
    return (x + m - 1) // m * m


def _pick_tile(n, candidates):
    for c in candidates:
        if n % c == 0:
            return c
    return n


def _sigmoid(z):
    # sigmoid(z) = 0.5 * (tanh(z/2) + 1): one EUP op instead of exp + divide.
    return 0.5 * (jnp.tanh(0.5 * z) + 1.0)


# ---------------------------------------------------------------------------
# Tiled matmul-with-bias kernel (hoisted input projection and final Linear).
# Inputs are expected pre-aligned (M % 8 == 0, N % 128 == 0) and bf16-ready, so
# no wrapper-side pad/cast HBM passes are needed.
# ---------------------------------------------------------------------------

def _matmul_bias_kernel(x_ref, w_ref, b_ref, o_ref):
    acc = jnp.dot(x_ref[...], w_ref[...], preferred_element_type=jnp.float32)
    o_ref[...] = (acc + b_ref[...]).astype(o_ref.dtype)


def matmul_bias(x, w, b, *, out_dtype=jnp.float32):
    """x: [M, K] bf16, w: [K, N] bf16, b: [1, N] f32  ->  [M, N] out_dtype."""
    M, K = x.shape
    Kw, N = w.shape
    assert K == Kw and M % 8 == 0 and N % 128 == 0
    tm = _pick_tile(M, (256, 128, 64, 32, 16, 8))
    tn = _pick_tile(N, (512, 256, 128))

    return pl.pallas_call(
        _matmul_bias_kernel,
        out_shape=jax.ShapeDtypeStruct((M, N), out_dtype),
        grid_spec=pltpu.PrefetchScalarGridSpec(
            num_scalar_prefetch=0,
            grid=(M // tm, N // tn),
            in_specs=[
                pl.BlockSpec((tm, K), lambda i, j: (i, 0)),
                pl.BlockSpec((K, tn), lambda i, j: (0, j)),
                pl.BlockSpec((1, tn), lambda i, j: (0, j)),
            ],
            out_specs=pl.BlockSpec((tm, tn), lambda i, j: (i, j)),
        ),
        compiler_params=pltpu.CompilerParams(
            dimension_semantics=("parallel", "parallel"),
            vmem_limit_bytes=_VMEM_LIMIT),
    )(x.astype(jnp.bfloat16), w.astype(jnp.bfloat16), b.astype(jnp.float32))


# ---------------------------------------------------------------------------
# Fused bidirectional LSTM recurrence kernel.
#
# gx  : [Tp, Bp, 8*Hp] bf16   precomputed x @ W_ih + b, fwd gates | bwd gates
# whh : [Hp, 8*Hp]     bf16   recurrent weights, fwd | bwd
# len : [Bp, 1]        int32  per-sequence lengths (0 for padded batch rows)
# out : [Tp, Bp, 2*Hp] bf16   fwd hidden in cols [0:Hp], bwd in [Hp:2Hp]
#
# Grid = (direction, batch-block, time-block); time is sequential ("arbitrary").
# The backward direction consumes time blocks (and in-block steps) in reverse
# order via the index_map, and per-batch length masking freezes h/c on padded
# timesteps, so no gather/reverse/transpose is needed outside the kernel.
# ---------------------------------------------------------------------------

def _lstm_rec_kernel(len_ref, gx_ref, whh_ref, out_ref, h_scr, c_scr,
                     *, ts, hidden_p, n_tblk):
    d = pl.program_id(0)         # 0 = forward, 1 = backward
    tb = pl.program_id(2)        # time-block index (innermost -> sequential)

    @pl.when(tb == 0)
    def _():
        h_scr[...] = jnp.zeros_like(h_scr)
        c_scr[...] = jnp.zeros_like(c_scr)

    Hp = hidden_p
    whh = whh_ref[...]                         # [Hp, 4Hp] bf16, loop-invariant
    lengths = len_ref[...]                     # [bb, 1] int32
    blk = tb + d * (n_tblk - 1 - 2 * tb)       # global time block (reversed bwd)

    def step(k, carry):
        h, c = carry
        s = k + d * (ts - 1 - 2 * k)           # storage index within the block
        t_glob = blk * ts + s                  # global timestep
        gates = gx_ref[s].astype(jnp.float32) + jnp.dot(
            h.astype(jnp.bfloat16), whh, preferred_element_type=jnp.float32)
        i = _sigmoid(gates[:, 0 * Hp:1 * Hp])  # lane-aligned (Hp % 128 == 0)
        f = _sigmoid(gates[:, 1 * Hp:2 * Hp])
        g = jnp.tanh(gates[:, 2 * Hp:3 * Hp])
        o = _sigmoid(gates[:, 3 * Hp:4 * Hp])
        c_new = f * c + i * g
        h_new = o * jnp.tanh(c_new)
        valid = t_glob < lengths               # [bb, 1] -> broadcast over Hp
        h = jnp.where(valid, h_new, h)         # freeze state on padded steps
        c = jnp.where(valid, c_new, c)
        out_ref[s] = jnp.where(valid, h_new, 0.0).astype(out_ref.dtype)
        return h, c

    h, c = lax.fori_loop(0, ts, step, (h_scr[...], c_scr[...]), unroll=True)
    h_scr[...] = h
    c_scr[...] = c


def bilstm_recurrence(lengths_col, gx, whh, *, ts, bb):
    Tp, Bp, G2 = gx.shape
    Hp = whh.shape[0]
    assert G2 == 8 * Hp and Tp % ts == 0 and Bp % bb == 0
    nT = Tp // ts
    nB = Bp // bb
    kernel = functools.partial(_lstm_rec_kernel, ts=ts, hidden_p=Hp, n_tblk=nT)

    def t_map(d, t):  # reversed time-block order for the backward direction
        return t + d * (nT - 1 - 2 * t)

    return pl.pallas_call(
        kernel,
        out_shape=jax.ShapeDtypeStruct((Tp, Bp, 2 * Hp), jnp.bfloat16),
        grid_spec=pltpu.PrefetchScalarGridSpec(
            num_scalar_prefetch=0,
            grid=(2, nB, nT),
            in_specs=[
                pl.BlockSpec((bb, 1), lambda d, b, t: (b, 0)),
                pl.BlockSpec((ts, bb, 4 * Hp),
                             lambda d, b, t: (t_map(d, t), b, d)),
                pl.BlockSpec((Hp, 4 * Hp), lambda d, b, t: (0, d)),
            ],
            out_specs=pl.BlockSpec((ts, bb, Hp),
                                   lambda d, b, t: (t_map(d, t), b, d)),
            scratch_shapes=[pltpu.VMEM((bb, Hp), jnp.float32),   # h carry
                            pltpu.VMEM((bb, Hp), jnp.float32)],  # c carry
        ),
        compiler_params=pltpu.CompilerParams(
            dimension_semantics=("parallel", "parallel", "arbitrary"),
            vmem_limit_bytes=_VMEM_LIMIT),
    )(lengths_col, gx, whh)


# ---------------------------------------------------------------------------
# Parameter handling (PyTorch layout -> padded / packed / bf16 kernel layout).
# ---------------------------------------------------------------------------

def make_params(key, vocab_size, emb_size, hidden_size, out_size):
    """Parameters in PyTorch nn.LSTM / nn.Linear layout (f32, unpadded)."""
    ks = jax.random.split(key, 11)
    s = 0.1
    H = hidden_size

    def norm(k, shape):
        return jax.random.normal(k, shape, jnp.float32) * s

    emb = norm(ks[0], (vocab_size, emb_size))
    emb = emb.at[0].set(0.0)  # padding_idx=0
    return {
        "embedding": emb,
        "w_ih_f": norm(ks[1], (4 * H, emb_size)),
        "w_hh_f": norm(ks[2], (4 * H, H)),
        "b_ih_f": norm(ks[3], (4 * H,)),
        "b_hh_f": norm(ks[4], (4 * H,)),
        "w_ih_b": norm(ks[5], (4 * H, emb_size)),
        "w_hh_b": norm(ks[6], (4 * H, H)),
        "b_ih_b": norm(ks[7], (4 * H,)),
        "b_hh_b": norm(ks[8], (4 * H,)),
        "fc_w": norm(ks[9], (out_size, 2 * H)),
        "fc_b": norm(ks[10], (out_size,)),
    }


def _pad_gates(w, H, Hp):
    """Pad the trailing [4*H] gate axis to [4*Hp], padding each gate block."""
    lead = w.shape[:-1]
    w4 = w.reshape(*lead, 4, H)
    w4 = jnp.pad(w4, [(0, 0)] * len(lead) + [(0, 0), (0, Hp - H)])
    return w4.reshape(*lead, 4 * Hp)


def prepare_kernel_params(p, hidden_size):
    """Transpose, pad H -> Hp (multiple of 128), pack directions, cast bf16."""
    H = hidden_size
    Hp = _round_up(H, 128)

    def prep_dir(w_ih, w_hh, b_ih, b_hh):
        wih_t = _pad_gates(w_ih.T, H, Hp)                       # [E, 4Hp]
        whh_t = jnp.pad(w_hh.T, ((0, Hp - H), (0, 0)))          # [Hp, 4H]
        whh_t = _pad_gates(whh_t, H, Hp)                        # [Hp, 4Hp]
        bias = _pad_gates((b_ih + b_hh)[None, :], H, Hp)        # [1, 4Hp]
        return wih_t, whh_t, bias

    wf, hf, bf_ = prep_dir(p["w_ih_f"], p["w_hh_f"], p["b_ih_f"], p["b_hh_f"])
    wb, hb, bb_ = prep_dir(p["w_ih_b"], p["w_hh_b"], p["b_ih_b"], p["b_hh_b"])

    # fc maps [fwd(Hp) | bwd(Hp)] -> out; real rows at [0:H] and [Hp:Hp+H].
    fcw_t = p["fc_w"].T                                          # [2H, out]
    out_size = fcw_t.shape[1]
    Np = _round_up(out_size, 128)
    fcw_p = jnp.zeros((2 * Hp, Np), jnp.float32)
    fcw_p = fcw_p.at[:H, :out_size].set(fcw_t[:H])
    fcw_p = fcw_p.at[Hp:Hp + H, :out_size].set(fcw_t[H:])
    fcb_p = jnp.zeros((1, Np), jnp.float32).at[0, :out_size].set(p["fc_b"])

    return {
        "embedding": p["embedding"].astype(jnp.bfloat16),
        "wih": jnp.concatenate([wf, wb], axis=1).astype(jnp.bfloat16),  # [E, 8Hp]
        "whh": jnp.concatenate([hf, hb], axis=1).astype(jnp.bfloat16),  # [Hp, 8Hp]
        "b": jnp.concatenate([bf_, bb_], axis=1).astype(jnp.float32),   # [1, 8Hp]
        "fc_w": fcw_p.astype(jnp.bfloat16),                             # [2Hp, Np]
        "fc_b": fcb_p,                                                  # [1, Np]
    }


# ---------------------------------------------------------------------------
# Forward pass.
# ---------------------------------------------------------------------------

def bilstm_forward(ids, lengths, kparams, *, out_size, time_block=16):
    """ids: [B, T] int32 (0 = padding), lengths: [B] int32.

    Returns (padded output [B, T, out_size] with padded timesteps zeroed,
    lengths) — equivalent content to the PyTorch module's PackedSequence.
    """
    B, T = ids.shape
    E = kparams["embedding"].shape[1]
    Hp = kparams["whh"].shape[0]

    ts = min(time_block, _round_up(T, 8))
    Tp = _round_up(T, ts)
    Bp = _round_up(B, 8)
    bb = _pick_tile(Bp, (32, 16, 8))          # batch block capped at 32 rows

    # Time-major, time/batch-padded token ids (tiny int32 transpose, so gx is
    # produced already time-major and already padded — no big HBM pad pass).
    ids_tm = jnp.pad(ids.T, ((0, Tp - T), (0, Bp - B)))          # [Tp, Bp]
    emb = jnp.take(kparams["embedding"], ids_tm, axis=0)         # [Tp, Bp, E] bf16

    # Hoisted input projection for BOTH directions: one aligned GEMM, bf16 out.
    gx = matmul_bias(emb.reshape(Tp * Bp, E), kparams["wih"], kparams["b"],
                     out_dtype=jnp.bfloat16)
    gx = gx.reshape(Tp, Bp, 8 * Hp)

    # Per-sequence lengths (0 for padded batch rows) drive in-kernel masking
    # and the backward direction's start position.
    len_col = jnp.pad(lengths.astype(jnp.int32), (0, Bp - B)).reshape(Bp, 1)

    # Fused two-direction recurrence; output is already [fwd | bwd] per step.
    h_cat = bilstm_recurrence(len_col, gx, kparams["whh"], ts=ts, bb=bb)

    # Final Linear: single GEMM over the concatenated hidden (bf16 in, f32 out);
    # padded hidden columns hit zero weight rows.
    y = matmul_bias(h_cat.reshape(Tp * Bp, 2 * Hp), kparams["fc_w"],
                    kparams["fc_b"], out_dtype=jnp.float32)
    y = y.reshape(Tp, Bp, -1)[:T, :B, :out_size]                 # [T, B, out]
    y = jnp.transpose(y, (1, 0, 2))                              # [B, T, out]

    # Zero padded timesteps (pad_packed_sequence semantics).
    # NOTE: final h_n/c_n are not exposed (nor returned by the PyTorch module).
    valid = jnp.arange(T, dtype=jnp.int32)[None, :] < lengths[:, None]
    return jnp.where(valid[:, :, None], y, 0.0), lengths


if __name__ == "__main__":
    key = jax.random.PRNGKey(0)
    vocab_size, emb_size, hidden_size, out_size = 20, 16, 32, 3
    B, T = 2, 8

    pkey, ikey = jax.random.split(key)
    params = make_params(pkey, vocab_size, emb_size, hidden_size, out_size)
    kparams = prepare_kernel_params(params, hidden_size)

    lengths = jnp.array([8, 5], dtype=jnp.int32)
    ids = jax.random.randint(ikey, (B, T), 1, vocab_size, dtype=jnp.int32)
    tpos = jnp.arange(T, dtype=jnp.int32)[None, :]
    ids = jnp.where(tpos < lengths[:, None], ids, 0)   # pad with index 0

    fwd = jax.jit(functools.partial(bilstm_forward, out_size=out_size))
    out, out_lengths = fwd(ids, lengths, kparams)
    jax.block_until_ready(out)
    assert out.shape == (B, T, out_size)
    print("KERNEL_OK")
</pallas_src>

<mosaic_0001>
module attributes {stable_mosaic.version = 11 : i64} {
  func.func @_matmul_bias_kernel(%arg0: i32, %arg1: i32, %arg2: memref<64x16xbf16, #tpu.memory_space<vmem>>, %arg3: memref<16x512xbf16, #tpu.memory_space<vmem>>, %arg4: memref<1x512xf32, #tpu.memory_space<vmem>>, %arg5: memref<64x512xbf16, #tpu.memory_space<vmem>>) attributes {dimension_semantics = [#tpu.dimension_semantics<parallel>, #tpu.dimension_semantics<parallel>], iteration_bounds = array<i64: 1, 2>, scalar_prefetch = 0 : i64, scratch_operands = 0 : i64, tpu.core_type = #tpu.core_type<tc>, window_params = [{transform_indices = @transform_0, window_bounds = array<i64: 64, 16>}, {transform_indices = @transform_1, window_bounds = array<i64: 16, 512>}, {transform_indices = @transform_2, window_bounds = array<i64: 1, 512>}, {transform_indices = @transform_3, window_bounds = array<i64: 64, 512>}]} {
    %c0 = arith.constant 0 : index
    %c0_0 = arith.constant 0 : index
    %0 = vector.load %arg2[%c0, %c0_0] : memref<64x16xbf16, #tpu.memory_space<vmem>>, vector<64x16xbf16>
    %c0_1 = arith.constant 0 : index
    %c0_2 = arith.constant 0 : index
    %1 = vector.load %arg3[%c0_1, %c0_2] : memref<16x512xbf16, #tpu.memory_space<vmem>>, vector<16x512xbf16>
    %cst = arith.constant dense<0.000000e+00> : vector<64x512xf32>
    %2 = tpu.matmul %0, %1, %cst {dimension_numbers = #tpu.dot_dimension_numbers<[1], [0], [0], [1], [0, 0, 1, 1], [], []>} : vector<64x16xbf16>, vector<16x512xbf16>, vector<64x512xf32> -> vector<64x512xf32>
    %c0_3 = arith.constant 0 : index
    %c0_4 = arith.constant 0 : index
    %3 = vector.load %arg4[%c0_3, %c0_4] : memref<1x512xf32, #tpu.memory_space<vmem>>, vector<1x512xf32>
    %4 = vector.broadcast %3 : vector<1x512xf32> to vector<64x512xf32>
    %5 = arith.addf %2, %4 : vector<64x512xf32>
    %6 = arith.truncf %5 : vector<64x512xf32> to vector<64x512xbf16>
    %c0_5 = arith.constant 0 : index
    %c0_6 = arith.constant 0 : index
    %7 = vector.load %arg5[%c0_5, %c0_6] : memref<64x512xbf16, #tpu.memory_space<vmem>>, vector<64x512xbf16>
    tpu.vector_store %arg5[%c0_5, %c0_6], %6 {strides = array<i32>} : memref<64x512xbf16, #tpu.memory_space<vmem>>, vector<64x512xbf16>,
    return
  }
  func.func @transform_0(%arg0: i32, %arg1: i32) -> (i32, i32) {
    %c0_i32 = arith.constant 0 : i32
    %c0_i32_0 = arith.constant 0 : i32
    return %arg0, %c0_i32 : i32, i32
  }
  func.func @transform_1(%arg0: i32, %arg1: i32) -> (i32, i32) {
    %c0_i32 = arith.constant 0 : i32
    %c0_i32_0 = arith.constant 0 : i32
    return %c0_i32, %arg1 : i32, i32
  }
  func.func @transform_2(%arg0: i32, %arg1: i32) -> (i32, i32) {
    %c0_i32 = arith.constant 0 : i32
    %c0_i32_0 = arith.constant 0 : i32
    return %c0_i32, %arg1 : i32, i32
  }
  func.func @transform_3(%arg0: i32, %arg1: i32) -> (i32, i32) {
    %c0_i32 = arith.constant 0 : i32
    return %arg0, %arg1 : i32, i32
  }
}

module attributes {stable_mosaic.version = 11 : i64} {
  func.func @_matmul_bias_kernel(%arg0: i32, %arg1: i32, %arg2: memref<64x256xbf16, #tpu.memory_space<vmem>>, %arg3: memref<256x128xbf16, #tpu.memory_space<vmem>>, %arg4: memref<1x128xf32, #tpu.memory_space<vmem>>, %arg5: memref<64x128xf32, #tpu.memory_space<vmem>>) attributes {dimension_semantics = [#tpu.dimension_semantics<parallel>, #tpu.dimension_semantics<parallel>], iteration_bounds = array<i64: 1, 1>, scalar_prefetch = 0 : i64, scratch_operands = 0 : i64, tpu.core_type = #tpu.core_type<tc>, window_params = [{transform_indices = @transform_0, window_bounds = array<i64: 64, 256>}, {transform_indices = @transform_1, window_bounds = array<i64: 256, 128>}, {transform_indices = @transform_2, window_bounds = array<i64: 1, 128>}, {transform_indices = @transform_3, window_bounds = array<i64: 64, 128>}]} {
    %c0 = arith.constant 0 : index
    %c0_0 = arith.constant 0 : index
    %0 = vector.load %arg2[%c0, %c0_0] : memref<64x256xbf16, #tpu.memory_space<vmem>>, vector<64x256xbf16>
    %c0_1 = arith.constant 0 : index
    %c0_2 = arith.constant 0 : index
    %1 = vector.load %arg3[%c0_1, %c0_2] : memref<256x128xbf16, #tpu.memory_space<vmem>>, vector<256x128xbf16>
    %cst = arith.constant dense<0.000000e+00> : vector<64x128xf32>
    %2 = tpu.matmul %0, %1, %cst {dimension_numbers = #tpu.dot_dimension_numbers<[1], [0], [0], [1], [0, 0, 1, 1], [], []>} : vector<64x256xbf16>, vector<256x128xbf16>, vector<64x128xf32> -> vector<64x128xf32>
    %c0_3 = arith.constant 0 : index
    %c0_4 = arith.constant 0 : index
    %3 = vector.load %arg4[%c0_3, %c0_4] : memref<1x128xf32, #tpu.memory_space<vmem>>, vector<1x128xf32>
    %4 = vector.broadcast %3 : vector<1x128xf32> to vector<64x128xf32>
    %5 = arith.addf %2, %4 : vector<64x128xf32>
    %c0_5 = arith.constant 0 : index
    %c0_6 = arith.constant 0 : index
    %6 = vector.load %arg5[%c0_5, %c0_6] : memref<64x128xf32, #tpu.memory_space<vmem>>, vector<64x128xf32>
    tpu.vector_store %arg5[%c0_5, %c0_6], %5 {strides = array<i32>} : memref<64x128xf32, #tpu.memory_space<vmem>>, vector<64x128xf32>,
    return
  }
  func.func @transform_0(%arg0: i32, %arg1: i32) -> (i32, i32) {
    %c0_i32 = arith.constant 0 : i32
    %c0_i32_0 = arith.constant 0 : i32
    return %arg0, %c0_i32 : i32, i32
  }
  func.func @transform_1(%arg0: i32, %arg1: i32) -> (i32, i32) {
    %c0_i32 = arith.constant 0 : i32
    %c0_i32_0 = arith.constant 0 : i32
    return %c0_i32, %arg1 : i32, i32
  }
  func.func @transform_2(%arg0: i32, %arg1: i32) -> (i32, i32) {
    %c0_i32 = arith.constant 0 : i32
    %c0_i32_0 = arith.constant 0 : i32
    return %c0_i32, %arg1 : i32, i32
  }
  func.func @transform_3(%arg0: i32, %arg1: i32) -> (i32, i32) {
    %c0_i32 = arith.constant 0 : i32
    return %arg0, %arg1 : i32, i32
  }
}

module attributes {stable_mosaic.version = 11 : i64} {
  func.func @_lstm_rec_kernel(%arg0: i32, %arg1: i32, %arg2: i32, %arg3: memref<8x1xi32, #tpu.memory_space<vmem>>, %arg4: memref<8x8x512xbf16, #tpu.memory_space<vmem>>, %arg5: memref<128x512xbf16, #tpu.memory_space<vmem>>, %arg6: memref<8x8x128xbf16, #tpu.memory_space<vmem>>, %arg7: memref<8x128xf32, #tpu.memory_space<vmem>>, %arg8: memref<8x128xf32, #tpu.memory_space<vmem>>) attributes {dimension_semantics = [#tpu.dimension_semantics<parallel>, #tpu.dimension_semantics<parallel>, #tpu.dimension_semantics<arbitrary>], iteration_bounds = array<i64: 2, 1, 1>, scalar_prefetch = 0 : i64, scratch_operands = 2 : i64, tpu.core_type = #tpu.core_type<tc>, window_params = [{transform_indices = @transform_0, window_bounds = array<i64: 8, 1>}, {transform_indices = @transform_1, window_bounds = array<i64: 8, 8, 512>}, {transform_indices = @transform_2, window_bounds = array<i64: 128, 512>}, {transform_indices = @transform_3, window_bounds = array<i64: 8, 8, 128>}]} {
    %c0_i32 = arith.constant 0 : i32
    %0 = arith.cmpi eq, %arg2, %c0_i32 : i32
    %1 = arith.extui %0 : i1 to i32
    %c0_i32_0 = arith.constant 0 : i32
    %2 = arith.cmpi ne, %1, %c0_i32_0 : i32
    scf.if %2 {
      %cst_158 = arith.constant 0.000000e+00 : f32
      %501 = vector.broadcast %cst_158 : f32 to vector<8x128xf32>
      %c0_159 = arith.constant 0 : index
      %c0_160 = arith.constant 0 : index
      %502 = vector.load %arg7[%c0_159, %c0_160] : memref<8x128xf32, #tpu.memory_space<vmem>>, vector<8x128xf32>
      tpu.vector_store %arg7[%c0_159, %c0_160], %501 {strides = array<i32>} : memref<8x128xf32, #tpu.memory_space<vmem>>, vector<8x128xf32>,
      %cst_161 = arith.constant 0.000000e+00 : f32
      %503 = vector.broadcast %cst_161 : f32 to vector<8x128xf32>
      %c0_162 = arith.constant 0 : index
      %c0_163 = arith.constant 0 : index
      %504 = vector.load %arg8[%c0_162, %c0_163] : memref<8x128xf32, #tpu.memory_space<vmem>>, vector<8x128xf32>
      tpu.vector_store %arg8[%c0_162, %c0_163], %503 {strides = array<i32>} : memref<8x128xf32, #tpu.memory_space<vmem>>, vector<8x128xf32>,
    } else {
    }
    %c0 = arith.constant 0 : index
    %c0_1 = arith.constant 0 : index
    %3 = vector.load %arg5[%c0, %c0_1] : memref<128x512xbf16, #tpu.memory_space<vmem>>, vector<128x512xbf16>
    %c0_2 = arith.constant 0 : index
    %c0_3 = arith.constant 0 : index
    %4 = vector.load %arg3[%c0_2, %c0_3] : memref<8x1xi32, #tpu.memory_space<vmem>>, vector<8x1xi32>
    %c2_i32 = arith.constant 2 : i32
    %5 = arith.muli %c2_i32, %arg2 : i32
    %c0_i32_4 = arith.constant 0 : i32
    %6 = arith.subi %c0_i32_4, %5 : i32
    %7 = arith.muli %arg0, %6 : i32
    %8 = arith.addi %arg2, %7 : i32
    %c0_5 = arith.constant 0 : index
    %c0_6 = arith.constant 0 : index
    %9 = vector.load %arg7[%c0_5, %c0_6] : memref<8x128xf32, #tpu.memory_space<vmem>>, vector<8x128xf32>
    %c0_7 = arith.constant 0 : index
    %c0_8 = arith.constant 0 : index
    %10 = vector.load %arg8[%c0_7, %c0_8] : memref<8x128xf32, #tpu.memory_space<vmem>>, vector<8x128xf32>
    %c0_i32_9 = arith.constant 0 : i32
    %c2_i32_10 = arith.constant 2 : i32
    %11 = arith.muli %c2_i32_10, %c0_i32_9 : i32
    %c7_i32 = arith.constant 7 : i32
    %12 = arith.subi %c7_i32, %11 : i32
    %13 = arith.muli %arg0, %12 : i32
    %14 = arith.addi %c0_i32_9, %13 : i32
    %c8_i32 = arith.constant 8 : i32
    %15 = arith.muli %8, %c8_i32 : i32
    %16 = arith.addi %15, %14 : i32
    %17 = arith.index_cast %14 : i32 to index
    %c0_11 = arith.constant 0 : index
    %c0_12 = arith.constant 0 : index
    %18 = vector.load %arg4[%17, %c0_11, %c0_12] : memref<8x8x512xbf16, #tpu.memory_space<vmem>>, vector<1x8x512xbf16>
    %19 = vector.shape_cast %18 : vector<1x8x512xbf16> to vector<8x512xbf16>
    %20 = arith.extf %19 : vector<8x512xbf16> to vector<8x512xf32>
    %21 = arith.truncf %9 : vector<8x128xf32> to vector<8x128xbf16>
    %cst = arith.constant dense<0.000000e+00> : vector<8x512xf32>
    %22 = tpu.matmul %21, %3, %cst {dimension_numbers = #tpu.dot_dimension_numbers<[1], [0], [0], [1], [0, 0, 1, 1], [], []>} : vector<8x128xbf16>, vector<128x512xbf16>, vector<8x512xf32> -> vector<8x512xf32>
    %23 = arith.addf %20, %22 : vector<8x512xf32>
    %24 = vector.extract_strided_slice %23 {offsets = [0, 0], sizes = [8, 128], strides = [1, 1]} : vector<8x512xf32> to vector<8x128xf32>
    %cst_13 = arith.constant 5.000000e-01 : f32
    %25 = vector.broadcast %cst_13 : f32 to vector<8x128xf32>
    %26 = arith.mulf %25, %24 : vector<8x128xf32>
    %27 = math.tanh %26 : vector<8x128xf32>
    %cst_14 = arith.constant 1.000000e+00 : f32
    %28 = vector.broadcast %cst_14 : f32 to vector<8x128xf32>
    %29 = arith.addf %27, %28 : vector<8x128xf32>
    %cst_15 = arith.constant 5.000000e-01 : f32
    %30 = vector.broadcast %cst_15 : f32 to vector<8x128xf32>
    %31 = arith.mulf %30, %29 : vector<8x128xf32>
    %32 = vector.extract_strided_slice %23 {offsets = [0, 128], sizes = [8, 128], strides = [1, 1]} : vector<8x512xf32> to vector<8x128xf32>
    %cst_16 = arith.constant 5.000000e-01 : f32
    %33 = vector.broadcast %cst_16 : f32 to vector<8x128xf32>
    %34 = arith.mulf %33, %32 : vector<8x128xf32>
    %35 = math.tanh %34 : vector<8x128xf32>
    %cst_17 = arith.constant 1.000000e+00 : f32
    %36 = vector.broadcast %cst_17 : f32 to vector<8x128xf32>
    %37 = arith.addf %35, %36 : vector<8x128xf32>
    %cst_18 = arith.constant 5.000000e-01 : f32
    %38 = vector.broadcast %cst_18 : f32 to vector<8x128xf32>
    %39 = arith.mulf %38, %37 : vector<8x128xf32>
    %40 = vector.extract_strided_slice %23 {offsets = [0, 256], sizes = [8, 128], strides = [1, 1]} : vector<8x512xf32> to vector<8x128xf32>
    %41 = math.tanh %40 : vector<8x128xf32>
    %42 = vector.extract_strided_slice %23 {offsets = [0, 384], sizes = [8, 128], strides = [1, 1]} : vector<8x512xf32> to vector<8x128xf32>
    %cst_19 = arith.constant 5.000000e-01 : f32
    %43 = vector.broadcast %cst_19 : f32 to vector<8x128xf32>
    %44 = arith.mulf %43, %42 : vector<8x128xf32>
    %45 = math.tanh %44 : vector<8x128xf32>
    %cst_20 = arith.constant 1.000000e+00 : f32
    %46 = vector.broadcast %cst_20 : f32 to vector<8x128xf32>
    %47 = arith.addf %45, %46 : vector<8x128xf32>
    %cst_21 = arith.constant 5.000000e-01 : f32
    %48 = vector.broadcast %cst_21 : f32 to vector<8x128xf32>
    %49 = arith.mulf %48, %47 : vector<8x128xf32>
    %50 = arith.mulf %39, %10 : vector<8x128xf32>
    %51 = arith.mulf %31, %41 : vector<8x128xf32>
    %52 = arith.addf %50, %51 : vector<8x128xf32>
    %53 = math.tanh %52 : vector<8x128xf32>
    %54 = arith.mulf %49, %53 : vector<8x128xf32>
    %55 = vector.broadcast %16 : i32 to vector<8x1xi32>
    %56 = arith.cmpi slt, %55, %4 : vector<8x1xi32>
    %57 = vector.shape_cast %56 : vector<8x1xi1> to vector<8x1xi1>
    %58 = vector.broadcast %57 : vector<8x1xi1> to vector<8x128xi1>
    %59 = arith.select %58, %54, %9 : vector<8x128xi1>, vector<8x128xf32>
    %60 = vector.shape_cast %56 : vector<8x1xi1> to vector<8x1xi1>
    %61 = vector.broadcast %60 : vector<8x1xi1> to vector<8x128xi1>
    %62 = arith.select %61, %52, %10 : vector<8x128xi1>, vector<8x128xf32>
    %cst_22 = arith.constant 0.000000e+00 : f32
    %63 = vector.shape_cast %56 : vector<8x1xi1> to vector<8x1xi1>
    %64 = vector.broadcast %63 : vector<8x1xi1> to vector<8x128xi1>
    %65 = vector.broadcast %cst_22 : f32 to vector<8x128xf32>
    %66 = arith.select %64, %54, %65 : vector<8x128xi1>, vector<8x128xf32>
    %67 = arith.truncf %66 : vector<8x128xf32> to vector<8x128xbf16>
    %68 = arith.index_cast %14 : i32 to index
    %c0_23 = arith.constant 0 : index
    %c0_24 = arith.constant 0 : index
    %69 = vector.load %arg6[%68, %c0_23, %c0_24] : memref<8x8x128xbf16, #tpu.memory_space<vmem>>, vector<1x8x128xbf16>
    %70 = vector.shape_cast %69 : vector<1x8x128xbf16> to vector<8x128xbf16>
    %71 = vector.shape_cast %67 : vector<8x128xbf16> to vector<1x8x128xbf16>
    tpu.vector_store %arg6[%68, %c0_23, %c0_24], %71 {strides = array<i32>} : memref<8x8x128xbf16, #tpu.memory_space<vmem>>, vector<1x8x128xbf16>,
    %c1_i32 = arith.constant 1 : i32
    %c2_i32_25 = arith.constant 2 : i32
    %72 = arith.muli %c2_i32_25, %c1_i32 : i32
    %c7_i32_26 = arith.constant 7 : i32
    %73 = arith.subi %c7_i32_26, %72 : i32
    %74 = arith.muli %arg0, %73 : i32
    %75 = arith.addi %c1_i32, %74 : i32
    %c8_i32_27 = arith.constant 8 : i32
    %76 = arith.muli %8, %c8_i32_27 : i32
    %77 = arith.addi %76, %75 : i32
    %78 = arith.index_cast %75 : i32 to index
    %c0_28 = arith.constant 0 : index
    %c0_29 = arith.constant 0 : index
    %79 = vector.load %arg4[%78, %c0_28, %c0_29] : memref<8x8x512xbf16, #tpu.memory_space<vmem>>, vector<1x8x512xbf16>
    %80 = vector.shape_cast %79 : vector<1x8x512xbf16> to vector<8x512xbf16>
    %81 = arith.extf %80 : vector<8x512xbf16> to vector<8x512xf32>
    %82 = arith.truncf %59 : vector<8x128xf32> to vector<8x128xbf16>
    %cst_30 = arith.constant dense<0.000000e+00> : vector<8x512xf32>
    %83 = tpu.matmul %82, %3, %cst_30 {dimension_numbers = #tpu.dot_dimension_numbers<[1], [0], [0], [1], [0, 0, 1, 1], [], []>} : vector<8x128xbf16>, vector<128x512xbf16>, vector<8x512xf32> -> vector<8x512xf32>
    %84 = arith.addf %81, %83 : vector<8x512xf32>
    %85 = vector.extract_strided_slice %84 {offsets = [0, 0], sizes = [8, 128], strides = [1, 1]} : vector<8x512xf32> to vector<8x128xf32>
    %cst_31 = arith.constant 5.000000e-01 : f32
    %86 = vector.broadcast %cst_31 : f32 to vector<8x128xf32>
    %87 = arith.mulf %86, %85 : vector<8x128xf32>
    %88 = math.tanh %87 : vector<8x128xf32>
    %cst_32 = arith.constant 1.000000e+00 : f32
    %89 = vector.broadcast %cst_32 : f32 to vector<8x128xf32>
    %90 = arith.addf %88, %89 : vector<8x128xf32>
    %cst_33 = arith.constant 5.000000e-01 : f32
    %91 = vector.broadcast %cst_33 : f32 to vector<8x128xf32>
    %92 = arith.mulf %91, %90 : vector<8x128xf32>
    %93 = vector.extract_strided_slice %84 {offsets = [0, 128], sizes = [8, 128], strides = [1, 1]} : vector<8x512xf32> to vector<8x128xf32>
    %cst_34 = arith.constant 5.000000e-01 : f32
    %94 = vector.broadcast %cst_34 : f32 to vector<8x128xf32>
    %95 = arith.mulf %94, %93 : vector<8x128xf32>
    %96 = math.tanh %95 : vector<8x128xf32>
    %cst_35 = arith.constant 1.000000e+00 : f32
    %97 = vector.broadcast %cst_35 : f32 to vector<8x128xf32>
    %98 = arith.addf %96, %97 : vector<8x128xf32>
    %cst_36 = arith.constant 5.000000e-01 : f32
    %99 = vector.broadcast %cst_36 : f32 to vector<8x128xf32>
    %100 = arith.mulf %99, %98 : vector<8x128xf32>
    %101 = vector.extract_strided_slice %84 {offsets = [0, 256], sizes = [8, 128], strides = [1, 1]} : vector<8x512xf32> to vector<8x128xf32>
    %102 = math.tanh %101 : vector<8x128xf32>
    %103 = vector.extract_strided_slice %84 {offsets = [0, 384], sizes = [8, 128], strides = [1, 1]} : vector<8x512xf32> to vector<8x128xf32>
    %cst_37 = arith.constant 5.000000e-01 : f32
    %104 = vector.broadcast %cst_37 : f32 to vector<8x128xf32>
    %105 = arith.mulf %104, %103 : vector<8x128xf32>
    %106 = math.tanh %105 : vector<8x128xf32>
    %cst_38 = arith.constant 1.000000e+00 : f32
    %107 = vector.broadcast %cst_38 : f32 to vector<8x128xf32>
    %108 = arith.addf %106, %107 : vector<8x128xf32>
    %cst_39 = arith.constant 5.000000e-01 : f32
    %109 = vector.broadcast %cst_39 : f32 to vector<8x128xf32>
    %110 = arith.mulf %109, %108 : vector<8x128xf32>
    %111 = arith.mulf %100, %62 : vector<8x128xf32>
    %112 = arith.mulf %92, %102 : vector<8x128xf32>
    %113 = arith.addf %111, %112 : vector<8x128xf32>
    %114 = math.tanh %113 : vector<8x128xf32>
    %115 = arith.mulf %110, %114 : vector<8x128xf32>
    %116 = vector.broadcast %77 : i32 to vector<8x1xi32>
    %117 = arith.cmpi slt, %116, %4 : vector<8x1xi32>
    %118 = vector.shape_cast %117 : vector<8x1xi1> to vector<8x1xi1>
    %119 = vector.broadcast %118 : vector<8x1xi1> to vector<8x128xi1>
    %120 = arith.select %119, %115, %59 : vector<8x128xi1>, vector<8x128xf32>
    %121 = vector.shape_cast %117 : vector<8x1xi1> to vector<8x1xi1>
    %122 = vector.broadcast %121 : vector<8x1xi1> to vector<8x128xi1>
    %123 = arith.select %122, %113, %62 : vector<8x128xi1>, vector<8x128xf32>
    %cst_40 = arith.constant 0.000000e+00 : f32
    %124 = vector.shape_cast %117 : vector<8x1xi1> to vector<8x1xi1>
    %125 = vector.broadcast %124 : vector<8x1xi1> to vector<8x128xi1>
    %126 = vector.broadcast %cst_40 : f32 to vector<8x128xf32>
    %127 = arith.select %125, %115, %126 : vector<8x128xi1>, vector<8x128xf32>
    %128 = arith.truncf %127 : vector<8x128xf32> to vector<8x128xbf16>
    %129 = arith.index_cast %75 : i32 to index
    %c0_41 = arith.constant 0 : index
    %c0_42 = arith.constant 0 : index
    %130 = vector.load %arg6[%129, %c0_41, %c0_42] : memref<8x8x128xbf16, #tpu.memory_space<vmem>>, vector<1x8x128xbf16>
    %131 = vector.shape_cast %130 : vector<1x8x128xbf16> to vector<8x128xbf16>
    %132 = vector.shape_cast %128 : vector<8x128xbf16> to vector<1x8x128xbf16>
    tpu.vector_store %arg6[%129, %c0_41, %c0_42], %132 {strides = array<i32>} : memref<8x8x128xbf16, #tpu.memory_space<vmem>>, vector<1x8x128xbf16>,
    %c2_i32_43 = arith.constant 2 : i32
    %c2_i32_44 = arith.constant 2 : i32
    %133 = arith.muli %c2_i32_44, %c2_i32_43 : i32
    %c7_i32_45 = arith.constant 7 : i32
    %134 = arith.subi %c7_i32_45, %133 : i32
    %135 = arith.muli %arg0, %134 : i32
    %136 = arith.addi %c2_i32_43, %135 : i32
    %c8_i32_46 = arith.constant 8 : i32
    %137 = arith.muli %8, %c8_i32_46 : i32
    %138 = arith.addi %137, %136 : i32
    %139 = arith.index_cast %136 : i32 to index
    %c0_47 = arith.constant 0 : index
    %c0_48 = arith.constant 0 : index
    %140 = vector.load %arg4[%139, %c0_47, %c0_48] : memref<8x8x512xbf16, #tpu.memory_space<vmem>>, vector<1x8x512xbf16>
    %141 = vector.shape_cast %140 : vector<1x8x512xbf16> to vector<8x512xbf16>
    %142 = arith.extf %141 : vector<8x512xbf16> to vector<8x512xf32>
    %143 = arith.truncf %120 : vector<8x128xf32> to vector<8x128xbf16>
    %cst_49 = arith.constant dense<0.000000e+00> : vector<8x512xf32>
    %144 = tpu.matmul %143, %3, %cst_49 {dimension_numbers = #tpu.dot_dimension_numbers<[1], [0], [0], [1], [0, 0, 1, 1], [], []>} : vector<8x128xbf16>, vector<128x512xbf16>, vector<8x512xf32> -> vector<8x512xf32>
    %145 = arith.addf %142, %144 : vector<8x512xf32>
    %146 = vector.extract_strided_slice %145 {offsets = [0, 0], sizes = [8, 128], strides = [1, 1]} : vector<8x512xf32> to vector<8x128xf32>
    %cst_50 = arith.constant 5.000000e-01 : f32
    %147 = vector.broadcast %cst_50 : f32 to vector<8x128xf32>
    %148 = arith.mulf %147, %146 : vector<8x128xf32>
    %149 = math.tanh %148 : vector<8x128xf32>
    %cst_51 = arith.constant 1.000000e+00 : f32
    %150 = vector.broadcast %cst_51 : f32 to vector<8x128xf32>
    %151 = arith.addf %149, %150 : vector<8x128xf32>
    %cst_52 = arith.constant 5.000000e-01 : f32
    %152 = vector.broadcast %cst_52 : f32 to vector<8x128xf32>
    %153 = arith.mulf %152, %151 : vector<8x128xf32>
    %154 = vector.extract_strided_slice %145 {offsets = [0, 128], sizes = [8, 128], strides = [1, 1]} : vector<8x512xf32> to vector<8x128xf32>
    %cst_53 = arith.constant 5.000000e-01 : f32
    %155 = vector.broadcast %cst_53 : f32 to vector<8x128xf32>
    %156 = arith.mulf %155, %154 : vector<8x128xf32>
    %157 = math.tanh %156 : vector<8x128xf32>
    %cst_54 = arith.constant 1.000000e+00 : f32
    %158 = vector.broadcast %cst_54 : f32 to vector<8x128xf32>
    %159 = arith.addf %157, %158 : vector<8x128xf32>
    %cst_55 = arith.constant 5.000000e-01 : f32
    %160 = vector.broadcast %cst_55 : f32 to vector<8x128xf32>
    %161 = arith.mulf %160, %159 : vector<8x128xf32>
    %162 = vector.extract_strided_slice %145 {offsets = [0, 256], sizes = [8, 128], strides = [1, 1]} : vector<8x512xf32> to vector<8x128xf32>
    %163 = math.tanh %162 : vector<8x128xf32>
    %164 = vector.extract_strided_slice %145 {offsets = [0, 384], sizes = [8, 128], strides = [1, 1]} : vector<8x512xf32> to vector<8x128xf32>
    %cst_56 = arith.constant 5.000000e-01 : f32
    %165 = vector.broadcast %cst_56 : f32 to vector<8x128xf32>
    %166 = arith.mulf %165, %164 : vector<8x128xf32>
    %167 = math.tanh %166 : vector<8x128xf32>
    %cst_57 = arith.constant 1.000000e+00 : f32
    %168 = vector.broadcast %cst_57 : f32 to vector<8x128xf32>
    %169 = arith.addf %167, %168 : vector<8x128xf32>
    %cst_58 = arith.constant 5.000000e-01 : f32
    %170 = vector.broadcast %cst_58 : f32 to vector<8x128xf32>
    %171 = arith.mulf %170, %169 : vector<8x128xf32>
    %172 = arith.mulf %161, %123 : vector<8x128xf32>
    %173 = arith.mulf %153, %163 : vector<8x128xf32>
    %174 = arith.addf %172, %173 : vector<8x128xf32>
    %175 = math.tanh %174 : vector<8x128xf32>
    %176 = arith.mulf %171, %175 : vector<8x128xf32>
    %177 = vector.broadcast %138 : i32 to vector<8x1xi32>
    %178 = arith.cmpi slt, %177, %4 : vector<8x1xi32>
    %179 = vector.shape_cast %178 : vector<8x1xi1> to vector<8x1xi1>
    %180 = vector.broadcast %179 : vector<8x1xi1> to vector<8x128xi1>
    %181 = arith.select %180, %176, %120 : vector<8x128xi1>, vector<8x128xf32>
    %182 = vector.shape_cast %178 : vector<8x1xi1> to vector<8x1xi1>
    %183 = vector.broadcast %182 : vector<8x1xi1> to vector<8x128xi1>
    %184 = arith.select %183, %174, %123 : vector<8x128xi1>, vector<8x128xf32>
    %cst_59 = arith.constant 0.000000e+00 : f32
    %185 = vector.shape_cast %178 : vector<8x1xi1> to vector<8x1xi1>
    %186 = vector.broadcast %185 : vector<8x1xi1> to vector<8x128xi1>
    %187 = vector.broadcast %cst_59 : f32 to vector<8x128xf32>
    %188 = arith.select %186, %176, %187 : vector<8x128xi1>, vector<8x128xf32>
    %189 = arith.truncf %188 : vector<8x128xf32> to vector<8x128xbf16>
    %190 = arith.index_cast %136 : i32 to index
    %c0_60 = arith.constant 0 : index
    %c0_61 = arith.constant 0 : index
    %191 = vector.load %arg6[%190, %c0_60, %c0_61] : memref<8x8x128xbf16, #tpu.memory_space<vmem>>, vector<1x8x128xbf16>
    %192 = vector.shape_cast %191 : vector<1x8x128xbf16> to vector<8x128xbf16>
    %193 = vector.shape_cast %189 : vector<8x128xbf16> to vector<1x8x128xbf16>
    tpu.vector_store %arg6[%190, %c0_60, %c0_61], %193 {strides = array<i32>} : memref<8x8x128xbf16, #tpu.memory_space<vmem>>, vector<1x8x128xbf16>,
    %c3_i32 = arith.constant 3 : i32
    %c2_i32_62 = arith.constant 2 : i32
    %194 = arith.muli %c2_i32_62, %c3_i32 : i32
    %c7_i32_63 = arith.constant 7 : i32
    %195 = arith.subi %c7_i32_63, %194 : i32
    %196 = arith.muli %arg0, %195 : i32
    %197 = arith.addi %c3_i32, %196 : i32
    %c8_i32_64 = arith.constant 8 : i32
    %198 = arith.muli %8, %c8_i32_64 : i32
    %199 = arith.addi %198, %197 : i32
    %200 = arith.index_cast %197 : i32 to index
    %c0_65 = arith.constant 0 : index
    %c0_66 = arith.constant 0 : index
    %201 = vector.load %arg4[%200, %c0_65, %c0_66] : memref<8x8x512xbf16, #tpu.memory_space<vmem>>, vector<1x8x512xbf16>
    %202 = vector.shape_cast %201 : vector<1x8x512xbf16> to vector<8x512xbf16>
    %203 = arith.extf %202 : vector<8x512xbf16> to vector<8x512xf32>
    %204 = arith.truncf %181 : vector<8x128xf32> to vector<8x128xbf16>
    %cst_67 = arith.constant dense<0.000000e+00> : vector<8x512xf32>
    %205 = tpu.matmul %204, %3, %cst_67 {dimension_numbers = #tpu.dot_dimension_numbers<[1], [0], [0], [1], [0, 0, 1, 1], [], []>} : vector<8x128xbf16>, vector<128x512xbf16>, vector<8x512xf32> -> vector<8x512xf32>
    %206 = arith.addf %203, %205 : vector<8x512xf32>
    %207 = vector.extract_strided_slice %206 {offsets = [0, 0], sizes = [8, 128], strides = [1, 1]} : vector<8x512xf32> to vector<8x128xf32>
    %cst_68 = arith.constant 5.000000e-01 : f32
    %208 = vector.broadcast %cst_68 : f32 to vector<8x128xf32>
    %209 = arith.mulf %208, %207 : vector<8x128xf32>
    %210 = math.tanh %209 : vector<8x128xf32>
    %cst_69 = arith.constant 1.000000e+00 : f32
    %211 = vector.broadcast %cst_69 : f32 to vector<8x128xf32>
    %212 = arith.addf %210, %211 : vector<8x128xf32>
    %cst_70 = arith.constant 5.000000e-01 : f32
    %213 = vector.broadcast %cst_70 : f32 to vector<8x128xf32>
    %214 = arith.mulf %213, %212 : vector<8x128xf32>
    %215 = vector.extract_strided_slice %206 {offsets = [0, 128], sizes = [8, 128], strides = [1, 1]} : vector<8x512xf32> to vector<8x128xf32>
    %cst_71 = arith.constant 5.000000e-01 : f32
    %216 = vector.broadcast %cst_71 : f32 to vector<8x128xf32>
    %217 = arith.mulf %216, %215 : vector<8x128xf32>
    %218 = math.tanh %217 : vector<8x128xf32>
    %cst_72 = arith.constant 1.000000e+00 : f32
    %219 = vector.broadcast %cst_72 : f32 to vector<8x128xf32>
    %220 = arith.addf %218, %219 : vector<8x128xf32>
    %cst_73 = arith.constant 5.000000e-01 : f32
    %221 = vector.broadcast %cst_73 : f32 to vector<8x128xf32>
    %222 = arith.mulf %221, %220 : vector<8x128xf32>
    %223 = vector.extract_strided_slice %206 {offsets = [0, 256], sizes = [8, 128], strides = [1, 1]} : vector<8x512xf32> to vector<8x128xf32>
    %224 = math.tanh %223 : vector<8x128xf32>
    %225 = vector.extract_strided_slice %206 {offsets = [0, 384], sizes = [8, 128], strides = [1, 1]} : vector<8x512xf32> to vector<8x128xf32>
    %cst_74 = arith.constant 5.000000e-01 : f32
    %226 = vector.broadcast %cst_74 : f32 to vector<8x128xf32>
    %227 = arith.mulf %226, %225 : vector<8x128xf32>
    %228 = math.tanh %227 : vector<8x128xf32>
    %cst_75 = arith.constant 1.000000e+00 : f32
    %229 = vector.broadcast %cst_75 : f32 to vector<8x128xf32>
    %230 = arith.addf %228, %229 : vector<8x128xf32>
    %cst_76 = arith.constant 5.000000e-01 : f32
    %231 = vector.broadcast %cst_76 : f32 to vector<8x128xf32>
    %232 = arith.mulf %231, %230 : vector<8x128xf32>
    %233 = arith.mulf %222, %184 : vector<8x128xf32>
    %234 = arith.mulf %214, %224 : vector<8x128xf32>
    %235 = arith.addf %233, %234 : vector<8x128xf32>
    %236 = math.tanh %235 : vector<8x128xf32>
    %237 = arith.mulf %232, %236 : vector<8x128xf32>
    %238 = vector.broadcast %199 : i32 to vector<8x1xi32>
    %239 = arith.cmpi slt, %238, %4 : vector<8x1xi32>
    %240 = vector.shape_cast %239 : vector<8x1xi1> to vector<8x1xi1>
    %241 = vector.broadcast %240 : vector<8x1xi1> to vector<8x128xi1>
    %242 = arith.select %241, %237, %181 : vector<8x128xi1>, vector<8x128xf32>
    %243 = vector.shape_cast %239 : vector<8x1xi1> to vector<8x1xi1>
    %244 = vector.broadcast %243 : vector<8x1xi1> to vector<8x128xi1>
    %245 = arith.select %244, %235, %184 : vector<8x128xi1>, vector<8x128xf32>
    %cst_77 = arith.constant 0.000000e+00 : f32
    %246 = vector.shape_cast %239 : vector<8x1xi1> to vector<8x1xi1>
    %247 = vector.broadcast %246 : vector<8x1xi1> to vector<8x128xi1>
    %248 = vector.broadcast %cst_77 : f32 to vector<8x128xf32>
    %249 = arith.select %247, %237, %248 : vector<8x128xi1>, vector<8x128xf32>
    %250 = arith.truncf %249 : vector<8x128xf32> to vector<8x128xbf16>
    %251 = arith.index_cast %197 : i32 to index
    %c0_78 = arith.constant 0 : index
    %c0_79 = arith.constant 0 : index
    %252 = vector.load %arg6[%251, %c0_78, %c0_79] : memref<8x8x128xbf16, #tpu.memory_space<vmem>>, vector<1x8x128xbf16>
    %253 = vector.shape_cast %252 : vector<1x8x128xbf16> to vector<8x128xbf16>
    %254 = vector.shape_cast %250 : vector<8x128xbf16> to vector<1x8x128xbf16>
    tpu.vector_store %arg6[%251, %c0_78, %c0_79], %254 {strides = array<i32>} : memref<8x8x128xbf16, #tpu.memory_space<vmem>>, vector<1x8x128xbf16>,
    %c4_i32 = arith.constant 4 : i32
    %c2_i32_80 = arith.constant 2 : i32
    %255 = arith.muli %c2_i32_80, %c4_i32 : i32
    %c7_i32_81 = arith.constant 7 : i32
    %256 = arith.subi %c7_i32_81, %255 : i32
    %257 = arith.muli %arg0, %256 : i32
    %258 = arith.addi %c4_i32, %257 : i32
    %c8_i32_82 = arith.constant 8 : i32
    %259 = arith.muli %8, %c8_i32_82 : i32
    %260 = arith.addi %259, %258 : i32
    %261 = arith.index_cast %258 : i32 to index
    %c0_83 = arith.constant 0 : index
    %c0_84 = arith.constant 0 : index
    %262 = vector.load %arg4[%261, %c0_83, %c0_84] : memref<8x8x512xbf16, #tpu.memory_space<vmem>>, vector<1x8x512xbf16>
    %263 = vector.shape_cast %262 : vector<1x8x512xbf16> to vector<8x512xbf16>
    %264 = arith.extf %263 : vector<8x512xbf16> to vector<8x512xf32>
    %265 = arith.truncf %242 : vector<8x128xf32> to vector<8x128xbf16>
    %cst_85 = arith.constant dense<0.000000e+00> : vector<8x512xf32>
    %266 = tpu.matmul %265, %3, %cst_85 {dimension_numbers = #tpu.dot_dimension_numbers<[1], [0], [0], [1], [0, 0, 1, 1], [], []>} : vector<8x128xbf16>, vector<128x512xbf16>, vector<8x512xf32> -> vector<8x512xf32>
    %267 = arith.addf %264, %266 : vector<8x512xf32>
    %268 = vector.extract_strided_slice %267 {offsets = [0, 0], sizes = [8, 128], strides = [1, 1]} : vector<8x512xf32> to vector<8x128xf32>
    %cst_86 = arith.constant 5.000000e-01 : f32
    %269 = vector.broadcast %cst_86 : f32 to vector<8x128xf32>
    %270 = arith.mulf %269, %268 : vector<8x128xf32>
    %271 = math.tanh %270 : vector<8x128xf32>
    %cst_87 = arith.constant 1.000000e+00 : f32
    %272 = vector.broadcast %cst_87 : f32 to vector<8x128xf32>
    %273 = arith.addf %271, %272 : vector<8x128xf32>
    %cst_88 = arith.constant 5.000000e-01 : f32
    %274 = vector.broadcast %cst_88 : f32 to vector<8x128xf32>
    %275 = arith.mulf %274, %273 : vector<8x128xf32>
    %276 = vector.extract_strided_slice %267 {offsets = [0, 128], sizes = [8, 128], strides = [1, 1]} : vector<8x512xf32> to vector<8x128xf32>
    %cst_89 = arith.constant 5.000000e-01 : f32
    %277 = vector.broadcast %cst_89 : f32 to vector<8x128xf32>
    %278 = arith.mulf %277, %276 : vector<8x128xf32>
    %279 = math.tanh %278 : vector<8x128xf32>
    %cst_90 = arith.constant 1.000000e+00 : f32
    %280 = vector.broadcast %cst_90 : f32 to vector<8x128xf32>
    %281 = arith.addf %279, %280 : vector<8x128xf32>
    %cst_91 = arith.constant 5.000000e-01 : f32
    %282 = vector.broadcast %cst_91 : f32 to vector<8x128xf32>
    %283 = arith.mulf %282, %281 : vector<8x128xf32>
    %284 = vector.extract_strided_slice %267 {offsets = [0, 256], sizes = [8, 128], strides = [1, 1]} : vector<8x512xf32> to vector<8x128xf32>
    %285 = math.tanh %284 : vector<8x128xf32>
    %286 = vector.extract_strided_slice %267 {offsets = [0, 384], sizes = [8, 128], strides = [1, 1]} : vector<8x512xf32> to vector<8x128xf32>
    %cst_92 = arith.constant 5.000000e-01 : f32
    %287 = vector.broadcast %cst_92 : f32 to vector<8x128xf32>
    %288 = arith.mulf %287, %286 : vector<8x128xf32>
    %289 = math.tanh %288 : vector<8x128xf32>
    %cst_93 = arith.constant 1.000000e+00 : f32
    %290 = vector.broadcast %cst_93 : f32 to vector<8x128xf32>
    %291 = arith.addf %289, %290 : vector<8x128xf32>
    %cst_94 = arith.constant 5.000000e-01 : f32
    %292 = vector.broadcast %cst_94 : f32 to vector<8x128xf32>
    %293 = arith.mulf %292, %291 : vector<8x128xf32>
    %294 = arith.mulf %283, %245 : vector<8x128xf32>
    %295 = arith.mulf %275, %285 : vector<8x128xf32>
    %296 = arith.addf %294, %295 : vector<8x128xf32>
    %297 = math.tanh %296 : vector<8x128xf32>
    %298 = arith.mulf %293, %297 : vector<8x128xf32>
    %299 = vector.broadcast %260 : i32 to vector<8x1xi32>
    %300 = arith.cmpi slt, %299, %4 : vector<8x1xi32>
    %301 = vector.shape_cast %300 : vector<8x1xi1> to vector<8x1xi1>
    %302 = vector.broadcast %301 : vector<8x1xi1> to vector<8x128xi1>
    %303 = arith.select %302, %298, %242 : vector<8x128xi1>, vector<8x128xf32>
    %304 = vector.shape_cast %300 : vector<8x1xi1> to vector<8x1xi1>
    %305 = vector.broadcast %304 : vector<8x1xi1> to vector<8x128xi1>
    %306 = arith.select %305, %296, %245 : vector<8x128xi1>, vector<8x128xf32>
    %cst_95 = arith.constant 0.000000e+00 : f32
    %307 = vector.shape_cast %300 : vector<8x1xi1> to vector<8x1xi1>
    %308 = vector.broadcast %307 : vector<8x1xi1> to vector<8x128xi1>
    %309 = vector.broadcast %cst_95 : f32 to vector<8x128xf32>
    %310 = arith.select %308, %298, %309 : vector<8x128xi1>, vector<8x128xf32>
    %311 = arith.truncf %310 : vector<8x128xf32> to vector<8x128xbf16>
    %312 = arith.index_cast %258 : i32 to index
    %c0_96 = arith.constant 0 : index
    %c0_97 = arith.constant 0 : index
    %313 = vector.load %arg6[%312, %c0_96, %c0_97] : memref<8x8x128xbf16, #tpu.memory_space<vmem>>, vector<1x8x128xbf16>
    %314 = vector.shape_cast %313 : vector<1x8x128xbf16> to vector<8x128xbf16>
    %315 = vector.shape_cast %311 : vector<8x128xbf16> to vector<1x8x128xbf16>
    tpu.vector_store %arg6[%312, %c0_96, %c0_97], %315 {strides = array<i32>} : memref<8x8x128xbf16, #tpu.memory_space<vmem>>, vector<1x8x128xbf16>,
    %c5_i32 = arith.constant 5 : i32
    %c2_i32_98 = arith.constant 2 : i32
    %316 = arith.muli %c2_i32_98, %c5_i32 : i32
    %c7_i32_99 = arith.constant 7 : i32
    %317 = arith.subi %c7_i32_99, %316 : i32
    %318 = arith.muli %arg0, %317 : i32
    %319 = arith.addi %c5_i32, %318 : i32
    %c8_i32_100 = arith.constant 8 : i32
    %320 = arith.muli %8, %c8_i32_100 : i32
    %321 = arith.addi %320, %319 : i32
    %322 = arith.index_cast %319 : i32 to index
    %c0_101 = arith.constant 0 : index
    %c0_102 = arith.constant 0 : index
    %323 = vector.load %arg4[%322, %c0_101, %c0_102] : memref<8x8x512xbf16, #tpu.memory_space<vmem>>, vector<1x8x512xbf16>
    %324 = vector.shape_cast %323 : vector<1x8x512xbf16> to vector<8x512xbf16>
    %325 = arith.extf %324 : vector<8x512xbf16> to vector<8x512xf32>
    %326 = arith.truncf %303 : vector<8x128xf32> to vector<8x128xbf16>
    %cst_103 = arith.constant dense<0.000000e+00> : vector<8x512xf32>
    %327 = tpu.matmul %326, %3, %cst_103 {dimension_numbers = #tpu.dot_dimension_numbers<[1], [0], [0], [1], [0, 0, 1, 1], [], []>} : vector<8x128xbf16>, vector<128x512xbf16>, vector<8x512xf32> -> vector<8x512xf32>
    %328 = arith.addf %325, %327 : vector<8x512xf32>
    %329 = vector.extract_strided_slice %328 {offsets = [0, 0], sizes = [8, 128], strides = [1, 1]} : vector<8x512xf32> to vector<8x128xf32>
    %cst_104 = arith.constant 5.000000e-01 : f32
    %330 = vector.broadcast %cst_104 : f32 to vector<8x128xf32>
    %331 = arith.mulf %330, %329 : vector<8x128xf32>
    %332 = math.tanh %331 : vector<8x128xf32>
    %cst_105 = arith.constant 1.000000e+00 : f32
    %333 = vector.broadcast %cst_105 : f32 to vector<8x128xf32>
    %334 = arith.addf %332, %333 : vector<8x128xf32>
    %cst_106 = arith.constant 5.000000e-01 : f32
    %335 = vector.broadcast %cst_106 : f32 to vector<8x128xf32>
    %336 = arith.mulf %335, %334 : vector<8x128xf32>
    %337 = vector.extract_strided_slice %328 {offsets = [0, 128], sizes = [8, 128], strides = [1, 1]} : vector<8x512xf32> to vector<8x128xf32>
    %cst_107 = arith.constant 5.000000e-01 : f32
    %338 = vector.broadcast %cst_107 : f32 to vector<8x128xf32>
    %339 = arith.mulf %338, %337 : vector<8x128xf32>
    %340 = math.tanh %339 : vector<8x128xf32>
    %cst_108 = arith.constant 1.000000e+00 : f32
    %341 = vector.broadcast %cst_108 : f32 to vector<8x128xf32>
    %342 = arith.addf %340, %341 : vector<8x128xf32>
    %cst_109 = arith.constant 5.000000e-01 : f32
    %343 = vector.broadcast %cst_109 : f32 to vector<8x128xf32>
    %344 = arith.mulf %343, %342 : vector<8x128xf32>
    %345 = vector.extract_strided_slice %328 {offsets = [0, 256], sizes = [8, 128], strides = [1, 1]} : vector<8x512xf32> to vector<8x128xf32>
    %346 = math.tanh %345 : vector<8x128xf32>
    %347 = vector.extract_strided_slice %328 {offsets = [0, 384], sizes = [8, 128], strides = [1, 1]} : vector<8x512xf32> to vector<8x128xf32>
    %cst_110 = arith.constant 5.000000e-01 : f32
    %348 = vector.broadcast %cst_110 : f32 to vector<8x128xf32>
    %349 = arith.mulf %348, %347 : vector<8x128xf32>
    %350 = math.tanh %349 : vector<8x128xf32>
    %cst_111 = arith.constant 1.000000e+00 : f32
    %351 = vector.broadcast %cst_111 : f32 to vector<8x128xf32>
    %352 = arith.addf %350, %351 : vector<8x128xf32>
    %cst_112 = arith.constant 5.000000e-01 : f32
    %353 = vector.broadcast %cst_112 : f32 to vector<8x128xf32>
    %354 = arith.mulf %353, %352 : vector<8x128xf32>
    %355 = arith.mulf %344, %306 : vector<8x128xf32>
    %356 = arith.mulf %336, %346 : vector<8x128xf32>
    %357 = arith.addf %355, %356 : vector<8x128xf32>
    %358 = math.tanh %357 : vector<8x128xf32>
    %359 = arith.mulf %354, %358 : vector<8x128xf32>
    %360 = vector.broadcast %321 : i32 to vector<8x1xi32>
    %361 = arith.cmpi slt, %360, %4 : vector<8x1xi32>
    %362 = vector.shape_cast %361 : vector<8x1xi1> to vector<8x1xi1>
    %363 = vector.broadcast %362 : vector<8x1xi1> to vector<8x128xi1>
    %364 = arith.select %363, %359, %303 : vector<8x128xi1>, vector<8x128xf32>
    %365 = vector.shape_cast %361 : vector<8x1xi1> to vector<8x1xi1>
    %366 = vector.broadcast %365 : vector<8x1xi1> to vector<8x128xi1>
    %367 = arith.select %366, %357, %306 : vector<8x128xi1>, vector<8x128xf32>
    %cst_113 = arith.constant 0.000000e+00 : f32
    %368 = vector.shape_cast %361 : vector<8x1xi1> to vector<8x1xi1>
    %369 = vector.broadcast %368 : vector<8x1xi1> to vector<8x128xi1>
    %370 = vector.broadcast %cst_113 : f32 to vector<8x128xf32>
    %371 = arith.select %369, %359, %370 : vector<8x128xi1>, vector<8x128xf32>
    %372 = arith.truncf %371 : vector<8x128xf32> to vector<8x128xbf16>
    %373 = arith.index_cast %319 : i32 to index
    %c0_114 = arith.constant 0 : index
    %c0_115 = arith.constant 0 : index
    %374 = vector.load %arg6[%373, %c0_114, %c0_115] : memref<8x8x128xbf16, #tpu.memory_space<vmem>>, vector<1x8x128xbf16>
    %375 = vector.shape_cast %374 : vector<1x8x128xbf16> to vector<8x128xbf16>
    %376 = vector.shape_cast %372 : vector<8x128xbf16> to vector<1x8x128xbf16>
    tpu.vector_store %arg6[%373, %c0_114, %c0_115], %376 {strides = array<i32>} : memref<8x8x128xbf16, #tpu.memory_space<vmem>>, vector<1x8x128xbf16>,
    %c6_i32 = arith.constant 6 : i32
    %c2_i32_116 = arith.constant 2 : i32
    %377 = arith.muli %c2_i32_116, %c6_i32 : i32
    %c7_i32_117 = arith.constant 7 : i32
    %378 = arith.subi %c7_i32_117, %377 : i32
    %379 = arith.muli %arg0, %378 : i32
    %380 = arith.addi %c6_i32, %379 : i32
    %c8_i32_118 = arith.constant 8 : i32
    %381 = arith.muli %8, %c8_i32_118 : i32
    %382 = arith.addi %381, %380 : i32
    %383 = arith.index_cast %380 : i32 to index
    %c0_119 = arith.constant 0 : index
    %c0_120 = arith.constant 0 : index
    %384 = vector.load %arg4[%383, %c0_119, %c0_120] : memref<8x8x512xbf16, #tpu.memory_space<vmem>>, vector<1x8x512xbf16>
    %385 = vector.shape_cast %384 : vector<1x8x512xbf16> to vector<8x512xbf16>
    %386 = arith.extf %385 : vector<8x512xbf16> to vector<8x512xf32>
    %387 = arith.truncf %364 : vector<8x128xf32> to vector<8x128xbf16>
    %cst_121 = arith.constant dense<0.000000e+00> : vector<8x512xf32>
    %388 = tpu.matmul %387, %3, %cst_121 {dimension_numbers = #tpu.dot_dimension_numbers<[1], [0], [0], [1], [0, 0, 1, 1], [], []>} : vector<8x128xbf16>, vector<128x512xbf16>, vector<8x512xf32> -> vector<8x512xf32>
    %389 = arith.addf %386, %388 : vector<8x512xf32>
    %390 = vector.extract_strided_slice %389 {offsets = [0, 0], sizes = [8, 128], strides = [1, 1]} : vector<8x512xf32> to vector<8x128xf32>
    %cst_122 = arith.constant 5.000000e-01 : f32
    %391 = vector.broadcast %cst_122 : f32 to vector<8x128xf32>
    %392 = arith.mulf %391, %390 : vector<8x128xf32>
    %393 = math.tanh %392 : vector<8x128xf32>
    %cst_123 = arith.constant 1.000000e+00 : f32
    %394 = vector.broadcast %cst_123 : f32 to vector<8x128xf32>
    %395 = arith.addf %393, %394 : vector<8x128xf32>
    %cst_124 = arith.constant 5.000000e-01 : f32
    %396 = vector.broadcast %cst_124 : f32 to vector<8x128xf32>
    %397 = arith.mulf %396, %395 : vector<8x128xf32>
    %398 = vector.extract_strided_slice %389 {offsets = [0, 128], sizes = [8, 128], strides = [1, 1]} : vector<8x512xf32> to vector<8x128xf32>
    %cst_125 = arith.constant 5.000000e-01 : f32
    %399 = vector.broadcast %cst_125 : f32 to vector<8x128xf32>
    %400 = arith.mulf %399, %398 : vector<8x128xf32>
    %401 = math.tanh %400 : vector<8x128xf32>
    %cst_126 = arith.constant 1.000000e+00 : f32
    %402 = vector.broadcast %cst_126 : f32 to vector<8x128xf32>
    %403 = arith.addf %401, %402 : vector<8x128xf32>
    %cst_127 = arith.constant 5.000000e-01 : f32
    %404 = vector.broadcast %cst_127 : f32 to vector<8x128xf32>
    %405 = arith.mulf %404, %403 : vector<8x128xf32>
    %406 = vector.extract_strided_slice %389 {offsets = [0, 256], sizes = [8, 128], strides = [1, 1]} : vector<8x512xf32> to vector<8x128xf32>
    %407 = math.tanh %406 : vector<8x128xf32>
    %408 = vector.extract_strided_slice %389 {offsets = [0, 384], sizes = [8, 128], strides = [1, 1]} : vector<8x512xf32> to vector<8x128xf32>
    %cst_128 = arith.constant 5.000000e-01 : f32
    %409 = vector.broadcast %cst_128 : f32 to vector<8x128xf32>
    %410 = arith.mulf %409, %408 : vector<8x128xf32>
    %411 = math.tanh %410 : vector<8x128xf32>
    %cst_129 = arith.constant 1.000000e+00 : f32
    %412 = vector.broadcast %cst_129 : f32 to vector<8x128xf32>
    %413 = arith.addf %411, %412 : vector<8x128xf32>
    %cst_130 = arith.constant 5.000000e-01 : f32
    %414 = vector.broadcast %cst_130 : f32 to vector<8x128xf32>
    %415 = arith.mulf %414, %413 : vector<8x128xf32>
    %416 = arith.mulf %405, %367 : vector<8x128xf32>
    %417 = arith.mulf %397, %407 : vector<8x128xf32>
    %418 = arith.addf %416, %417 : vector<8x128xf32>
    %419 = math.tanh %418 : vector<8x128xf32>
    %420 = arith.mulf %415, %419 : vector<8x128xf32>
    %421 = vector.broadcast %382 : i32 to vector<8x1xi32>
    %422 = arith.cmpi slt, %421, %4 : vector<8x1xi32>
    %423 = vector.shape_cast %422 : vector<8x1xi1> to vector<8x1xi1>
    %424 = vector.broadcast %423 : vector<8x1xi1> to vector<8x128xi1>
    %425 = arith.select %424, %420, %364 : vector<8x128xi1>, vector<8x128xf32>
    %426 = vector.shape_cast %422 : vector<8x1xi1> to vector<8x1xi1>
    %427 = vector.broadcast %426 : vector<8x1xi1> to vector<8x128xi1>
    %428 = arith.select %427, %418, %367 : vector<8x128xi1>, vector<8x128xf32>
    %cst_131 = arith.constant 0.000000e+00 : f32
    %429 = vector.shape_cast %422 : vector<8x1xi1> to vector<8x1xi1>
    %430 = vector.broadcast %429 : vector<8x1xi1> to vector<8x128xi1>
    %431 = vector.broadcast %cst_131 : f32 to vector<8x128xf32>
    %432 = arith.select %430, %420, %431 : vector<8x128xi1>, vector<8x128xf32>
    %433 = arith.truncf %432 : vector<8x128xf32> to vector<8x128xbf16>
    %434 = arith.index_cast %380 : i32 to index
    %c0_132 = arith.constant 0 : index
    %c0_133 = arith.constant 0 : index
    %435 = vector.load %arg6[%434, %c0_132, %c0_133] : memref<8x8x128xbf16, #tpu.memory_space<vmem>>, vector<1x8x128xbf16>
    %436 = vector.shape_cast %435 : vector<1x8x128xbf16> to vector<8x128xbf16>
    %437 = vector.shape_cast %433 : vector<8x128xbf16> to vector<1x8x128xbf16>
    tpu.vector_store %arg6[%434, %c0_132, %c0_133], %437 {strides = array<i32>} : memref<8x8x128xbf16, #tpu.memory_space<vmem>>, vector<1x8x128xbf16>,
    %c7_i32_134 = arith.constant 7 : i32
    %c2_i32_135 = arith.constant 2 : i32
    %438 = arith.muli %c2_i32_135, %c7_i32_134 : i32
    %c7_i32_136 = arith.constant 7 : i32
    %439 = arith.subi %c7_i32_136, %438 : i32
    %440 = arith.muli %arg0, %439 : i32
    %441 = arith.addi %c7_i32_134, %440 : i32
    %c8_i32_137 = arith.constant 8 : i32
    %442 = arith.muli %8, %c8_i32_137 : i32
    %443 = arith.addi %442, %441 : i32
    %444 = arith.index_cast %441 : i32 to index
    %c0_138 = arith.constant 0 : index
    %c0_139 = arith.constant 0 : index
    %445 = vector.load %arg4[%444, %c0_138, %c0_139] : memref<8x8x512xbf16, #tpu.memory_space<vmem>>, vector<1x8x512xbf16>
    %446 = vector.shape_cast %445 : vector<1x8x512xbf16> to vector<8x512xbf16>
    %447 = arith.extf %446 : vector<8x512xbf16> to vector<8x512xf32>
    %448 = arith.truncf %425 : vector<8x128xf32> to vector<8x128xbf16>
    %cst_140 = arith.constant dense<0.000000e+00> : vector<8x512xf32>
    %449 = tpu.matmul %448, %3, %cst_140 {dimension_numbers = #tpu.dot_dimension_numbers<[1], [0], [0], [1], [0, 0, 1, 1], [], []>} : vector<8x128xbf16>, vector<128x512xbf16>, vector<8x512xf32> -> vector<8x512xf32>
    %450 = arith.addf %447, %449 : vector<8x512xf32>
    %451 = vector.extract_strided_slice %450 {offsets = [0, 0], sizes = [8, 128], strides = [1, 1]} : vector<8x512xf32> to vector<8x128xf32>
    %cst_141 = arith.constant 5.000000e-01 : f32
    %452 = vector.broadcast %cst_141 : f32 to vector<8x128xf32>
    %453 = arith.mulf %452, %451 : vector<8x128xf32>
    %454 = math.tanh %453 : vector<8x128xf32>
    %cst_142 = arith.constant 1.000000e+00 : f32
    %455 = vector.broadcast %cst_142 : f32 to vector<8x128xf32>
    %456 = arith.addf %454, %455 : vector<8x128xf32>
    %cst_143 = arith.constant 5.000000e-01 : f32
    %457 = vector.broadcast %cst_143 : f32 to vector<8x128xf32>
    %458 = arith.mulf %457, %456 : vector<8x128xf32>
    %459 = vector.extract_strided_slice %450 {offsets = [0, 128], sizes = [8, 128], strides = [1, 1]} : vector<8x512xf32> to vector<8x128xf32>
    %cst_144 = arith.constant 5.000000e-01 : f32
    %460 = vector.broadcast %cst_144 : f32 to vector<8x128xf32>
    %461 = arith.mulf %460, %459 : vector<8x128xf32>
    %462 = math.tanh %461 : vector<8x128xf32>
    %cst_145 = arith.constant 1.000000e+00 : f32
    %463 = vector.broadcast %cst_145 : f32 to vector<8x128xf32>
    %464 = arith.addf %462, %463 : vector<8x128xf32>
    %cst_146 = arith.constant 5.000000e-01 : f32
    %465 = vector.broadcast %cst_146 : f32 to vector<8x128xf32>
    %466 = arith.mulf %465, %464 : vector<8x128xf32>
    %467 = vector.extract_strided_slice %450 {offsets = [0, 256], sizes = [8, 128], strides = [1, 1]} : vector<8x512xf32> to vector<8x128xf32>
    %468 = math.tanh %467 : vector<8x128xf32>
    %469 = vector.extract_strided_slice %450 {offsets = [0, 384], sizes = [8, 128], strides = [1, 1]} : vector<8x512xf32> to vector<8x128xf32>
    %cst_147 = arith.constant 5.000000e-01 : f32
    %470 = vector.broadcast %cst_147 : f32 to vector<8x128xf32>
    %471 = arith.mulf %470, %469 : vector<8x128xf32>
    %472 = math.tanh %471 : vector<8x128xf32>
    %cst_148 = arith.constant 1.000000e+00 : f32
    %473 = vector.broadcast %cst_148 : f32 to vector<8x128xf32>
    %474 = arith.addf %472, %473 : vector<8x128xf32>
    %cst_149 = arith.constant 5.000000e-01 : f32
    %475 = vector.broadcast %cst_149 : f32 to vector<8x128xf32>
    %476 = arith.mulf %475, %474 : vector<8x128xf32>
    %477 = arith.mulf %466, %428 : vector<8x128xf32>
    %478 = arith.mulf %458, %468 : vector<8x128xf32>
    %479 = arith.addf %477, %478 : vector<8x128xf32>
    %480 = math.tanh %479 : vector<8x128xf32>
    %481 = arith.mulf %476, %480 : vector<8x128xf32>
    %482 = vector.broadcast %443 : i32 to vector<8x1xi32>
    %483 = arith.cmpi slt, %482, %4 : vector<8x1xi32>
    %484 = vector.shape_cast %483 : vector<8x1xi1> to vector<8x1xi1>
    %485 = vector.broadcast %484 : vector<8x1xi1> to vector<8x128xi1>
    %486 = arith.select %485, %481, %425 : vector<8x128xi1>, vector<8x128xf32>
    %487 = vector.shape_cast %483 : vector<8x1xi1> to vector<8x1xi1>
    %488 = vector.broadcast %487 : vector<8x1xi1> to vector<8x128xi1>
    %489 = arith.select %488, %479, %428 : vector<8x128xi1>, vector<8x128xf32>
    %cst_150 = arith.constant 0.000000e+00 : f32
    %490 = vector.shape_cast %483 : vector<8x1xi1> to vector<8x1xi1>
    %491 = vector.broadcast %490 : vector<8x1xi1> to vector<8x128xi1>
    %492 = vector.broadcast %cst_150 : f32 to vector<8x128xf32>
    %493 = arith.select %491, %481, %492 : vector<8x128xi1>, vector<8x128xf32>
    %494 = arith.truncf %493 : vector<8x128xf32> to vector<8x128xbf16>
    %495 = arith.index_cast %441 : i32 to index
    %c0_151 = arith.constant 0 : index
    %c0_152 = arith.constant 0 : index
    %496 = vector.load %arg6[%495, %c0_151, %c0_152] : memref<8x8x128xbf16, #tpu.memory_space<vmem>>, vector<1x8x128xbf16>
    %497 = vector.shape_cast %496 : vector<1x8x128xbf16> to vector<8x128xbf16>
    %498 = vector.shape_cast %494 : vector<8x128xbf16> to vector<1x8x128xbf16>
    tpu.vector_store %arg6[%495, %c0_151, %c0_152], %498 {strides = array<i32>} : memref<8x8x128xbf16, #tpu.memory_space<vmem>>, vector<1x8x128xbf16>,
    %c8_i32_153 = arith.constant 8 : i32
    %c0_154 = arith.constant 0 : index
    %c0_155 = arith.constant 0 : index
    %499 = vector.load %arg7[%c0_154, %c0_155] : memref<8x128xf32, #tpu.memory_space<vmem>>, vector<8x128xf32>
    tpu.vector_store %arg7[%c0_154, %c0_155], %486 {strides = array<i32>} : memref<8x128xf32, #tpu.memory_space<vmem>>, vector<8x128xf32>,
    %c0_156 = arith.constant 0 : index
    %c0_157 = arith.constant 0 : index
    %500 = vector.load %arg8[%c0_156, %c0_157] : memref<8x128xf32, #tpu.memory_space<vmem>>, vector<8x128xf32>
    tpu.vector_store %arg8[%c0_156, %c0_157], %489 {strides = array<i32>} : memref<8x128xf32, #tpu.memory_space<vmem>>, vector<8x128xf32>,
    return
  }
  func.func @transform_0(%arg0: i32, %arg1: i32, %arg2: i32) -> (i32, i32) {
    %c0_i32 = arith.constant 0 : i32
    %c0_i32_0 = arith.constant 0 : i32
    return %arg1, %c0_i32 : i32, i32
  }
  func.func @transform_1(%arg0: i32, %arg1: i32, %arg2: i32) -> (i32, i32, i32) {
    %c2_i32 = arith.constant 2 : i32
    %0 = arith.muli %c2_i32, %arg2 : i32
    %c0_i32 = arith.constant 0 : i32
    %1 = arith.subi %c0_i32, %0 : i32
    %2 = arith.muli %arg0, %1 : i32
    %3 = arith.addi %arg2, %2 : i32
    %c0_i32_0 = arith.constant 0 : i32
    return %3, %arg1, %arg0 : i32, i32, i32
  }
  func.func @transform_2(%arg0: i32, %arg1: i32, %arg2: i32) -> (i32, i32) {
    %c0_i32 = arith.constant 0 : i32
    %c0_i32_0 = arith.constant 0 : i32
    return %c0_i32, %arg0 : i32, i32
  }
  func.func @transform_3(%arg0: i32, %arg1: i32, %arg2: i32) -> (i32, i32, i32) {
    %c2_i32 = arith.constant 2 : i32
    %0 = arith.muli %c2_i32, %arg2 : i32
    %c0_i32 = arith.constant 0 : i32
    %1 = arith.subi %c0_i32, %0 : i32
    %2 = arith.muli %arg0, %1 : i32
    %3 = arith.addi %arg2, %2 : i32
    %c0_i32_0 = arith.constant 0 : i32
    return %3, %arg1, %arg0 : i32, i32, i32
  }
}

</mosaic_0001>

<bundles_post_ra>
// kernel: bilstm_forward.3
= control target key start
LH: loop header
LB: loop body
LE: loop exit
PB: predicated region body
PF: predicated region fallthrough
CT: control target
= control target key end

     0   :  { %8 = vsyncpa [#allocation3], 0  ;;  %s1193_s0 = inlined_call_operand.vmem [shape: bf16[64,16], index: 0, kind: input, shape index: {}]   ;;  %s1194_s1 = inlined_call_operand.hbm [shape: bf16[16,1024], index: 1, kind: input, shape index: {}]   ;;  %s1195_s2 = inlined_call_operand.vmem [shape: f32[1,1024], index: 2, kind: input, shape index: {}]   ;;  %s1196_s3 = inlined_call_operand.vmem [shape: bf16[64,1024], index: 3, kind: output, shape index: {}]  }
   0x1   :  { %10 = vsyncpa [#allocation3 + $0x1], 0  ;;  %s987_s12 = smov 0   ;;  %s989_s13 = smov 0  }
   0x2   :  { %s991_s14 = smov 0   ;;  %s993_s15 = smov 0  }
   0x3   :  { %s995_s16 = smov 0   ;;  %s997_s17 = smov 0  }
   0x4 LB: > { %s746_s18 = sadd.s32 4294967295, %s960_s17   ;;  %s25_s19 = sadd.s32 1, %s956_s16  ;;  %s960_s17 = sphi %s997_s17, %s16_s17   ;;  %s956_s16 = sphi %s995_s16, %s1205_s16   ;;  %s952_s15 = sphi %s993_s15, %s1204_s15   ;;  %s948_s14 = sphi %s991_s14, %s1203_s14   ;;  %s944_s13 = sphi %s989_s13, %s1202_s13   ;;  %s940_s12 = sphi %s987_s12, %s1201_s12  }
   0x5   : > { %p26_p0 = scmp.ge.s32.totalorder %s25_s19, 2  ;;  %s61_s20 = sadd.s32 1, %s948_s14 }
   0x6   : > { %p68_p1 = scmp.ne.s32.totalorder %s948_s14, %s944_s13  ;;  %p69_p2 = scmp.eq.s32.totalorder %s960_s17, 0 }
   0x7   : > { %s1207_s19 = smov (%p26_p0, %s25_s19), 0  ;;  %p74_p4 = scmp.ne.s32.totalorder %s944_s13, %s940_s12 }
   0x8   : > { %p1023_p3 = por %p69_p2, %p68_p1  ;;  %s58_s22 = ssub.s32 %s956_s16, %s1207_s19 }
   0x9   : > { %p75_p5 = scmp.eq.s32.totalorder %s746_s18, 0  ;;  %p59_p6 = scmp.eq.s32.totalorder %s58_s22, 0 }
   0xa   : > { %p126_p7 = scmp.eq.s32.totalorder %s746_s18, 1  ;;  %p819_p10 = scmp.lt.s32.totalorder %s960_s17, 2 }
   0xb   : > { %p1030_p8 = por %p75_p5, %p74_p4  ;;  %s161_s26 = sand.u32 1, %s948_s14  }
   0xc   : > { %s1035_s24 = scalar_select %p59_p6, %s948_s14, %s61_s20  }
   0xd   : > { %p1037_p9 = por %p126_p7, %p68_p1  ;;  %s795_s27 = sshll.u32 %s956_s16, 8 }
   0xe   : > { %s751_s28 = sshll.u32 %s161_s26, 5  ;;  %s171_s4 = scalar_lea.hbm %s1194_s1, %s795_s27 }
   0xf   : > { %s165_s5 = scalar_lea.vmem [#allocation2], %s751_s28  ;;  %p1049_p11 = pnand %p819_p10, %p1023_p3 }
  0x10   : > { %s172_s6 = sshll.u32 %s165_s5, 4  ;;  %p754_p12 = scmp.ge.s32.totalorder %s960_s17, 1  ;;  %s173_s6 = int_to_ptr.vmem [resolvable:$true] %s172_s6 }
  0x11   : > { %s162_s8 = scalar_lea.sflag [#allocation3], %s161_s26  ;;  %p884_p13 = pneg %p1049_p11 }
  0x12   : > { %s895_s9 = scalar_lea.vmem %s173_s6, 512  ;;  %s962_s10 = smov [#allocation2]  }
  0x13   : > { %p896_p0 = scmp.ne.s32.totalorder %s173_s6, %s895_s9  ;;  %s900_s11 = sshll.u32 %s962_s10, 4  ;;  %s901_s11 = int_to_ptr.vmem [resolvable:$false] %s900_s11 }
  0x14   : > { %s902_s12 = scalar_lea.vmem %s901_s11, 1024  ;;  %p903_p4 = scmp.lt.s32.totalorder %s173_s6, %s901_s11 }
  0x15   : > { %p898_p1 = pnand %p896_p0, %p884_p13  ;;  %p904_p5 = scmp.lt.s32.totalorder %s902_s12, %s895_s9 }
  0x17   : > { %p899_p2 = pneg %p898_p1  ;;  %p905_p3 = por %p904_p5, %p903_p4 }
  0x19   : > { %p906_p6 = pnand %p905_p3, %p899_p2 }
  0x1b   : > { %909 = shalt.err (!%p906_p6)
}
  0x1c   : > { %s963_s18 = smov 512   ;;  %s964_s20 = smov 256  }
  0x1d   : > { %s965_s21 = smov 16   ;;  %p188_p7 = scmp.lt.s32.totalorder %s960_s17, 3 }
  0x1e   : > { %818 = dma.hbm_to_vmem [thread:$0]  (!%p1049_p11), %s171_s4, 512, %s173_s6, %s162_s8, %s963_s18, %s964_s20, %s965_s21  }
  0x1f   : > { %p189_p10 = pnand %p754_p12, %p188_p7 }
  0x20   : > { %s1062_s22 = sand.u32 (!%p189_p10), 1, %s944_s13  }
  0x21   : > { %192 = sbr.rel (%p189_p10) target bundleno = 281 (0x119), region = 32  ;;  %s755_s26 = sshll.u32 (!%p189_p10), %s1062_s22, 5 }
  0x22   : > { %s195_s27 = scalar_lea.sflag (!%p189_p10), [#allocation3], %s1062_s22  ;;  %s198_s28 = scalar_lea.vmem (!%p189_p10), [#allocation2], %s755_s26 }
  0x26   : > { %935 = dma.done.wait (%p1030_p8), %s195_s27, 512  }
  0x27   : > { %937 = vsyncadd (%p1030_p8), %s195_s27, 4294966784  ;;  %v966_v0 = vmov 0   ;;  %v872_v1 = vld [vmem:[%s198_s28 + $0x4] ss:$16 sps:$4 sm:$0xff]   ;;  %v874_v2 = vld [vmem:[%s198_s28 + $0xc] ss:$16 sps:$4 sm:$0xff]   ;;  %v258_v9 = vlaneseq }
  0x28   : > { %363 = vmatprep.mubr.bf16.mxu0 %v966_v0  ;;  %436 = vmatprep.mubr.bf16.mxu1 %v966_v0  ;;  %v876_v3 = vld [vmem:[%s198_s28] ss:$16 sps:$4 sm:$0xff]   ;;  %v877_v4 = vld [vmem:[%s198_s28 + $0x8] ss:$16 sps:$4 sm:$0xff]   ;;  %vm318_vm0 = vcmask 130048   ;;  %s757_s9 = sshll.u32 %s952_s15, 2 }
  0x29   : > { %345 = vmatprep.subr.bf16.mxu0 %v872_v1  ;;  %418 = vmatprep.subr.bf16.mxu1 %v874_v2  ;;  %v878_v5 = vld [vmem:[%s1193_s0] sm:$0xff]   ;;  %v879_v6 = vld [vmem:[%s1193_s0 + $0x8] sm:$0xff]   ;;  %v880_v7 = vld [vmem:[%s1193_s0 + $0x10] sm:$0xff]   ;;  %p237_p8 = scmp.lt.s32.totalorder %s757_s9, 7  ;;  %v259_v10 = vshrl.u32 %v258_v9, 7  ;;  %s756_s18 = sshll.u32 %s1062_s22, 7 }
  0x2a   : > { %346 = vmatpush1.bf16.msra.mxu0 %v876_v3  ;;  %419 = vmatpush1.bf16.msra.mxu1 %v877_v4  ;;  %v881_v8 = vld [vmem:[%s1193_s0 + $0x18] sm:$0xff]   ;;  %s1107_s20 = scalar_lea.vmem [#allocation4], %s756_s18  ;;  %s812_s21 = sshll.u32 (%p1037_p9), %s952_s15, 4 }
  0x2b   : > { %s1209_s9 = smov (!%p237_p8, %s757_s9), 7  ;;  %v260_v11 = vsub.s32 0, %v259_v10  ;;  %v268_v12 = vsub.s32 2, %v259_v10  ;;  %v264_v13 = vsub.s32 1, %v259_v10  ;;  %v272_v14 = vsub.s32 3, %v259_v10  ;;  %s601_s27 = scalar_lea.vmem (%p1037_p9), %s1196_s3, %s812_s21 }
  0x2c   : > { %s239_s12 = scalar_lea.vmem %s1195_s2, %s1209_s9 }
  0x2d   : > { %766 = vmatmul.mubr.msk.bf16.vlgmr.msra.gmra.mxu0 %vm318_vm0, %v878_v5  ;;  %770 = vmatmul.mubr.msk.bf16.vlgmr.msra.gmra.mxu1 %vm318_vm0, %v878_v5  ;;  %v256_v15 = vld [vmem:[%s239_s12] sm:$0xf] }
  0x2e   : > { %373 = vmatprep.mubr.bf16.mxu0 %v966_v0  ;;  %446 = vmatprep.mubr.bf16.mxu1 %v966_v0  ;;  %v1094_v16 = vrot.slane %v256_v15, %v260_v11  ;;  %v1096_v17 = vrot.slane %v256_v15, %v268_v12  ;;  %v1098_v18 = vrot.slane %v256_v15, %v264_v13 }
  0x2f   : > { %v1100_v19 = vrot.slane %v256_v15, %v272_v14 }
  0x35   : > { %767 = vmatmul.mubr.msk.bf16.gmra.mxu0 %vm318_vm0, %v879_v6  ;;  %771 = vmatmul.mubr.msk.bf16.gmra.mxu1 %vm318_vm0, %v879_v6 }
  0x36   : > { %383 = vmatprep.mubr.bf16.mxu0 %v966_v0  ;;  %456 = vmatprep.mubr.bf16.mxu1 %v966_v0 }
  0x3d   : > { %768 = vmatmul.mubr.msk.bf16.gmra.mxu0 %vm318_vm0, %v880_v7  ;;  %772 = vmatmul.mubr.msk.bf16.gmra.mxu1 %vm318_vm0, %v880_v7 }
  0x3e   : > { %393 = vmatprep.mubr.bf16.mxu0 %v966_v0  ;;  %466 = vmatprep.mubr.bf16.mxu1 %v966_v0 }
  0x45   : > { %769 = vmatmul.mubr.msk.bf16.gmra.mxu0 %vm318_vm0, %v881_v8  ;;  %773 = vmatmul.mubr.msk.bf16.gmra.mxu1 %vm318_vm0, %v881_v8 }
  0xed   : > { %v365_v20 = vpop.f32.mrf.mxu0  ;;  %v438_v21 = vpop.f32.mrf.mxu1 }
  0xee   : > { %v366_v24 = vadd.f32 %v365_v20, %v1094_v16  ;;  %v439_v25 = vadd.f32 %v438_v21, %v1096_v17 }
  0xef   : > { %v367_v22 = vpop.f32.mrf.mxu0  ;;  %v440_v23 = vpop.f32.mrf.mxu1 }
  0xf0   : > { %v368_v26 = vadd.f32 %v367_v22, %v1098_v18  ;;  %v441_v27 = vadd.f32 %v440_v23, %v1100_v19 }
  0xf1   : > { %v369_v28 = vpop.f32.mrf.mxu0  ;;  %v442_v29 = vpop.f32.mrf.mxu1 }
  0xf2   : > { %v796_v30 = vpack.c.bf16 %v368_v26, %v366_v24  ;;  %v797_v31 = vpack.c.bf16 %v441_v27, %v439_v25  ;;  %v370_v34 = vadd.f32 %v369_v28, %v1094_v16  ;;  %v443_v35 = vadd.f32 %v442_v29, %v1096_v17 }
  0xf3   : > { %v371_v32 = vpop.f32.mrf.mxu0  ;;  %v444_v33 = vpop.f32.mrf.mxu1 }
  0xf4   : > { %573 = vst [vmem:[%s1107_s20] sm:$0xff] %v796_v30  ;;  %574 = vst [vmem:[%s1107_s20 + $0x8] sm:$0xff] %v797_v31  ;;  %v372_v36 = vadd.f32 %v371_v32, %v1098_v18  ;;  %v445_v37 = vadd.f32 %v444_v33, %v1100_v19 }
  0xf5   : > { %v375_v38 = vpop.f32.mrf.mxu0  ;;  %v448_v39 = vpop.f32.mrf.mxu1 }
  0xf6   : > { %v798_v40 = vpack.c.bf16 %v372_v36, %v370_v34  ;;  %v799_v41 = vpack.c.bf16 %v445_v37, %v443_v35  ;;  %v376_v44 = vadd.f32 %v375_v38, %v1094_v16  ;;  %v449_v45 = vadd.f32 %v448_v39, %v1096_v17 }
  0xf7   : > { %v377_v42 = vpop.f32.mrf.mxu0  ;;  %v450_v43 = vpop.f32.mrf.mxu1 }
  0xf8   : > { %575 = vst [vmem:[%s1107_s20 + $0x10] sm:$0xff] %v798_v40  ;;  %576 = vst [vmem:[%s1107_s20 + $0x18] sm:$0xff] %v799_v41  ;;  %v378_v46 = vadd.f32 %v377_v42, %v1098_v18  ;;  %v451_v47 = vadd.f32 %v450_v43, %v1100_v19 }
  0xf9   : > { %v379_v48 = vpop.f32.mrf.mxu0  ;;  %v452_v49 = vpop.f32.mrf.mxu1 }
  0xfa   : > { %v800_v50 = vpack.c.bf16 %v378_v46, %v376_v44  ;;  %v801_v51 = vpack.c.bf16 %v451_v47, %v449_v45  ;;  %v380_v54 = vadd.f32 %v379_v48, %v1094_v16  ;;  %v453_v55 = vadd.f32 %v452_v49, %v1096_v17 }
  0xfb   : > { %v381_v52 = vpop.f32.mrf.mxu0  ;;  %v454_v53 = vpop.f32.mrf.mxu1 }
  0xfc   : > { %577 = vst [vmem:[%s1107_s20 + $0x20] sm:$0xff] %v800_v50  ;;  %578 = vst [vmem:[%s1107_s20 + $0x28] sm:$0xff] %v801_v51  ;;  %v382_v56 = vadd.f32 %v381_v52, %v1098_v18  ;;  %v455_v57 = vadd.f32 %v454_v53, %v1100_v19 }
  0xfd   : > { %v385_v58 = vpop.f32.mrf.mxu0  ;;  %v458_v59 = vpop.f32.mrf.mxu1 }
  0xfe   : > { %v802_v60 = vpack.c.bf16 %v382_v56, %v380_v54  ;;  %v803_v61 = vpack.c.bf16 %v455_v57, %v453_v55  ;;  %v386_v0 = vadd.f32 %v385_v58, %v1094_v16  ;;  %v459_v1 = vadd.f32 %v458_v59, %v1096_v17 }
  0xff   : > { %v387_v62 = vpop.f32.mrf.mxu0  ;;  %v460_v63 = vpop.f32.mrf.mxu1 }
 0x100   : > { %579 = vst [vmem:[%s1107_s20 + $0x30] sm:$0xff] %v802_v60  ;;  %580 = vst [vmem:[%s1107_s20 + $0x38] sm:$0xff] %v803_v61  ;;  %v388_v2 = vadd.f32 %v387_v62, %v1098_v18  ;;  %v461_v3 = vadd.f32 %v460_v63, %v1100_v19 }
 0x101   : > { %v389_v4 = vpop.f32.mrf.mxu0  ;;  %v462_v5 = vpop.f32.mrf.mxu1 }
 0x102   : > { %v804_v6 = vpack.c.bf16 %v388_v2, %v386_v0  ;;  %v805_v7 = vpack.c.bf16 %v461_v3, %v459_v1  ;;  %v390_v10 = vadd.f32 %v389_v4, %v1094_v16  ;;  %v463_v11 = vadd.f32 %v462_v5, %v1096_v17 }
 0x103   : > { %v391_v8 = vpop.f32.mrf.mxu0  ;;  %v464_v9 = vpop.f32.mrf.mxu1  ;;  %v622_v40 = vld [vmem:[%s1107_s20 + $0x20] sm:$0xff] (%p1037_p9)  ;;  %v624_v41 = vld [vmem:[%s1107_s20 + $0x28] sm:$0xff] (%p1037_p9) }
 0x104   : > { %581 = vst [vmem:[%s1107_s20 + $0x40] sm:$0xff] %v804_v6  ;;  %582 = vst [vmem:[%s1107_s20 + $0x48] sm:$0xff] %v805_v7  ;;  %v392_v12 = vadd.f32 %v391_v8, %v1098_v18  ;;  %v465_v13 = vadd.f32 %v464_v9, %v1100_v19 }
 0x105   : > { %v395_v14 = vpop.f32.mrf.mxu0  ;;  %v468_v15 = vpop.f32.mrf.mxu1  ;;  %623 = vst [vmem:[%s601_s27 + $0x40] sm:$0xff] (%p1037_p9), %v622_v40  ;;  %625 = vst [vmem:[%s601_s27 + $0x48] sm:$0xff] (%p1037_p9), %v624_v41 }
 0x106   : > { %v806_v20 = vpack.c.bf16 %v392_v12, %v390_v10  ;;  %v807_v21 = vpack.c.bf16 %v465_v13, %v463_v11  ;;  %v396_v24 = vadd.f32 %v395_v14, %v1094_v16  ;;  %v469_v25 = vadd.f32 %v468_v15, %v1096_v17 }
 0x107   : > { %v397_v22 = vpop.f32.mrf.mxu0  ;;  %v470_v23 = vpop.f32.mrf.mxu1  ;;  %v626_v42 = vld [vmem:[%s1107_s20 + $0x30] sm:$0xff] (%p1037_p9)  ;;  %v628_v43 = vld [vmem:[%s1107_s20 + $0x38] sm:$0xff] (%p1037_p9) }
 0x108   : > { %583 = vst [vmem:[%s1107_s20 + $0x50] sm:$0xff] %v806_v20  ;;  %584 = vst [vmem:[%s1107_s20 + $0x58] sm:$0xff] %v807_v21  ;;  %v398_v26 = vadd.f32 %v397_v22, %v1098_v18  ;;  %v471_v27 = vadd.f32 %v470_v23, %v1100_v19 }
 0x109   : > { %v399_v28 = vpop.f32.mrf.mxu0  ;;  %v472_v29 = vpop.f32.mrf.mxu1  ;;  %627 = vst [vmem:[%s601_s27 + $0x60] sm:$0xff] (%p1037_p9), %v626_v42  ;;  %629 = vst [vmem:[%s601_s27 + $0x68] sm:$0xff] (%p1037_p9), %v628_v43 }
 0x10a   : > { %v808_v30 = vpack.c.bf16 %v398_v26, %v396_v24  ;;  %v809_v31 = vpack.c.bf16 %v471_v27, %v469_v25  ;;  %v400_v34 = vadd.f32 %v399_v28, %v1094_v16  ;;  %v473_v35 = vadd.f32 %v472_v29, %v1096_v17  ;;  %v614_v16 = vld [vmem:[%s1107_s20] sm:$0xff] (%p1037_p9)  ;;  %v616_v17 = vld [vmem:[%s1107_s20 + $0x8] sm:$0xff] (%p1037_p9) }
 0x10b   : > { %v401_v32 = vpop.f32.mrf.mxu0  ;;  %v474_v33 = vpop.f32.mrf.mxu1  ;;  %615 = vst [vmem:[%s601_s27] sm:$0xff] (%p1037_p9), %v614_v16  ;;  %617 = vst [vmem:[%s601_s27 + $0x8] sm:$0xff] (%p1037_p9), %v616_v17  ;;  %v630_v44 = vld [vmem:[%s1107_s20 + $0x40] sm:$0xff] (%p1037_p9)  ;;  %v632_v45 = vld [vmem:[%s1107_s20 + $0x48] sm:$0xff] (%p1037_p9) }
 0x10c   : > { %585 = vst [vmem:[%s1107_s20 + $0x60] sm:$0xff] %v808_v30  ;;  %586 = vst [vmem:[%s1107_s20 + $0x68] sm:$0xff] %v809_v31  ;;  %v402_v36 = vadd.f32 %v401_v32, %v1098_v18  ;;  %v475_v37 = vadd.f32 %v474_v33, %v1100_v19  ;;  %595 = sbr.rel (!%p1037_p9) target bundleno = 281 (0x119), region = 40  ;;  %v618_v18 = vld [vmem:[%s1107_s20 + $0x10] sm:$0xff] (%p1037_p9)  ;;  %v620_v19 = vld [vmem:[%s1107_s20 + $0x18] sm:$0xff] (%p1037_p9) }
 0x10d   : > { %619 = vst [vmem:[%s601_s27 + $0x20] sm:$0xff] (%p1037_p9), %v618_v18  ;;  %621 = vst [vmem:[%s601_s27 + $0x28] sm:$0xff] (%p1037_p9), %v620_v19 }
 0x10e   : > { %v810_v38 = vpack.c.bf16 %v402_v36, %v400_v34  ;;  %v811_v39 = vpack.c.bf16 %v475_v37, %v473_v35  ;;  %631 = vst [vmem:[%s601_s27 + $0x80] sm:$0xff] (%p1037_p9), %v630_v44  ;;  %633 = vst [vmem:[%s601_s27 + $0x88] sm:$0xff] (%p1037_p9), %v632_v45 }
 0x10f   : > { %v634_v46 = vld [vmem:[%s1107_s20 + $0x50] sm:$0xff] (%p1037_p9)  ;;  %v636_v47 = vld [vmem:[%s1107_s20 + $0x58] sm:$0xff] (%p1037_p9) }
 0x110   : > { %587 = vst [vmem:[%s1107_s20 + $0x70] sm:$0xff] %v810_v38  ;;  %588 = vst [vmem:[%s1107_s20 + $0x78] sm:$0xff] %v811_v39 }
 0x111   : > { %635 = vst [vmem:[%s601_s27 + $0xa0] sm:$0xff] %v634_v46  ;;  %637 = vst [vmem:[%s601_s27 + $0xa8] sm:$0xff] %v636_v47 }
 0x113   : > { %v638_v48 = vld [vmem:[%s1107_s20 + $0x60] sm:$0xff]  ;;  %v640_v49 = vld [vmem:[%s1107_s20 + $0x68] sm:$0xff] }
 0x114   : > { %639 = vst [vmem:[%s601_s27 + $0xc0] sm:$0xff] %v638_v48  ;;  %641 = vst [vmem:[%s601_s27 + $0xc8] sm:$0xff] %v640_v49 }
 0x117   : > { %v642_v50 = vld [vmem:[%s1107_s20 + $0x70] sm:$0xff]  ;;  %v644_v51 = vld [vmem:[%s1107_s20 + $0x78] sm:$0xff] }
 0x118   : > { %643 = vst [vmem:[%s601_s27 + $0xe0] sm:$0xff] %v642_v50  ;;  %645 = vst [vmem:[%s601_s27 + $0xe8] sm:$0xff] %v644_v51 }
 0x119 PF: > { %s16_s17 = sadd.s32 1, %s960_s17   ;;  %s1201_s12 = smov %s944_s13 }
 0x11a   : > { %p13_p9 = scmp.ge.s32.totalorder %s16_s17, 4   ;;  %s1202_s13 = smov %s948_s14 }
 0x11b   : > { %s1203_s14 = smov %s1035_s24  ;;  %s1204_s15 = smov %s956_s16 }
 0x11c   : > { %s1205_s16 = smov %s1207_s19  ;;  %15 = sbr.rel (!%p13_p9) target bundleno = 4 (0x4), region = 101 }
 0x121   :  { %661 = vsyncpa [#allocation3], 1 }
 0x122   :  { %663 = vsyncpa [#allocation3 + $0x1], 1 }

// kernel: bilstm_forward.5
= control target key start
LH: loop header
LB: loop body
LE: loop exit
PB: predicated region body
PF: predicated region fallthrough
CT: control target
= control target key end

     0   :  { %s503_s1 = inlined_call_operand.vmem [shape: bf16[256,128], index: 1, kind: input, shape index: {}]   ;;  %s504_s0 = inlined_call_operand.vmem [shape: bf16[64,256], index: 0, kind: input, shape index: {}]   ;;  %s505_s2 = inlined_call_operand.vmem [shape: f32[1,128], index: 2, kind: input, shape index: {}]   ;;  %s506_s3 = inlined_call_operand.vmem [shape: f32[64,128], index: 3, kind: output, shape index: {}]  }
   0x1   :  { %v356_v0 = vld [vmem:[%s503_s1 + $0x78] sm:$0xff]   ;;  %v358_v2 = vld [vmem:[%s503_s1 + $0x70] sm:$0xff]   ;;  %v360_v4 = vld [vmem:[%s503_s1 + $0x68] sm:$0xff]  }
   0x2   :  { %v357_v1 = vld [vmem:[%s503_s1 + $0x38] sm:$0xff]   ;;  %300 = vmatprep.subr.bf16.mxu0 %v356_v0  ;;  %340 = vmatprep.subr.bf16.mxu1 %v356_v0  ;;  %v359_v3 = vld [vmem:[%s503_s1 + $0x30] sm:$0xff]   ;;  %v361_v5 = vld [vmem:[%s503_s1 + $0x28] sm:$0xff]  }
   0x3   :  { %301 = vmatpush3.bf16.msra.mxu0 %v357_v1  ;;  %348 = vmatpush3.bf16.msra.mxu1 %v357_v1  ;;  %v362_v6 = vld [vmem:[%s503_s1 + $0x60] sm:$0xff]   ;;  %v364_v8 = vld [vmem:[%s503_s1 + $0x58] sm:$0xff]   ;;  %v366_v10 = vld [vmem:[%s503_s1 + $0x50] sm:$0xff]  }
   0x4   :  { %302 = vmatprep.subr.bf16.mxu0 %v358_v2  ;;  %341 = vmatprep.subr.bf16.mxu1 %v358_v2  ;;  %v363_v7 = vld [vmem:[%s503_s1 + $0x20] sm:$0xff]   ;;  %v365_v9 = vld [vmem:[%s503_s1 + $0x18] sm:$0xff]   ;;  %v367_v13 = vld [vmem:[%s503_s1 + $0x10] sm:$0xff]  }
   0x5   :  { %v374_v11 = vld [vmem:[%s504_s0 + $0x4] ss:$8 sps:$4 sm:$0xff]   ;;  %v372_v18 = vld [vmem:[%s504_s0] ss:$8 sps:$4 sm:$0xff]   ;;  %v378_v20 = vld [vmem:[%s504_s0 + $0x14] ss:$8 sps:$4 sm:$0xff]  }
   0x6   :  { %v377_v12 = vld [vmem:[%s504_s0 + $0x24] ss:$8 sps:$4 sm:$0xff]   ;;  %230 = vmatprep.mubr.bf16.mxu0 %v374_v11  ;;  %v375_v19 = vld [vmem:[%s504_s0 + $0x20] ss:$8 sps:$4 sm:$0xff]   ;;  %v380_v21 = vld [vmem:[%s504_s0 + $0x34] ss:$8 sps:$4 sm:$0xff]  }
   0x7   :  { %303 = vmatpush3.bf16.msra.mxu0 %v359_v3  ;;  %349 = vmatpush3.bf16.msra.mxu1 %v359_v3  ;;  %v368_v14 = vld [vmem:[%s503_s1 + $0x48] sm:$0xff]   ;;  %v370_v16 = vld [vmem:[%s503_s1 + $0x40] sm:$0xff]   ;;  %v382_v22 = vld [vmem:[%s504_s0 + $0x10] ss:$8 sps:$4 sm:$0xff]  }
   0x8   :  { %304 = vmatprep.subr.bf16.mxu0 %v360_v4  ;;  %342 = vmatprep.subr.bf16.mxu1 %v360_v4  ;;  %v369_v15 = vld [vmem:[%s503_s1 + $0x8] sm:$0xff]   ;;  %v371_v17 = vld [vmem:[%s503_s1] sm:$0xff]   ;;  %v383_v23 = vld [vmem:[%s504_s0 + $0x30] ss:$8 sps:$4 sm:$0xff]  }
   0x9   :  { %246 = vmatprep.mubr.bf16.mxu1 %v377_v12  ;;  %v275_v26 = vld [vmem:[%s505_s2] ss:$0 sm:$0xff] }
   0xb   :  { %305 = vmatpush3.bf16.msra.mxu0 %v361_v5  ;;  %350 = vmatpush3.bf16.msra.mxu1 %v361_v5 }
   0xc   :  { %306 = vmatprep.subr.bf16.mxu0 %v362_v6  ;;  %343 = vmatprep.subr.bf16.mxu1 %v362_v6 }
   0xf   :  { %307 = vmatpush3.bf16.msra.mxu0 %v363_v7  ;;  %351 = vmatpush3.bf16.msra.mxu1 %v363_v7 }
  0x10   :  { %308 = vmatprep.subr.bf16.mxu0 %v364_v8  ;;  %344 = vmatprep.subr.bf16.mxu1 %v364_v8 }
  0x13   :  { %309 = vmatpush3.bf16.msra.mxu0 %v365_v9  ;;  %352 = vmatpush3.bf16.msra.mxu1 %v365_v9 }
  0x14   :  { %310 = vmatprep.subr.bf16.mxu0 %v366_v10  ;;  %345 = vmatprep.subr.bf16.mxu1 %v366_v10 }
  0x17   :  { %311 = vmatpush3.bf16.msra.mxu0 %v367_v13  ;;  %353 = vmatpush3.bf16.msra.mxu1 %v367_v13 }
  0x18   :  { %312 = vmatprep.subr.bf16.mxu0 %v368_v14  ;;  %346 = vmatprep.subr.bf16.mxu1 %v368_v14 }
  0x1b   :  { %313 = vmatpush3.bf16.msra.mxu0 %v369_v15  ;;  %354 = vmatpush3.bf16.msra.mxu1 %v369_v15 }
  0x1c   :  { %314 = vmatprep.subr.bf16.mxu0 %v370_v16  ;;  %347 = vmatprep.subr.bf16.mxu1 %v370_v16 }
  0x1f   :  { %315 = vmatpush3.bf16.msra.mxu0 %v371_v17  ;;  %355 = vmatpush3.bf16.msra.mxu1 %v371_v17 }
  0x22   :  { %231 = vmatmul.mubr.bf16.vlgmr.msra.gmra.mxu0 %v372_v18  ;;  %247 = vmatmul.mubr.bf16.vlgmr.msra.gmra.mxu1 %v375_v19 }
  0x23   :  { %238 = vmatprep.mubr.bf16.mxu0 %v378_v20  ;;  %254 = vmatprep.mubr.bf16.mxu1 %v380_v21 }
  0x2a   :  { %239 = vmatmul.mubr.bf16.gmra.mxu0 %v382_v22  ;;  %255 = vmatmul.mubr.bf16.gmra.mxu1 %v383_v23 }
  0xe2   :  { %v316_v24 = vpop.f32.mrf.mxu0  ;;  %v328_v25 = vpop.f32.mrf.mxu1 }
  0xe4   :  { %v317_v27 = vpop.f32.mrf.mxu0  ;;  %v329_v28 = vpop.f32.mrf.mxu1 }
  0xe5   :  { %v318_v29 = vadd.f32 %v317_v27, %v316_v24  ;;  %v330_v30 = vadd.f32 %v329_v28, %v328_v25 }
  0xe6   :  { %v319_v31 = vpop.f32.mrf.mxu0  ;;  %v331_v32 = vpop.f32.mrf.mxu1 }
  0xe7   :  { %v233_v33 = vadd.f32 %v318_v29, %v275_v26  ;;  %v249_v34 = vadd.f32 %v330_v30, %v275_v26 }
  0xe8   :  { %v320_v35 = vpop.f32.mrf.mxu0  ;;  %v332_v36 = vpop.f32.mrf.mxu1 }
  0xe9   :  { %263 = vst [vmem:[%s506_s3] sm:$0xff] %v233_v33  ;;  %267 = vst [vmem:[%s506_s3 + $0x20] sm:$0xff] %v249_v34  ;;  %v321_v37 = vadd.f32 %v320_v35, %v319_v31  ;;  %v333_v38 = vadd.f32 %v332_v36, %v331_v32 }
  0xea   :  { %v322_v39 = vpop.f32.mrf.mxu0  ;;  %v334_v40 = vpop.f32.mrf.mxu1 }
  0xeb   :  { %v236_v41 = vadd.f32 %v321_v37, %v275_v26  ;;  %v252_v42 = vadd.f32 %v333_v38, %v275_v26 }
  0xec   :  { %v323_v43 = vpop.f32.mrf.mxu0  ;;  %v335_v44 = vpop.f32.mrf.mxu1 }
  0xed   :  { %264 = vst [vmem:[%s506_s3 + $0x8] sm:$0xff] %v236_v41  ;;  %268 = vst [vmem:[%s506_s3 + $0x28] sm:$0xff] %v252_v42  ;;  %v324_v45 = vadd.f32 %v323_v43, %v322_v39  ;;  %v336_v46 = vadd.f32 %v335_v44, %v334_v40 }
  0xee   :  { %v325_v47 = vpop.f32.mrf.mxu0  ;;  %v337_v48 = vpop.f32.mrf.mxu1 }
  0xef   :  { %v241_v49 = vadd.f32 %v324_v45, %v275_v26  ;;  %v257_v50 = vadd.f32 %v336_v46, %v275_v26 }
  0xf0   :  { %v326_v51 = vpop.f32.mrf.mxu0  ;;  %v338_v52 = vpop.f32.mrf.mxu1 }
  0xf1   :  { %265 = vst [vmem:[%s506_s3 + $0x10] sm:$0xff] %v241_v49  ;;  %269 = vst [vmem:[%s506_s3 + $0x30] sm:$0xff] %v257_v50  ;;  %v327_v53 = vadd.f32 %v326_v51, %v325_v47  ;;  %v339_v54 = vadd.f32 %v338_v52, %v337_v48 }
  0xf3   :  { %v244_v55 = vadd.f32 %v327_v53, %v275_v26  ;;  %v260_v56 = vadd.f32 %v339_v54, %v275_v26 }
  0xf5   :  { %266 = vst [vmem:[%s506_s3 + $0x18] sm:$0xff] %v244_v55  ;;  %270 = vst [vmem:[%s506_s3 + $0x38] sm:$0xff] %v260_v56 }

// kernel: bilstm_forward.4
= control target key start
LH: loop header
LB: loop body
LE: loop exit
PB: predicated region body
PF: predicated region fallthrough
CT: control target
= control target key end

     0   :  { %s2269_s12 = smov 0   ;;  %s2271_s13 = smov 0   ;;  %s3056_s0 = inlined_call_operand.vmem [shape: s32[8,1], index: 0, kind: input, shape index: {}]   ;;  %s3057_s1 = inlined_call_operand.vmem [shape: bf16[8,8,1024], index: 1, kind: input, shape index: {}]   ;;  %s3058_s2 = inlined_call_operand.vmem [shape: bf16[128,1024], index: 2, kind: input, shape index: {}]   ;;  %s3059_s3 = inlined_call_operand.vmem [shape: bf16[8,8,256], index: 3, kind: output, shape index: {}]  }
   0x1   :  { %s2273_s14 = smov 0   ;;  %s2275_s15 = smov 0  }
   0x2   :  { %s2277_s16 = smov 0  }
   0x3 LB: > { %s32_s17 = sadd.s32 1, %s2241_s15  ;;  %s1905_s18 = sadd.s32 4294967295, %s2245_s16   ;;  %s2245_s16 = sphi %s2277_s16, %s13_s16   ;;  %s2241_s15 = sphi %s2275_s15, %s3065_s15   ;;  %s2237_s14 = sphi %s2273_s14, %s3064_s14   ;;  %s2233_s13 = sphi %s2271_s13, %s3063_s13   ;;  %s2229_s12 = sphi %s2269_s12, %s3062_s12  }
   0x4   : > { %p34_p0 = scmp.ge.s32.totalorder %s32_s17, 2  ;;  %p84_p1 = scmp.ne.s32.totalorder %s2233_s13, %s2229_s12 }
   0x5   : > { %p85_p2 = scmp.eq.s32.totalorder %s2245_s16, 0  ;;  %p152_p4 = scmp.eq.s32.totalorder %s1905_s18, 1 }
   0x6   : > { %s3067_s17 = smov (%p34_p0, %s32_s17), 0  ;;  %s77_s21 = sadd.s32 1, %s2233_s13 }
   0x7   : > { %p2301_p3 = por %p85_p2, %p84_p1  ;;  %s73_s20 = ssub.s32 %s2241_s15, %s3067_s17 }
   0x8   : > { %p75_p5 = scmp.eq.s32.totalorder %s73_s20, 0  ;;  %p2308_p6 = por %p152_p4, %p84_p1 }
   0x9   : > { %p1909_p7 = scmp.ge.s32.totalorder %s2245_s16, 2 }
   0xa   : > { %s2313_s23 = scalar_select %p75_p5, %s2233_s13, %s77_s21  }
   0xb   : > { %181 = sbr.rel (%p1909_p7) target bundleno = 48 (0x30), region = 20 }
  0x10   : > { %184 = sbr.rel (!%p2301_p3) target bundleno = 28 (0x1c), region = 24  ;;  %s186_s24 = sand.u32 (%p2301_p3), 1, %s2233_s13  }
  0x11   : > { %s1992_s25 = sshll.u32 (%p2301_p3), %s2241_s15, 4  ;;  %s1910_s26 = sshll.u32 (%p2301_p3), %s186_s24, 7 }
  0x12   : > { %s2323_s29 = scalar_lea.vmem (%p2301_p3), %s3057_s1, %s1992_s25  ;;  %s188_s30 = scalar_lea.vmem (%p2301_p3), [#allocation4], %s1910_s26 }
  0x13   : > { %v213_v0 = vld [vmem:[%s2323_s29] sm:$0xff] (%p2301_p3)  ;;  %v215_v1 = vld [vmem:[%s2323_s29 + $0x8] sm:$0xff] (%p2301_p3) }
  0x14   : > { %v217_v2 = vld [vmem:[%s2323_s29 + $0x20] sm:$0xff] (%p2301_p3)  ;;  %214 = vst [vmem:[%s188_s30] sm:$0xff] (%p2301_p3), %v213_v0  ;;  %216 = vst [vmem:[%s188_s30 + $0x8] sm:$0xff] (%p2301_p3), %v215_v1  ;;  %v219_v3 = vld [vmem:[%s2323_s29 + $0x28] sm:$0xff] (%p2301_p3) }
  0x15   : > { %218 = vst [vmem:[%s188_s30 + $0x10] sm:$0xff] %v217_v2  ;;  %v221_v4 = vld [vmem:[%s2323_s29 + $0x40] sm:$0xff]  ;;  %v223_v5 = vld [vmem:[%s2323_s29 + $0x48] sm:$0xff]  ;;  %220 = vst [vmem:[%s188_s30 + $0x18] sm:$0xff] %v219_v3 }
  0x16   : > { %222 = vst [vmem:[%s188_s30 + $0x20] sm:$0xff] %v221_v4  ;;  %224 = vst [vmem:[%s188_s30 + $0x28] sm:$0xff] %v223_v5  ;;  %v225_v6 = vld [vmem:[%s2323_s29 + $0x60] sm:$0xff]  ;;  %v227_v7 = vld [vmem:[%s2323_s29 + $0x68] sm:$0xff] }
  0x17   : > { %v229_v8 = vld [vmem:[%s2323_s29 + $0x80] sm:$0xff]  ;;  %226 = vst [vmem:[%s188_s30 + $0x30] sm:$0xff] %v225_v6  ;;  %228 = vst [vmem:[%s188_s30 + $0x38] sm:$0xff] %v227_v7  ;;  %v231_v9 = vld [vmem:[%s2323_s29 + $0x88] sm:$0xff] }
  0x18   : > { %230 = vst [vmem:[%s188_s30 + $0x40] sm:$0xff] %v229_v8  ;;  %v233_v10 = vld [vmem:[%s2323_s29 + $0xa0] sm:$0xff]  ;;  %v235_v11 = vld [vmem:[%s2323_s29 + $0xa8] sm:$0xff]  ;;  %232 = vst [vmem:[%s188_s30 + $0x48] sm:$0xff] %v231_v9 }
  0x19   : > { %234 = vst [vmem:[%s188_s30 + $0x50] sm:$0xff] %v233_v10  ;;  %236 = vst [vmem:[%s188_s30 + $0x58] sm:$0xff] %v235_v11  ;;  %v237_v12 = vld [vmem:[%s2323_s29 + $0xc0] sm:$0xff]  ;;  %v239_v13 = vld [vmem:[%s2323_s29 + $0xc8] sm:$0xff] }
  0x1a   : > { %v241_v14 = vld [vmem:[%s2323_s29 + $0xe0] sm:$0xff]  ;;  %238 = vst [vmem:[%s188_s30 + $0x60] sm:$0xff] %v237_v12  ;;  %240 = vst [vmem:[%s188_s30 + $0x68] sm:$0xff] %v239_v13  ;;  %v243_v15 = vld [vmem:[%s2323_s29 + $0xe8] sm:$0xff] }
  0x1b   : > { %242 = vst [vmem:[%s188_s30 + $0x70] sm:$0xff] %v241_v14  ;;  %244 = vst [vmem:[%s188_s30 + $0x78] sm:$0xff] %v243_v15 }
  0x1c PF: > { %250 = sbr.rel (!%p2301_p3) target bundleno = 48 (0x30), region = 47  ;;  %s252_s4 = sand.u32 (%p2301_p3), 1, %s2233_s13  }
  0x1d   : > { %s1993_s5 = sshll.u32 (%p2301_p3), %s2241_s15, 4  ;;  %s1913_s6 = sshll.u32 (%p2301_p3), %s252_s4, 8 }
  0x1e   : > { %s2348_s9 = scalar_lea.vmem (%p2301_p3), %s3058_s2, %s1993_s5  ;;  %s2353_s10 = scalar_lea.vmem (%p2301_p3), [#allocation5], %s1913_s6 }
  0x1f   : > { %v270_v16 = vld [vmem:[%s2348_s9] sm:$0xff] (%p2301_p3)  ;;  %v272_v17 = vld [vmem:[%s2348_s9 + $0x8] sm:$0xff] (%p2301_p3) }
  0x20   : > { %v274_v18 = vld [vmem:[%s2348_s9 + $0x20] sm:$0xff] (%p2301_p3)  ;;  %271 = vst [vmem:[%s2353_s10] sm:$0xff] (%p2301_p3), %v270_v16  ;;  %273 = vst [vmem:[%s2353_s10 + $0x8] sm:$0xff] (%p2301_p3), %v272_v17  ;;  %v276_v19 = vld [vmem:[%s2348_s9 + $0x28] sm:$0xff] (%p2301_p3) }
  0x21   : > { %275 = vst [vmem:[%s2353_s10 + $0x10] sm:$0xff] %v274_v18  ;;  %v278_v20 = vld [vmem:[%s2348_s9 + $0x40] sm:$0xff]  ;;  %v280_v21 = vld [vmem:[%s2348_s9 + $0x48] sm:$0xff]  ;;  %277 = vst [vmem:[%s2353_s10 + $0x18] sm:$0xff] %v276_v19 }
  0x22   : > { %279 = vst [vmem:[%s2353_s10 + $0x20] sm:$0xff] %v278_v20  ;;  %281 = vst [vmem:[%s2353_s10 + $0x28] sm:$0xff] %v280_v21  ;;  %v282_v22 = vld [vmem:[%s2348_s9 + $0x60] sm:$0xff]  ;;  %v284_v23 = vld [vmem:[%s2348_s9 + $0x68] sm:$0xff] }
  0x23   : > { %v286_v24 = vld [vmem:[%s2348_s9 + $0x80] sm:$0xff]  ;;  %283 = vst [vmem:[%s2353_s10 + $0x30] sm:$0xff] %v282_v22  ;;  %285 = vst [vmem:[%s2353_s10 + $0x38] sm:$0xff] %v284_v23  ;;  %v288_v25 = vld [vmem:[%s2348_s9 + $0x88] sm:$0xff] }
  0x24   : > { %287 = vst [vmem:[%s2353_s10 + $0x40] sm:$0xff] %v286_v24  ;;  %v290_v26 = vld [vmem:[%s2348_s9 + $0xa0] sm:$0xff]  ;;  %v292_v27 = vld [vmem:[%s2348_s9 + $0xa8] sm:$0xff]  ;;  %289 = vst [vmem:[%s2353_s10 + $0x48] sm:$0xff] %v288_v25 }
  0x25   : > { %291 = vst [vmem:[%s2353_s10 + $0x50] sm:$0xff] %v290_v26  ;;  %293 = vst [vmem:[%s2353_s10 + $0x58] sm:$0xff] %v292_v27  ;;  %v294_v28 = vld [vmem:[%s2348_s9 + $0xc0] sm:$0xff]  ;;  %v296_v29 = vld [vmem:[%s2348_s9 + $0xc8] sm:$0xff] }
  0x26   : > { %v298_v30 = vld [vmem:[%s2348_s9 + $0xe0] sm:$0xff]  ;;  %295 = vst [vmem:[%s2353_s10 + $0x60] sm:$0xff] %v294_v28  ;;  %297 = vst [vmem:[%s2353_s10 + $0x68] sm:$0xff] %v296_v29  ;;  %v300_v31 = vld [vmem:[%s2348_s9 + $0xe8] sm:$0xff] }
  0x27   : > { %299 = vst [vmem:[%s2353_s10 + $0x70] sm:$0xff] %v298_v30  ;;  %v302_v32 = vld [vmem:[%s2348_s9 + $0x100] sm:$0xff]  ;;  %v304_v33 = vld [vmem:[%s2348_s9 + $0x108] sm:$0xff]  ;;  %301 = vst [vmem:[%s2353_s10 + $0x78] sm:$0xff] %v300_v31 }
  0x28   : > { %303 = vst [vmem:[%s2353_s10 + $0x80] sm:$0xff] %v302_v32  ;;  %305 = vst [vmem:[%s2353_s10 + $0x88] sm:$0xff] %v304_v33  ;;  %v306_v34 = vld [vmem:[%s2348_s9 + $0x120] sm:$0xff]  ;;  %v308_v35 = vld [vmem:[%s2348_s9 + $0x128] sm:$0xff] }
  0x29   : > { %v310_v36 = vld [vmem:[%s2348_s9 + $0x140] sm:$0xff]  ;;  %307 = vst [vmem:[%s2353_s10 + $0x90] sm:$0xff] %v306_v34  ;;  %309 = vst [vmem:[%s2353_s10 + $0x98] sm:$0xff] %v308_v35  ;;  %v312_v37 = vld [vmem:[%s2348_s9 + $0x148] sm:$0xff] }
  0x2a   : > { %311 = vst [vmem:[%s2353_s10 + $0xa0] sm:$0xff] %v310_v36  ;;  %v314_v38 = vld [vmem:[%s2348_s9 + $0x160] sm:$0xff]  ;;  %v316_v39 = vld [vmem:[%s2348_s9 + $0x168] sm:$0xff]  ;;  %313 = vst [vmem:[%s2353_s10 + $0xa8] sm:$0xff] %v312_v37 }
  0x2b   : > { %315 = vst [vmem:[%s2353_s10 + $0xb0] sm:$0xff] %v314_v38  ;;  %317 = vst [vmem:[%s2353_s10 + $0xb8] sm:$0xff] %v316_v39  ;;  %v318_v40 = vld [vmem:[%s2348_s9 + $0x180] sm:$0xff]  ;;  %v320_v41 = vld [vmem:[%s2348_s9 + $0x188] sm:$0xff] }
  0x2c   : > { %v322_v42 = vld [vmem:[%s2348_s9 + $0x1a0] sm:$0xff]  ;;  %319 = vst [vmem:[%s2353_s10 + $0xc0] sm:$0xff] %v318_v40  ;;  %321 = vst [vmem:[%s2353_s10 + $0xc8] sm:$0xff] %v320_v41  ;;  %v324_v43 = vld [vmem:[%s2348_s9 + $0x1a8] sm:$0xff] }
  0x2d   : > { %323 = vst [vmem:[%s2353_s10 + $0xd0] sm:$0xff] %v322_v42  ;;  %v326_v44 = vld [vmem:[%s2348_s9 + $0x1c0] sm:$0xff]  ;;  %v328_v45 = vld [vmem:[%s2348_s9 + $0x1c8] sm:$0xff]  ;;  %325 = vst [vmem:[%s2353_s10 + $0xd8] sm:$0xff] %v324_v43 }
  0x2e   : > { %327 = vst [vmem:[%s2353_s10 + $0xe0] sm:$0xff] %v326_v44  ;;  %329 = vst [vmem:[%s2353_s10 + $0xe8] sm:$0xff] %v328_v45  ;;  %v330_v46 = vld [vmem:[%s2348_s9 + $0x1e0] sm:$0xff]  ;;  %v332_v47 = vld [vmem:[%s2348_s9 + $0x1e8] sm:$0xff] }
  0x2f   : > { %331 = vst [vmem:[%s2353_s10 + $0xf0] sm:$0xff] %v330_v46  ;;  %333 = vst [vmem:[%s2353_s10 + $0xf8] sm:$0xff] %v332_v47 }
  0x30 PF: > { %p1916_p8 = scmp.ge.s32.totalorder %s2245_s16, 1  ;;  %p338_p9 = scmp.lt.s32.totalorder %s2245_s16, 3 }
  0x32   : > { %p339_p10 = pnand %p1916_p8, %p338_p9 }
  0x33   : > { %s2419_s11 = sand.u32 (!%p339_p10), 1, %s2229_s12   ;;  %s444_s20 = smul.u32 (!%p339_p10), 7, %s2237_s14 }
  0x34   : > { %342 = sbr.rel (%p339_p10) target bundleno = 2024 (0x7e8), region = 70  ;;  %s1918_s21 = sshll.u32 (!%p339_p10), %s2419_s11, 8 }
  0x35   : > { %s735_s24 = smul.u32 (!%p339_p10), 5, %s2237_s14  ;;  %s2433_s25 = ssub.s32 (!%p339_p10), 4, %s2237_s14 }
  0x36   : > { %s2436_s12 = scalar_lea.vmem (!%p339_p10), [#allocation5], %s1918_s21  ;;  %s1388_s27 = smul.u32 (!%p339_p10), 4294967291, %s2237_s14 }
  0x37   : > { %s736_s26 = sadd.s32 (!%p339_p10), 1, %s735_s24  ;;  %s1917_s29 = sshll.u32 (!%p339_p10), %s2419_s11, 7 }
  0x38   : > { %s1389_s28 = sadd.s32 (!%p339_p10), 6, %s1388_s27  ;;  %s1994_s30 = smul.u32 (!%p339_p10), 112, %s2237_s14 }
  0x39   : > { %v2424_v48 = vld [vmem:[%s3056_s0] sm:$0xff]  ;;  %v2247_v49 = vmov 0   ;;  %v721_v50 = vstv %s444_s20  ;;  %v1243_v52 = vstv %s2433_s25  ;;  %v852_v55 = vstv %s736_s26  ;;  %s2614_s4 = scalar_lea.vmem [#allocation4], %s1917_s29  ;;  %s1919_s6 = sshll.u32 %s2419_s11, 5 }
  0x3a   : > { %649 = vmatprep.mubr.bf16.mxu0 %v2247_v49  ;;  %690 = vmatprep.mubr.bf16.mxu1 %v2247_v49  ;;  %v2439_v51 = vld [vmem:[%s2436_s12 + $0xe4] ss:$16 sps:$4 sm:$0xff]   ;;  %vm722_vm0 = vcmp.lt.s32.totalorder %v721_v50, %v2424_v48  ;;  %v2444_v53 = vld [vmem:[%s2436_s12 + $0xe0] ss:$16 sps:$4 sm:$0xff]   ;;  %v2449_v56 = vld [vmem:[%s2436_s12 + $0xec] ss:$16 sps:$4 sm:$0xff]   ;;  %vm853_vm1 = vcmp.lt.s32.totalorder %v852_v55, %v2424_v48  ;;  %vm1244_vm2 = vcmp.lt.s32.totalorder %v1243_v52, %v2424_v48  ;;  %v1505_v7 = vstv %s1389_s28  ;;  %s449_s5 = scalar_lea.vmem %s2614_s4, %s1994_s30 [#allocation4] }
  0x3b   : > { %2045 = vset.pattern.permute.xlu0 %v2247_v49  ;;  %2046 = vset.pattern.permute.xlu1 %v2247_v49  ;;  %v723_v54 = vsel %vm722_vm0, 1, %v2247_v49  ;;  %v2452_v57 = vld [vmem:[%s2436_s12 + $0xe8] ss:$16 sps:$4 sm:$0xff]   ;;  %v2457_v58 = vld [vmem:[%s2436_s12 + $0xc4] ss:$16 sps:$4 sm:$0xff]   ;;  %v854_v60 = vsel %vm853_vm1, 1, %v2247_v49  ;;  %vm1506_vm3 = vcmp.lt.s32.totalorder %v1505_v7, %v2424_v48 }
  0x3c   : > { %617 = vmatprep.subr.bf16.mxu0 %v2439_v51  ;;  %725 = vperm.xlu0 %2045, %v723_v54   ;;  %v2460_v59 = vld [vmem:[%s2436_s12 + $0xc0] ss:$16 sps:$4 sm:$0xff]   ;;  %v2465_v61 = vld [vmem:[%s2436_s12 + $0xcc] ss:$16 sps:$4 sm:$0xff]   ;;  %v2471_v62 = vld [vmem:[%s2436_s12 + $0xc8] ss:$16 sps:$4 sm:$0xff]  }
  0x3d   : > { %618 = vmatpush1.bf16.msra.mxu0 %v2444_v53  ;;  %658 = vmatprep.subr.bf16.mxu1 %v2449_v56  ;;  %v2475_v63 = vld [vmem:[%s2436_s12 + $0xa4] ss:$16 sps:$4 sm:$0xff]   ;;  %v2479_v0 = vld [vmem:[%s2436_s12 + $0xa0] ss:$16 sps:$4 sm:$0xff]   ;;  %v2482_v1 = vld [vmem:[%s2436_s12 + $0xac] ss:$16 sps:$4 sm:$0xff]  }
  0x3e   : > { %659 = vmatpush1.bf16.msra.mxu1 %v2452_v57  ;;  %619 = vmatprep.subr.bf16.mxu0 %v2457_v58  ;;  %v1245_v2 = vsel %vm1244_vm2, 1, %v2247_v49  ;;  %v2487_v3 = vld [vmem:[%s2436_s12 + $0x84] ss:$16 sps:$4 sm:$0xff]   ;;  %v2492_v4 = vld [vmem:[%s2436_s12 + $0xa8] ss:$16 sps:$4 sm:$0xff]   ;;  %v1507_v10 = vsel %vm1506_vm3, 1, %v2247_v49 }
  0x3f   : > { %660 = vmatprep.subr.bf16.mxu1 %v2465_v61  ;;  %v2496_v5 = vld [vmem:[%s2436_s12 + $0x8c] ss:$16 sps:$4 sm:$0xff]   ;;  %v2500_v6 = vld [vmem:[%s2436_s12 + $0x80] ss:$16 sps:$4 sm:$0xff]   ;;  %v2504_v8 = vld [vmem:[%s2436_s12 + $0x64] ss:$16 sps:$4 sm:$0xff]  }
  0x40   : > { %856 = vperm.xlu0 %2045, %v854_v60   ;;  %v2509_v9 = vld [vmem:[%s2436_s12 + $0x88] ss:$16 sps:$4 sm:$0xff]   ;;  %v2514_v11 = vld [vmem:[%s2436_s12 + $0x6c] ss:$16 sps:$4 sm:$0xff]   ;;  %v2518_v12 = vld [vmem:[%s2436_s12 + $0x60] ss:$16 sps:$4 sm:$0xff]  }
  0x41   : > { %620 = vmatpush1.bf16.msra.mxu0 %v2460_v59  ;;  %v2522_v13 = vld [vmem:[%s2436_s12 + $0x44] ss:$16 sps:$4 sm:$0xff]   ;;  %v2526_v14 = vld [vmem:[%s2436_s12 + $0x68] ss:$16 sps:$4 sm:$0xff]   ;;  %v2530_v15 = vld [vmem:[%s2436_s12 + $0x4c] ss:$16 sps:$4 sm:$0xff]  }
  0x42   : > { %621 = vmatprep.subr.bf16.mxu0 %v2475_v63  ;;  %661 = vmatpush1.bf16.msra.mxu1 %v2471_v62  ;;  %v2534_v16 = vld [vmem:[%s2436_s12 + $0x40] ss:$16 sps:$4 sm:$0xff]   ;;  %v2538_v17 = vld [vmem:[%s2436_s12 + $0x24] ss:$16 sps:$4 sm:$0xff]   ;;  %v2542_v18 = vld [vmem:[%s2436_s12 + $0x48] ss:$16 sps:$4 sm:$0xff]  }
  0x43   : > { %662 = vmatprep.subr.bf16.mxu1 %v2482_v1  ;;  %v2546_v19 = vld [vmem:[%s2436_s12 + $0x2c] ss:$16 sps:$4 sm:$0xff]   ;;  %v2550_v20 = vld [vmem:[%s2436_s12 + $0x20] ss:$16 sps:$4 sm:$0xff]   ;;  %v2554_v21 = vld [vmem:[%s2436_s12 + $0x4] ss:$16 sps:$4 sm:$0xff]  }
  0x44   : > { %1247 = vperm.xlu0 %2045, %v1245_v2   ;;  %v2558_v22 = vld [vmem:[%s2436_s12 + $0x28] ss:$16 sps:$4 sm:$0xff]   ;;  %v2562_v23 = vld [vmem:[%s2436_s12 + $0xc] ss:$16 sps:$4 sm:$0xff]   ;;  %v2566_v24 = vld [vmem:[%s2436_s12] ss:$16 sps:$4 sm:$0xff]  }
  0x45   : > { %622 = vmatpush1.bf16.msra.mxu0 %v2479_v0  ;;  %v2571_v25 = vld [vmem:[%s2436_s12 + $0x8] ss:$16 sps:$4 sm:$0xff]   ;;  %v2248_v26 = vmov 0.0|0.0   ;;  %v450_v27 = vld [vmem:[%s449_s5] sm:$0xff]  ;;  %s1995_s7 = smul.u32 28, %s2237_s14  ;;  %s2632_s8 = scalar_lea.vmem [#allocation6], %s1919_s6 }
  0x46   : > { %623 = vmatprep.subr.bf16.mxu0 %v2487_v3  ;;  %663 = vmatpush1.bf16.msra.mxu1 %v2492_v4  ;;  %v452_v28 = vunpack.c.l.bf16 %v450_v27  ;;  %v451_v29 = vld [vmem:[%s449_s5 + $0x8] sm:$0xff]  ;;  %v453_v30 = vunpack.c.h.bf16 %v450_v27  ;;  %s866_s10 = smul.u32 3, %s2237_s14  ;;  %s997_s11 = sadd.s32 3, %s2237_s14 }
  0x47   : > { %664 = vmatprep.subr.bf16.mxu1 %v2496_v5  ;;  %v454_v33 = vunpack.c.l.bf16 %v451_v29  ;;  %v455_v45 = vunpack.c.h.bf16 %v451_v29  ;;  %s733_s9 = scalar_lea.vmem %s2632_s8, %s1995_s7 [#allocation6]  ;;  %s1257_s18 = smul.u32 4294967293, %s2237_s14 }
  0x48   : > { %1509 = vperm.xlu0 %2045, %v1507_v10   ;;  %s867_s19 = sadd.s32 2, %s866_s10  ;;  %s1519_s20 = smul.u32 4294967289, %s2237_s14 }
  0x49   : > { %624 = vmatpush1.bf16.msra.mxu0 %v2500_v6  ;;  %s1258_s21 = sadd.s32 5, %s1257_s18  ;;  %s1955_s26 = smul.u32 80, %s2237_s14 }
  0x4a   : > { %625 = vmatprep.subr.bf16.mxu0 %v2504_v8  ;;  %665 = vmatpush1.bf16.msra.mxu1 %v2509_v9  ;;  %s1520_s24 = sadd.s32 7, %s1519_s20  ;;  %s1958_s28 = smul.u32 20, %s2237_s14 }
  0x4b   : > { %666 = vmatprep.subr.bf16.mxu1 %v2514_v11  ;;  %s1787_s27 = scalar_lea.vmem %s2614_s4, %s1955_s26 [#allocation4]  ;;  %s1960_s30 = smul.u32 48, %s2237_s14 }
  0x4c   : > { %s1791_s29 = scalar_lea.vmem %s2632_s8, %s1958_s28 [#allocation6]  ;;  %s1963_s6 = smul.u32 12, %s2237_s14 }
  0x4d   : > { %626 = vmatpush1.bf16.msra.mxu0 %v2518_v12  ;;  %s1795_s5 = scalar_lea.vmem %s2614_s4, %s1960_s30 [#allocation4]  ;;  %s1978_s28 = smul.u32 4294967216, %s2237_s14 }
  0x4e   : > { %627 = vmatprep.subr.bf16.mxu0 %v2522_v13  ;;  %667 = vmatpush1.bf16.msra.mxu1 %v2526_v14  ;;  %s1799_s7 = scalar_lea.vmem %s2632_s8, %s1963_s6 [#allocation6]  ;;  %s1981_s30 = smul.u32 4294967276, %s2237_s14 }
  0x4f   : > { %668 = vmatprep.subr.bf16.mxu1 %v2530_v15  ;;  %s1983_s6 = smul.u32 4294967184, %s2237_s14 }
  0x51   : > { %628 = vmatpush1.bf16.msra.mxu0 %v2534_v16 }
  0x52   : > { %629 = vmatprep.subr.bf16.mxu0 %v2538_v17  ;;  %669 = vmatpush1.bf16.msra.mxu1 %v2542_v18 }
  0x53   : > { %670 = vmatprep.subr.bf16.mxu1 %v2546_v19 }
  0x55   : > { %630 = vmatpush1.bf16.msra.mxu0 %v2550_v20 }
  0x56   : > { %631 = vmatprep.subr.bf16.mxu0 %v2554_v21  ;;  %671 = vmatpush1.bf16.msra.mxu1 %v2558_v22 }
  0x57   : > { %672 = vmatprep.subr.bf16.mxu1 %v2562_v23 }
  0x59   : > { %632 = vmatpush1.bf16.msra.mxu0 %v2566_v24 }
  0x5a   : > { %748 = vmatprep.subr.bf16.mxu0 %v2439_v51  ;;  %673 = vmatpush1.bf16.msra.mxu1 %v2571_v25 }
  0x5b   : > { %789 = vmatprep.subr.bf16.mxu1 %v2449_v56 }
  0x5c   : > { %650 = vmatmul.mubr.bf16.vlgmr.msra.gmra.mxu0 %v2248_v26 }
  0x5d   : > { %749 = vmatpush1.bf16.msra.mxu0 %v2444_v53  ;;  %780 = vmatprep.mubr.bf16.mxu0 %v2247_v49 }
  0x5e   : > { %691 = vmatmul.mubr.bf16.vlgmr.msra.gmra.mxu1 %v2248_v26  ;;  %750 = vmatprep.subr.bf16.mxu0 %v2457_v58 }
  0x5f   : > { %790 = vmatpush1.bf16.msra.mxu1 %v2452_v57  ;;  %821 = vmatprep.mubr.bf16.mxu1 %v2247_v49 }
  0x60   : > { %791 = vmatprep.subr.bf16.mxu1 %v2465_v61 }
  0x61   : > { %751 = vmatpush1.bf16.msra.mxu0 %v2460_v59 }
  0x62   : > { %752 = vmatprep.subr.bf16.mxu0 %v2475_v63 }
  0x63   : > { %792 = vmatpush1.bf16.msra.mxu1 %v2471_v62 }
  0x64   : > { %793 = vmatprep.subr.bf16.mxu1 %v2482_v1 }
  0x65   : > { %753 = vmatpush1.bf16.msra.mxu0 %v2479_v0 }
  0x66   : > { %754 = vmatprep.subr.bf16.mxu0 %v2487_v3 }
  0x67   : > { %794 = vmatpush1.bf16.msra.mxu1 %v2492_v4 }
  0x68   : > { %795 = vmatprep.subr.bf16.mxu1 %v2496_v5 }
  0x69   : > { %755 = vmatpush1.bf16.msra.mxu0 %v2500_v6 }
  0x6a   : > { %756 = vmatprep.subr.bf16.mxu0 %v2504_v8 }
  0x6b   : > { %796 = vmatpush1.bf16.msra.mxu1 %v2509_v9 }
  0x6c   : > { %797 = vmatprep.subr.bf16.mxu1 %v2514_v11 }
  0x6d   : > { %757 = vmatpush1.bf16.msra.mxu0 %v2518_v12 }
  0x6e   : > { %758 = vmatprep.subr.bf16.mxu0 %v2522_v13 }
  0x6f   : > { %798 = vmatpush1.bf16.msra.mxu1 %v2526_v14 }
  0x70   : > { %799 = vmatprep.subr.bf16.mxu1 %v2530_v15 }
  0x71   : > { %759 = vmatpush1.bf16.msra.mxu0 %v2534_v16 }
  0x72   : > { %760 = vmatprep.subr.bf16.mxu0 %v2538_v17 }
  0x73   : > { %800 = vmatpush1.bf16.msra.mxu1 %v2542_v18 }
  0x74   : > { %801 = vmatprep.subr.bf16.mxu1 %v2546_v19 }
  0x75   : > { %761 = vmatpush1.bf16.msra.mxu0 %v2550_v20 }
  0x76   : > { %762 = vmatprep.subr.bf16.mxu0 %v2554_v21 }
  0x77   : > { %802 = vmatpush1.bf16.msra.mxu1 %v2558_v22 }
  0x78   : > { %803 = vmatprep.subr.bf16.mxu1 %v2562_v23 }
  0x79   : > { %763 = vmatpush1.bf16.msra.mxu0 %v2566_v24 }
  0x7a   : > { %879 = vmatprep.subr.bf16.mxu0 %v2439_v51 }
  0x7b   : > { %804 = vmatpush1.bf16.msra.mxu1 %v2571_v25 }
  0x7c   : > { %920 = vmatprep.subr.bf16.mxu1 %v2449_v56 }
 0x11c   : > { %v651_v31 = vpop.f32.mrf.mxu0 }
 0x11d   : > { %v699_v32 = vadd.f32 %v651_v31, %v452_v28 }
 0x11e   : > { %v653_v34 = vpop.f32.mrf.mxu0  ;;  %v692_v35 = vpop.f32.mrf.mxu1 }
 0x11f   : > { %v703_v36 = vmul.f32 0.5, %v699_v32  ;;  %v700_v37 = vadd.f32 %v653_v34, %v453_v30  ;;  %v701_v41 = vadd.f32 %v692_v35, %v454_v33  ;;  %v2621_v30 = vpop.permute.xlu0 %725 }
 0x120   : > { %v655_v38 = vpop.f32.mrf.mxu0  ;;  %v694_v39 = vpop.f32.mrf.mxu1  ;;  %vm727_vm4 = vcmp.eq.s32.totalorder %v2621_v30, 1 }
 0x121   : > { %2095 = vtanh.f32 %v703_v36  ;;  %v707_v40 = vmul.f32 0.5, %v700_v37  ;;  %v702_v46 = vadd.f32 %v694_v39, %v455_v45  ;;  %vm1997_vm5 = vmpackc.low %vm727_vm4, %vm727_vm4  ;;  %v1113_v37 = vstv %s997_s11  ;;  %v1956_v45 = vld [vmem:[%s1787_s27 + $0x10] sm:$0xff]  ;;  %s1968_s11 = sshll.u32 %s2237_s14, 2 }
 0x122   : > { %v656_v42 = vpop.f32.mrf.mxu0  ;;  %v696_v43 = vpop.f32.mrf.mxu1  ;;  %v983_v38 = vstv %s867_s19  ;;  %vm1114_vm7 = vcmp.lt.s32.totalorder %v1113_v37, %v2424_v48  ;;  %s1805_s18 = scalar_lea.vmem %s2632_s8, %s1968_s11 [#allocation6]  ;;  %s1996_s19 = sshll.u32 %s2433_s25, 4 }
 0x123   : > { %2097 = vtanh.f32 %v707_v40  ;;  %v712_v47 = vmul.f32 0.5, %v702_v46  ;;  %vm984_vm6 = vcmp.lt.s32.totalorder %v983_v38, %v2424_v48  ;;  %v1374_v40 = vstv %s1258_s21  ;;  %s1131_s20 = scalar_lea.vmem %s2614_s4, %s1996_s19 [#allocation4]  ;;  %s1972_s21 = sshll.u32 %s2433_s25, 2 }
 0x124   : > { %v697_v44 = vpop.f32.mrf.mxu1  ;;  %2099 = vtanh.f32 %v701_v41  ;;  %v985_v39 = vsel %vm984_vm6, 1, %v2247_v49  ;;  %v1115_v41 = vsel %vm1114_vm7, 1, %v2247_v49  ;;  %vm1375_vm8 = vcmp.lt.s32.totalorder %v1374_v40, %v2424_v48  ;;  %s1973_s25 = smul.u32 4294967248, %s2237_s14  ;;  %s1669_s19 = scalar_lea.vmem (%p2308_p6), %s3059_s3, %s1968_s11 }
 0x125   : > { %2101 = vtanh.f32 %v712_v47  ;;  %987 = vperm.xlu1 %2046, %v985_v39   ;;  %v1636_v42 = vstv %s1520_s24  ;;  %v1376_v43 = vsel %vm1375_vm8, 1, %v2247_v49  ;;  %v743_v46 = vunpack.c.l.bf16 %v1956_v45  ;;  %s1255_s24 = scalar_lea.vmem %s2632_s8, %s1972_s21 [#allocation6] }
 0x126   : > { %vm1637_vm9 = vcmp.lt.s32.totalorder %v1636_v42, %v2424_v48  ;;  %v744_v47 = vunpack.c.h.bf16 %v1956_v45  ;;  %s1813_s26 = scalar_lea.vmem %s2614_s4, %s1973_s25 [#allocation4] }
 0x127   : > { %v1638_v44 = vsel %vm1637_vm9, 1, %v2247_v49 }
 0x129   : > { %1117 = vperm.xlu1 %2046, %v1115_v41  }
 0x12d   : > { %1378 = vperm.xlu1 %2046, %v1376_v43  }
 0x12e   : > { %v2096_v50 = vpop.eup %2095 }
 0x12f   : > { %v705_v52 = vadd.f32 1.0, %v2096_v50 }
 0x130   : > { %v2098_v54 = vpop.eup %2097 }
 0x131   : > { %v706_v55 = vmul.f32 0.5, %v705_v52  ;;  %v709_v60 = vadd.f32 1.0, %v2098_v54  ;;  %v2100_v2 = vpop.eup %2099  ;;  %1640 = vperm.xlu1 %2046, %v1638_v44   ;;  %v1957_v52 = vld [vmem:[%s1787_s27 + $0x18] sm:$0xff] }
 0x132   : > { %v2102_v28 = vpop.eup %2101 }
 0x133   : > { %v710_v7 = vmul.f32 0.5, %v709_v60  ;;  %v717_v26 = vmul.f32 %v2100_v2, %v706_v55  ;;  %v714_v29 = vadd.f32 1.0, %v2102_v28 }
 0x135   : > { %v716_v10 = vmul.f32 0.0, %v710_v7  ;;  %v715_v31 = vmul.f32 0.5, %v714_v29 }
 0x137   : > { %v2617_v27 = vadd.f32 %v717_v26, %v716_v10  ;;  %v745_v10 = vunpack.c.l.bf16 %v1957_v52 }
 0x139   : > { %2103 = vtanh.f32 %v2617_v27  ;;  %v729_v45 = vsel %vm727_vm4, %v2617_v27, 0.0 }
 0x146   : > { %v2104_v32 = vpop.eup %2103 }
 0x147   : > { %v720_v33 = vmul.f32 %v2104_v32, %v715_v31 }
 0x149   : > { %v2630_v34 = vsel %vm727_vm4, %v720_v33, 0.0  ;;  %v1998_v35 = vpack.c.bf16 %v720_v33, %v720_v33 }
 0x14a   : > { %v731_v36 = vpack.c.bf16 %v2630_v34, %v2630_v34 }
 0x14b   : > { %1999 = vmatmul.mubr.msk.bf16.vlgmr.msra.gmra.mxu0 %vm1997_vm5, %v1998_v35  ;;  %2002 = vmatmul.mubr.msk.bf16.vlgmr.msra.gmra.mxu1 %vm1997_vm5, %v1998_v35  ;;  %v746_v35 = vunpack.c.h.bf16 %v1957_v52 }
 0x14c   : > { %734 = vst [vmem:[%s733_s9] sm:$0xf] %v731_v36  ;;  %880 = vmatpush1.bf16.msra.mxu0 %v2444_v53  ;;  %921 = vmatpush1.bf16.msra.mxu1 %v2452_v57  ;;  %s1965_s9 = sshll.u32 %s2237_s14, 4 }
 0x14d   : > { %881 = vmatprep.subr.bf16.mxu0 %v2457_v58  ;;  %922 = vmatprep.subr.bf16.mxu1 %v2465_v61  ;;  %s1802_s10 = scalar_lea.vmem %s2614_s4, %s1965_s9 [#allocation4] }
 0x14e   : > { %911 = vmatprep.mubr.bf16.mxu0 %v2247_v49  ;;  %952 = vmatprep.mubr.bf16.mxu1 %v2247_v49 }
 0x150   : > { %882 = vmatpush1.bf16.msra.mxu0 %v2460_v59  ;;  %923 = vmatpush1.bf16.msra.mxu1 %v2471_v62 }
 0x151   : > { %883 = vmatprep.subr.bf16.mxu0 %v2475_v63  ;;  %924 = vmatprep.subr.bf16.mxu1 %v2482_v1 }
 0x154   : > { %884 = vmatpush1.bf16.msra.mxu0 %v2479_v0  ;;  %925 = vmatpush1.bf16.msra.mxu1 %v2492_v4 }
 0x155   : > { %885 = vmatprep.subr.bf16.mxu0 %v2487_v3  ;;  %926 = vmatprep.subr.bf16.mxu1 %v2496_v5 }
 0x158   : > { %886 = vmatpush1.bf16.msra.mxu0 %v2500_v6  ;;  %927 = vmatpush1.bf16.msra.mxu1 %v2509_v9 }
 0x159   : > { %887 = vmatprep.subr.bf16.mxu0 %v2504_v8  ;;  %928 = vmatprep.subr.bf16.mxu1 %v2514_v11 }
 0x15c   : > { %888 = vmatpush1.bf16.msra.mxu0 %v2518_v12  ;;  %929 = vmatpush1.bf16.msra.mxu1 %v2526_v14 }
 0x15d   : > { %889 = vmatprep.subr.bf16.mxu0 %v2522_v13  ;;  %930 = vmatprep.subr.bf16.mxu1 %v2530_v15 }
 0x160   : > { %890 = vmatpush1.bf16.msra.mxu0 %v2534_v16  ;;  %931 = vmatpush1.bf16.msra.mxu1 %v2542_v18 }
 0x161   : > { %891 = vmatprep.subr.bf16.mxu0 %v2538_v17  ;;  %932 = vmatprep.subr.bf16.mxu1 %v2546_v19 }
 0x164   : > { %892 = vmatpush1.bf16.msra.mxu0 %v2550_v20  ;;  %933 = vmatpush1.bf16.msra.mxu1 %v2558_v22 }
 0x165   : > { %893 = vmatprep.subr.bf16.mxu0 %v2554_v21  ;;  %934 = vmatprep.subr.bf16.mxu1 %v2562_v23 }
 0x168   : > { %894 = vmatpush1.bf16.msra.mxu0 %v2566_v24  ;;  %935 = vmatpush1.bf16.msra.mxu1 %v2571_v25 }
 0x169   : > { %1009 = vmatprep.subr.bf16.mxu0 %v2439_v51  ;;  %1050 = vmatprep.subr.bf16.mxu1 %v2449_v56 }
 0x20b   : > { %v782_v50 = vpop.f32.mrf.mxu0  ;;  %v823_v54 = vpop.f32.mrf.mxu1 }
 0x20c   : > { %v830_v55 = vadd.f32 %v782_v50, %v743_v46  ;;  %v832_v33 = vadd.f32 %v823_v54, %v745_v10  ;;  %v857_v50 = vpop.permute.xlu0 %856 }
 0x20d   : > { %v784_v60 = vpop.f32.mrf.mxu0  ;;  %v825_v2 = vpop.f32.mrf.mxu1  ;;  %vm858_vm10 = vcmp.eq.s32.totalorder %v857_v50, 1 }
 0x20e   : > { %v834_v7 = vmul.f32 0.5, %v830_v55  ;;  %v831_v26 = vadd.f32 %v784_v60, %v744_v47  ;;  %v833_v36 = vadd.f32 %v825_v2, %v746_v35 }
 0x20f   : > { %v786_v28 = vpop.f32.mrf.mxu0  ;;  %v827_v48 = vpop.f32.mrf.mxu1 }
 0x210   : > { %2105 = vtanh.f32 %v834_v7  ;;  %v838_v29 = vmul.f32 0.5, %v831_v26  ;;  %v843_v37 = vmul.f32 0.5, %v833_v36 }
 0x211   : > { %v787_v31 = vpop.f32.mrf.mxu0  ;;  %v828_v32 = vpop.f32.mrf.mxu1 }
 0x212   : > { %2107 = vtanh.f32 %v838_v29  ;;  %v1962_v32 = vld [vmem:[%s1795_s5 + $0x28] sm:$0xff] }
 0x213   : > { %2109 = vtanh.f32 %v832_v33 }
 0x214   : > { %2111 = vtanh.f32 %v843_v37 }
 0x21d   : > { %v2106_v38 = vpop.eup %2105 }
 0x21e   : > { %v836_v39 = vadd.f32 1.0, %v2106_v38 }
 0x21f   : > { %v2108_v40 = vpop.eup %2107 }
 0x220   : > { %v837_v41 = vmul.f32 0.5, %v836_v39  ;;  %v840_v42 = vadd.f32 1.0, %v2108_v40  ;;  %v2110_v44 = vpop.eup %2109  ;;  %v876_v39 = vunpack.c.l.bf16 %v1962_v32 }
 0x221   : > { %v2112_v55 = vpop.eup %2111 }
 0x222   : > { %v841_v43 = vmul.f32 0.5, %v840_v42  ;;  %v848_v47 = vmul.f32 %v2110_v44, %v837_v41  ;;  %v845_v60 = vadd.f32 1.0, %v2112_v55 }
 0x224   : > { %v847_v46 = vmul.f32 %v841_v43, %v729_v45  ;;  %v846_v2 = vmul.f32 0.5, %v845_v60 }
 0x226   : > { %v849_v52 = vadd.f32 %v848_v47, %v847_v46  ;;  %v877_v47 = vunpack.c.h.bf16 %v1962_v32 }
 0x228   : > { %2113 = vtanh.f32 %v849_v52  ;;  %v2688_v54 = vsel %vm858_vm10, %v849_v52, %v729_v45 }
 0x235   : > { %v2114_v7 = vpop.eup %2113 }
 0x236   : > { %v851_v10 = vmul.f32 %v2114_v7, %v846_v2 }
 0x238   : > { %v861_v26 = vsel %vm858_vm10, %v851_v10, 0.0  ;;  %v2693_v30 = vsel %vm858_vm10, %v851_v10, %v2630_v34  ;;  %v1961_v34 = vld [vmem:[%s1795_s5 + $0x20] sm:$0xff]  ;;  %s1825_s5 = scalar_lea.vmem %s2632_s8, %s1981_s30 [#allocation6] }
 0x239   : > { %v862_v27 = vpack.c.bf16 %v861_v26, %v861_v26  ;;  %v878_v28 = vpack.c.bf16 %v2693_v30, %v2693_v30  ;;  %v874_v48 = vunpack.c.l.bf16 %v1961_v34  ;;  %v875_v29 = vunpack.c.h.bf16 %v1961_v34 }
 0x23b   : > { %1959 = vst [vmem:[%s1791_s29 + $0x4] sm:$0xf] %v862_v27  ;;  %912 = vmatmul.mubr.bf16.vlgmr.msra.gmra.mxu0 %v878_v28  ;;  %953 = vmatmul.mubr.bf16.vlgmr.msra.gmra.mxu1 %v878_v28  ;;  %v988_v27 = vpop.permute.xlu1 %987  ;;  %s1821_s29 = scalar_lea.vmem %s2614_s4, %s1978_s28 [#allocation4] }
 0x23c   : > { %1010 = vmatpush1.bf16.msra.mxu0 %v2444_v53  ;;  %1051 = vmatpush1.bf16.msra.mxu1 %v2452_v57  ;;  %vm989_vm11 = vcmp.eq.s32.totalorder %v988_v27, 1 }
 0x23d   : > { %1011 = vmatprep.subr.bf16.mxu0 %v2457_v58  ;;  %1052 = vmatprep.subr.bf16.mxu1 %v2465_v61 }
 0x23e   : > { %1041 = vmatprep.mubr.bf16.mxu0 %v2247_v49  ;;  %1082 = vmatprep.mubr.bf16.mxu1 %v2247_v49 }
 0x240   : > { %1012 = vmatpush1.bf16.msra.mxu0 %v2460_v59  ;;  %1053 = vmatpush1.bf16.msra.mxu1 %v2471_v62 }
 0x241   : > { %1013 = vmatprep.subr.bf16.mxu0 %v2475_v63  ;;  %1054 = vmatprep.subr.bf16.mxu1 %v2482_v1 }
 0x244   : > { %1014 = vmatpush1.bf16.msra.mxu0 %v2479_v0  ;;  %1055 = vmatpush1.bf16.msra.mxu1 %v2492_v4 }
 0x245   : > { %1015 = vmatprep.subr.bf16.mxu0 %v2487_v3  ;;  %1056 = vmatprep.subr.bf16.mxu1 %v2496_v5 }
 0x248   : > { %1016 = vmatpush1.bf16.msra.mxu0 %v2500_v6  ;;  %1057 = vmatpush1.bf16.msra.mxu1 %v2509_v9 }
 0x249   : > { %1017 = vmatprep.subr.bf16.mxu0 %v2504_v8  ;;  %1058 = vmatprep.subr.bf16.mxu1 %v2514_v11 }
 0x24c   : > { %1018 = vmatpush1.bf16.msra.mxu0 %v2518_v12  ;;  %1059 = vmatpush1.bf16.msra.mxu1 %v2526_v14 }
 0x24d   : > { %1019 = vmatprep.subr.bf16.mxu0 %v2522_v13  ;;  %1060 = vmatprep.subr.bf16.mxu1 %v2530_v15 }
 0x250   : > { %1020 = vmatpush1.bf16.msra.mxu0 %v2534_v16  ;;  %1061 = vmatpush1.bf16.msra.mxu1 %v2542_v18 }
 0x251   : > { %1021 = vmatprep.subr.bf16.mxu0 %v2538_v17  ;;  %1062 = vmatprep.subr.bf16.mxu1 %v2546_v19 }
 0x254   : > { %1022 = vmatpush1.bf16.msra.mxu0 %v2550_v20  ;;  %1063 = vmatpush1.bf16.msra.mxu1 %v2558_v22 }
 0x255   : > { %1023 = vmatprep.subr.bf16.mxu0 %v2554_v21  ;;  %1064 = vmatprep.subr.bf16.mxu1 %v2562_v23 }
 0x258   : > { %1024 = vmatpush1.bf16.msra.mxu0 %v2566_v24  ;;  %1065 = vmatpush1.bf16.msra.mxu1 %v2571_v25 }
 0x259   : > { %1139 = vmatprep.subr.bf16.mxu0 %v2439_v51  ;;  %1180 = vmatprep.subr.bf16.mxu1 %v2449_v56 }
 0x2fb   : > { %v913_v31 = vpop.f32.mrf.mxu0  ;;  %v954_v33 = vpop.f32.mrf.mxu1 }
 0x2fc   : > { %v961_v35 = vadd.f32 %v913_v31, %v874_v48  ;;  %v963_v46 = vadd.f32 %v954_v33, %v876_v39 }
 0x2fd   : > { %v915_v36 = vpop.f32.mrf.mxu0  ;;  %v956_v37 = vpop.f32.mrf.mxu1 }
 0x2fe   : > { %v965_v38 = vmul.f32 0.5, %v961_v35  ;;  %v962_v40 = vadd.f32 %v915_v36, %v875_v29  ;;  %v964_v50 = vadd.f32 %v956_v37, %v877_v47 }
 0x2ff   : > { %v917_v41 = vpop.f32.mrf.mxu0  ;;  %v958_v42 = vpop.f32.mrf.mxu1 }
 0x300   : > { %2115 = vtanh.f32 %v965_v38  ;;  %v969_v43 = vmul.f32 0.5, %v962_v40  ;;  %v974_v52 = vmul.f32 0.5, %v964_v50 }
 0x301   : > { %v918_v44 = vpop.f32.mrf.mxu0  ;;  %v959_v45 = vpop.f32.mrf.mxu1 }
 0x302   : > { %2117 = vtanh.f32 %v969_v43  ;;  %v1967_v44 = vld [vmem:[%s1802_s10 + $0x38] sm:$0xff] }
 0x303   : > { %2119 = vtanh.f32 %v963_v46  ;;  %v1007_v27 = vunpack.c.h.bf16 %v1967_v44 }
 0x304   : > { %2121 = vtanh.f32 %v974_v52 }
 0x30d   : > { %v2116_v55 = vpop.eup %2115 }
 0x30e   : > { %v967_v60 = vadd.f32 1.0, %v2116_v55  ;;  %v1006_v55 = vunpack.c.l.bf16 %v1967_v44 }
 0x30f   : > { %v2118_v2 = vpop.eup %2117 }
 0x310   : > { %v968_v7 = vmul.f32 0.5, %v967_v60  ;;  %v971_v10 = vadd.f32 1.0, %v2118_v2  ;;  %v2120_v28 = vpop.eup %2119 }
 0x311   : > { %v2122_v32 = vpop.eup %2121 }
 0x312   : > { %v972_v26 = vmul.f32 0.5, %v971_v10  ;;  %v979_v48 = vmul.f32 %v2120_v28, %v968_v7  ;;  %v976_v33 = vadd.f32 1.0, %v2122_v32 }
 0x314   : > { %v978_v34 = vmul.f32 %v972_v26, %v2688_v54  ;;  %v977_v35 = vmul.f32 0.5, %v976_v33 }
 0x316   : > { %v980_v29 = vadd.f32 %v979_v48, %v978_v34 }
 0x318   : > { %2123 = vtanh.f32 %v980_v29  ;;  %v2735_v31 = vsel %vm989_vm11, %v980_v29, %v2688_v54  ;;  %v1966_v54 = vld [vmem:[%s1802_s10 + $0x30] sm:$0xff] }
 0x319   : > { %v1005_v42 = vunpack.c.h.bf16 %v1966_v54 }
 0x325   : > { %v2124_v36 = vpop.eup %2123 }
 0x326   : > { %v982_v37 = vmul.f32 %v2124_v36, %v977_v35 }
 0x328   : > { %v2739_v38 = vsel %vm989_vm11, %v982_v37, %v2693_v30  ;;  %v992_v39 = vsel %vm989_vm11, %v982_v37, 0.0  ;;  %v1004_v30 = vunpack.c.l.bf16 %v1966_v54 }
 0x329   : > { %v993_v40 = vpack.c.bf16 %v992_v39, %v992_v39  ;;  %v1008_v41 = vpack.c.bf16 %v2739_v38, %v2739_v38 }
 0x32b   : > { %1964 = vst [vmem:[%s1799_s7 + $0x8] sm:$0xf] %v993_v40  ;;  %1042 = vmatmul.mubr.bf16.vlgmr.msra.gmra.mxu0 %v1008_v41  ;;  %1083 = vmatmul.mubr.bf16.vlgmr.msra.gmra.mxu1 %v1008_v41  ;;  %v1118_v41 = vpop.permute.xlu1 %1117  ;;  %s1829_s7 = scalar_lea.vmem %s2614_s4, %s1983_s6 [#allocation4]  ;;  %s1986_s4 = smul.u32 4294967268, %s2237_s14 }
 0x32c   : > { %1140 = vmatpush1.bf16.msra.mxu0 %v2444_v53  ;;  %1181 = vmatpush1.bf16.msra.mxu1 %v2452_v57  ;;  %vm1119_vm12 = vcmp.eq.s32.totalorder %v1118_v41, 1  ;;  %v2877_v41 = vld [vmem:[%s2436_s12 + $0xac] ss:$16 sps:$4 sm:$0xff]  }
 0x32d   : > { %1141 = vmatprep.subr.bf16.mxu0 %v2457_v58  ;;  %1182 = vmatprep.subr.bf16.mxu1 %v2465_v61  ;;  %s1833_s9 = scalar_lea.vmem %s2632_s8, %s1986_s4 [#allocation6] }
 0x32e   : > { %1171 = vmatprep.mubr.bf16.mxu0 %v2247_v49  ;;  %1212 = vmatprep.mubr.bf16.mxu1 %v2247_v49 }
 0x330   : > { %1142 = vmatpush1.bf16.msra.mxu0 %v2460_v59  ;;  %1183 = vmatpush1.bf16.msra.mxu1 %v2471_v62 }
 0x331   : > { %1143 = vmatprep.subr.bf16.mxu0 %v2475_v63  ;;  %1184 = vmatprep.subr.bf16.mxu1 %v2482_v1 }
 0x334   : > { %1144 = vmatpush1.bf16.msra.mxu0 %v2479_v0  ;;  %1185 = vmatpush1.bf16.msra.mxu1 %v2492_v4 }
 0x335   : > { %1145 = vmatprep.subr.bf16.mxu0 %v2487_v3  ;;  %1186 = vmatprep.subr.bf16.mxu1 %v2496_v5 }
 0x338   : > { %1146 = vmatpush1.bf16.msra.mxu0 %v2500_v6  ;;  %1187 = vmatpush1.bf16.msra.mxu1 %v2509_v9 }
 0x339   : > { %1147 = vmatprep.subr.bf16.mxu0 %v2504_v8  ;;  %1188 = vmatprep.subr.bf16.mxu1 %v2514_v11 }
 0x33c   : > { %1148 = vmatpush1.bf16.msra.mxu0 %v2518_v12  ;;  %1189 = vmatpush1.bf16.msra.mxu1 %v2526_v14 }
 0x33d   : > { %1149 = vmatprep.subr.bf16.mxu0 %v2522_v13  ;;  %1190 = vmatprep.subr.bf16.mxu1 %v2530_v15 }
 0x340   : > { %1150 = vmatpush1.bf16.msra.mxu0 %v2534_v16  ;;  %1191 = vmatpush1.bf16.msra.mxu1 %v2542_v18 }
 0x341   : > { %1151 = vmatprep.subr.bf16.mxu0 %v2538_v17  ;;  %1192 = vmatprep.subr.bf16.mxu1 %v2546_v19 }
 0x344   : > { %1152 = vmatpush1.bf16.msra.mxu0 %v2550_v20  ;;  %1193 = vmatpush1.bf16.msra.mxu1 %v2558_v22 }
 0x345   : > { %1153 = vmatprep.subr.bf16.mxu0 %v2554_v21  ;;  %1194 = vmatprep.subr.bf16.mxu1 %v2562_v23 }
 0x348   : > { %1154 = vmatpush1.bf16.msra.mxu0 %v2566_v24  ;;  %1195 = vmatpush1.bf16.msra.mxu1 %v2571_v25 }
 0x349   : > { %1270 = vmatprep.subr.bf16.mxu0 %v2439_v51  ;;  %1311 = vmatprep.subr.bf16.mxu1 %v2449_v56 }
 0x3eb   : > { %v1043_v43 = vpop.f32.mrf.mxu0  ;;  %v1084_v45 = vpop.f32.mrf.mxu1 }
 0x3ec   : > { %v1091_v46 = vadd.f32 %v1043_v43, %v1004_v30  ;;  %v1093_v26 = vadd.f32 %v1084_v45, %v1006_v55 }
 0x3ed   : > { %v1045_v47 = vpop.f32.mrf.mxu0  ;;  %v1086_v50 = vpop.f32.mrf.mxu1 }
 0x3ee   : > { %v1095_v52 = vmul.f32 0.5, %v1091_v46  ;;  %v1092_v60 = vadd.f32 %v1045_v47, %v1005_v42  ;;  %v1094_v28 = vadd.f32 %v1086_v50, %v1007_v27 }
 0x3ef   : > { %v1047_v2 = vpop.f32.mrf.mxu0  ;;  %v1088_v7 = vpop.f32.mrf.mxu1 }
 0x3f0   : > { %2125 = vtanh.f32 %v1095_v52  ;;  %v1099_v51 = vmul.f32 0.5, %v1092_v60  ;;  %v1104_v34 = vmul.f32 0.5, %v1094_v28  ;;  %v1248_v60 = vpop.permute.xlu0 %1247 }
 0x3f1   : > { %v1048_v10 = vpop.f32.mrf.mxu0  ;;  %v1089_v56 = vpop.f32.mrf.mxu1  ;;  %vm1249_vm13 = vcmp.eq.s32.totalorder %v1248_v60, 1 }
 0x3f2   : > { %2127 = vtanh.f32 %v1099_v51 }
 0x3f3   : > { %2129 = vtanh.f32 %v1093_v26 }
 0x3f4   : > { %2131 = vtanh.f32 %v1104_v34 }
 0x3fd   : > { %v2126_v48 = vpop.eup %2125 }
 0x3fe   : > { %v1097_v29 = vadd.f32 1.0, %v2126_v48 }
 0x3ff   : > { %v2128_v32 = vpop.eup %2127 }
 0x400   : > { %v1098_v33 = vmul.f32 0.5, %v1097_v29  ;;  %v1101_v35 = vadd.f32 1.0, %v2128_v32  ;;  %v2130_v37 = vpop.eup %2129  ;;  %v2847_v32 = vld [vmem:[%s2436_s12 + $0xe0] ss:$16 sps:$4 sm:$0xff]  }
 0x401   : > { %v2132_v42 = vpop.eup %2131 }
 0x402   : > { %v1102_v36 = vmul.f32 0.5, %v1101_v35  ;;  %v1109_v40 = vmul.f32 %v2130_v37, %v1098_v33  ;;  %v1106_v43 = vadd.f32 1.0, %v2132_v42  ;;  %v2851_v33 = vld [vmem:[%s2436_s12 + $0xe8] ss:$16 sps:$4 sm:$0xff]   ;;  %v2855_v35 = vld [vmem:[%s2436_s12 + $0xc4] ss:$16 sps:$4 sm:$0xff]  }
 0x403   : > { %v2865_v37 = vld [vmem:[%s2436_s12 + $0xc0] ss:$16 sps:$4 sm:$0xff]   ;;  %v2889_v42 = vld [vmem:[%s2436_s12 + $0x84] ss:$16 sps:$4 sm:$0xff]  }
 0x404   : > { %v1108_v39 = vmul.f32 %v1102_v36, %v2735_v31  ;;  %v1107_v44 = vmul.f32 0.5, %v1106_v43  ;;  %v2859_v36 = vld [vmem:[%s2436_s12 + $0xcc] ss:$16 sps:$4 sm:$0xff]  }
 0x405   : > { %v2893_v43 = vld [vmem:[%s2436_s12 + $0x8c] ss:$16 sps:$4 sm:$0xff]  }
 0x406   : > { %v1110_v54 = vadd.f32 %v1109_v40, %v1108_v39  ;;  %v2869_v39 = vld [vmem:[%s2436_s12 + $0xc8] ss:$16 sps:$4 sm:$0xff]   ;;  %v2873_v40 = vld [vmem:[%s2436_s12 + $0xa4] ss:$16 sps:$4 sm:$0xff]  }
 0x408   : > { %2133 = vtanh.f32 %v1110_v54  ;;  %v2782_v30 = vsel %vm1119_vm12, %v1110_v54, %v2735_v31  ;;  %v2881_v54 = vld [vmem:[%s2436_s12 + $0xa0] ss:$16 sps:$4 sm:$0xff]  }
 0x415   : > { %v2134_v45 = vpop.eup %2133 }
 0x416   : > { %v1112_v46 = vmul.f32 %v2134_v45, %v1107_v44  ;;  %v2897_v44 = vld [vmem:[%s2436_s12 + $0x80] ss:$16 sps:$4 sm:$0xff]   ;;  %v2901_v45 = vld [vmem:[%s2436_s12 + $0x88] ss:$16 sps:$4 sm:$0xff]  }
 0x418   : > { %v1122_v47 = vsel %vm1119_vm12, %v1112_v46, 0.0  ;;  %v2789_v50 = vsel %vm1119_vm12, %v1112_v46, %v2739_v38  ;;  %v2905_v46 = vld [vmem:[%s2436_s12 + $0x64] ss:$16 sps:$4 sm:$0xff]  }
 0x419   : > { %v1123_v52 = vpack.c.bf16 %v1122_v47, %v1122_v47  ;;  %v1138_v55 = vpack.c.bf16 %v2789_v50, %v2789_v50  ;;  %v2909_v47 = vld [vmem:[%s2436_s12 + $0x6c] ss:$16 sps:$4 sm:$0xff]  }
 0x41b   : > { %1969 = vst [vmem:[%s1805_s18 + $0xc] sm:$0xf] %v1123_v52  ;;  %1172 = vmatmul.mubr.bf16.vlgmr.msra.gmra.mxu0 %v1138_v55  ;;  %1213 = vmatmul.mubr.bf16.vlgmr.msra.gmra.mxu1 %v1138_v55  ;;  %v2917_v52 = vld [vmem:[%s2436_s12 + $0x68] ss:$16 sps:$4 sm:$0xff]   ;;  %v2921_v55 = vld [vmem:[%s2436_s12 + $0x44] ss:$16 sps:$4 sm:$0xff]  }
 0x41c   : > { %1271 = vmatpush1.bf16.msra.mxu0 %v2444_v53  ;;  %1312 = vmatpush1.bf16.msra.mxu1 %v2452_v57  ;;  %v2826_v53 = vld [vmem:[%s2436_s12 + $0xe4] ss:$16 sps:$4 sm:$0xff]   ;;  %v2830_v57 = vld [vmem:[%s2436_s12 + $0xec] ss:$16 sps:$4 sm:$0xff]  }
 0x41d   : > { %1272 = vmatprep.subr.bf16.mxu0 %v2457_v58  ;;  %1313 = vmatprep.subr.bf16.mxu1 %v2465_v61  ;;  %v1132_v58 = vld [vmem:[%s1131_s20] sm:$0xff] }
 0x41e   : > { %1302 = vmatprep.mubr.bf16.mxu0 %v2247_v49  ;;  %1343 = vmatprep.mubr.bf16.mxu1 %v2247_v49  ;;  %v1135_v61 = vunpack.c.h.bf16 %v1132_v58 }
 0x420   : > { %1273 = vmatpush1.bf16.msra.mxu0 %v2460_v59  ;;  %1314 = vmatpush1.bf16.msra.mxu1 %v2471_v62  ;;  %v1134_v59 = vunpack.c.l.bf16 %v1132_v58  ;;  %v2925_v58 = vld [vmem:[%s2436_s12 + $0x4c] ss:$16 sps:$4 sm:$0xff]  }
 0x421   : > { %1274 = vmatprep.subr.bf16.mxu0 %v2475_v63  ;;  %1315 = vmatprep.subr.bf16.mxu1 %v2482_v1  ;;  %v1133_v63 = vld [vmem:[%s1131_s20 + $0x8] sm:$0xff] }
 0x424   : > { %1275 = vmatpush1.bf16.msra.mxu0 %v2479_v0  ;;  %1316 = vmatpush1.bf16.msra.mxu1 %v2492_v4 }
 0x425   : > { %1276 = vmatprep.subr.bf16.mxu0 %v2487_v3  ;;  %1317 = vmatprep.subr.bf16.mxu1 %v2496_v5 }
 0x428   : > { %1277 = vmatpush1.bf16.msra.mxu0 %v2500_v6  ;;  %1318 = vmatpush1.bf16.msra.mxu1 %v2509_v9  ;;  %v1136_v6 = vunpack.c.l.bf16 %v1133_v63 }
 0x429   : > { %1278 = vmatprep.subr.bf16.mxu0 %v2504_v8  ;;  %1319 = vmatprep.subr.bf16.mxu1 %v2514_v11 }
 0x42c   : > { %1279 = vmatpush1.bf16.msra.mxu0 %v2518_v12  ;;  %1320 = vmatpush1.bf16.msra.mxu1 %v2526_v14 }
 0x42d   : > { %1280 = vmatprep.subr.bf16.mxu0 %v2522_v13  ;;  %1321 = vmatprep.subr.bf16.mxu1 %v2530_v15 }
 0x430   : > { %1281 = vmatpush1.bf16.msra.mxu0 %v2534_v16  ;;  %1322 = vmatpush1.bf16.msra.mxu1 %v2542_v18  ;;  %v1137_v16 = vunpack.c.h.bf16 %v1133_v63  ;;  %v2941_v63 = vld [vmem:[%s2436_s12 + $0x2c] ss:$16 sps:$4 sm:$0xff]  }
 0x431   : > { %1282 = vmatprep.subr.bf16.mxu0 %v2538_v17  ;;  %1323 = vmatprep.subr.bf16.mxu1 %v2546_v19 }
 0x434   : > { %1283 = vmatpush1.bf16.msra.mxu0 %v2550_v20  ;;  %1324 = vmatpush1.bf16.msra.mxu1 %v2558_v22 }
 0x435   : > { %1284 = vmatprep.subr.bf16.mxu0 %v2554_v21  ;;  %1325 = vmatprep.subr.bf16.mxu1 %v2562_v23 }
 0x438   : > { %1285 = vmatpush1.bf16.msra.mxu0 %v2566_v24  ;;  %1326 = vmatpush1.bf16.msra.mxu1 %v2571_v25 }
 0x439   : > { %1401 = vmatprep.subr.bf16.mxu0 %v2826_v53  ;;  %1442 = vmatprep.subr.bf16.mxu1 %v2830_v57 }
 0x4db   : > { %v1173_v62 = vpop.f32.mrf.mxu0  ;;  %v1214_v0 = vpop.f32.mrf.mxu1 }
 0x4dc   : > { %v1221_v1 = vadd.f32 %v1173_v62, %v1134_v59  ;;  %v1223_v15 = vadd.f32 %v1214_v0, %v1136_v6  ;;  %v2929_v59 = vld [vmem:[%s2436_s12 + $0x40] ss:$16 sps:$4 sm:$0xff]   ;;  %v2937_v62 = vld [vmem:[%s2436_s12 + $0x24] ss:$16 sps:$4 sm:$0xff]   ;;  %v2965_v6 = vld [vmem:[%s2436_s12 + $0x8] ss:$16 sps:$4 sm:$0xff]  }
 0x4dd   : > { %v1175_v3 = vpop.f32.mrf.mxu0  ;;  %v1216_v4 = vpop.f32.mrf.mxu1  ;;  %v2945_v0 = vld [vmem:[%s2436_s12 + $0x20] ss:$16 sps:$4 sm:$0xff]  }
 0x4de   : > { %v1225_v5 = vmul.f32 0.5, %v1221_v1  ;;  %v1222_v8 = vadd.f32 %v1175_v3, %v1135_v61  ;;  %v1224_v17 = vadd.f32 %v1216_v4, %v1137_v16  ;;  %v2933_v61 = vld [vmem:[%s2436_s12 + $0x48] ss:$16 sps:$4 sm:$0xff]   ;;  %v2953_v3 = vld [vmem:[%s2436_s12 + $0x4] ss:$16 sps:$4 sm:$0xff]  }
 0x4df   : > { %v1177_v9 = vpop.f32.mrf.mxu0  ;;  %v1218_v11 = vpop.f32.mrf.mxu1  ;;  %v2949_v1 = vld [vmem:[%s2436_s12 + $0x28] ss:$16 sps:$4 sm:$0xff]   ;;  %v2957_v4 = vld [vmem:[%s2436_s12 + $0xc] ss:$16 sps:$4 sm:$0xff]  }
 0x4e0   : > { %2135 = vtanh.f32 %v1225_v5  ;;  %v1229_v12 = vmul.f32 0.5, %v1222_v8  ;;  %v1234_v18 = vmul.f32 0.5, %v1224_v17  ;;  %v2961_v5 = vld [vmem:[%s2436_s12] ss:$16 sps:$4 sm:$0xff]  }
 0x4e1   : > { %v1178_v13 = vpop.f32.mrf.mxu0  ;;  %v1219_v14 = vpop.f32.mrf.mxu1  ;;  %v1974_v8 = vld [vmem:[%s1813_s26 + $0x50] sm:$0xff] }
 0x4e2   : > { %2137 = vtanh.f32 %v1229_v12  ;;  %v1265_v9 = vunpack.c.l.bf16 %v1974_v8  ;;  %v1266_v11 = vunpack.c.h.bf16 %v1974_v8  ;;  %v1975_v13 = vld [vmem:[%s1813_s26 + $0x58] sm:$0xff] }
 0x4e3   : > { %2139 = vtanh.f32 %v1223_v15 }
 0x4e4   : > { %2141 = vtanh.f32 %v1234_v18 }
 0x4ed   : > { %v2136_v19 = vpop.eup %2135 }
 0x4ee   : > { %v1227_v20 = vadd.f32 1.0, %v2136_v19  ;;  %v1267_v19 = vunpack.c.l.bf16 %v1975_v13 }
 0x4ef   : > { %v2138_v21 = vpop.eup %2137 }
 0x4f0   : > { %v1228_v22 = vmul.f32 0.5, %v1227_v20  ;;  %v1231_v23 = vadd.f32 1.0, %v2138_v21  ;;  %v2140_v25 = vpop.eup %2139 }
 0x4f1   : > { %v2142_v51 = vpop.eup %2141 }
 0x4f2   : > { %v1232_v24 = vmul.f32 0.5, %v1231_v23  ;;  %v1239_v38 = vmul.f32 %v2140_v25, %v1228_v22  ;;  %v1236_v10 = vadd.f32 1.0, %v2142_v51  ;;  %v1268_v25 = vunpack.c.h.bf16 %v1975_v13 }
 0x4f4   : > { %v1238_v31 = vmul.f32 %v1232_v24, %v2782_v30  ;;  %v1237_v56 = vmul.f32 0.5, %v1236_v10 }
 0x4f6   : > { %v1240_v2 = vadd.f32 %v1239_v38, %v1238_v31 }
 0x4f8   : > { %2143 = vtanh.f32 %v1240_v2  ;;  %v2837_v7 = vsel %vm1249_vm13, %v1240_v2, %v2782_v30  ;;  %v2885_v30 = vld [vmem:[%s2436_s12 + $0xa8] ss:$16 sps:$4 sm:$0xff]  }
 0x505   : > { %v2144_v26 = vpop.eup %2143 }
 0x506   : > { %v1242_v27 = vmul.f32 %v2144_v26, %v1237_v56 }
 0x508   : > { %v1252_v28 = vsel %vm1249_vm13, %v1242_v27, 0.0  ;;  %v2842_v34 = vsel %vm1249_vm13, %v1242_v27, %v2789_v50  ;;  %v2913_v50 = vld [vmem:[%s2436_s12 + $0x60] ss:$16 sps:$4 sm:$0xff]   ;;  %s1976_s12 = smul.u32 4294967284, %s2237_s14 }
 0x509   : > { %v1253_v48 = vpack.c.bf16 %v1252_v28, %v1252_v28  ;;  %v1269_v29 = vpack.c.bf16 %v2842_v34, %v2842_v34 }
 0x50a   : > { %s1817_s27 = scalar_lea.vmem %s2632_s8, %s1976_s12 [#allocation6] }
 0x50b   : > { %1256 = vst [vmem:[%s1255_s24] sm:$0xf] %v1253_v48  ;;  %1303 = vmatmul.mubr.bf16.vlgmr.msra.gmra.mxu0 %v1269_v29  ;;  %1344 = vmatmul.mubr.bf16.vlgmr.msra.gmra.mxu1 %v1269_v29  ;;  %v1379_v29 = vpop.permute.xlu1 %1378 }
 0x50c   : > { %1402 = vmatpush1.bf16.msra.mxu0 %v2847_v32  ;;  %1443 = vmatpush1.bf16.msra.mxu1 %v2851_v33  ;;  %vm1380_vm14 = vcmp.eq.s32.totalorder %v1379_v29, 1 }
 0x50d   : > { %1403 = vmatprep.subr.bf16.mxu0 %v2855_v35  ;;  %1444 = vmatprep.subr.bf16.mxu1 %v2859_v36 }
 0x50e   : > { %1433 = vmatprep.mubr.bf16.mxu0 %v2247_v49  ;;  %1474 = vmatprep.mubr.bf16.mxu1 %v2247_v49 }
 0x510   : > { %1404 = vmatpush1.bf16.msra.mxu0 %v2865_v37  ;;  %1445 = vmatpush1.bf16.msra.mxu1 %v2869_v39 }
 0x511   : > { %1405 = vmatprep.subr.bf16.mxu0 %v2873_v40  ;;  %1446 = vmatprep.subr.bf16.mxu1 %v2877_v41 }
 0x514   : > { %1406 = vmatpush1.bf16.msra.mxu0 %v2881_v54  ;;  %1447 = vmatpush1.bf16.msra.mxu1 %v2885_v30 }
 0x515   : > { %1407 = vmatprep.subr.bf16.mxu0 %v2889_v42  ;;  %1448 = vmatprep.subr.bf16.mxu1 %v2893_v43 }
 0x518   : > { %1408 = vmatpush1.bf16.msra.mxu0 %v2897_v44  ;;  %1449 = vmatpush1.bf16.msra.mxu1 %v2901_v45 }
 0x519   : > { %1409 = vmatprep.subr.bf16.mxu0 %v2905_v46  ;;  %1450 = vmatprep.subr.bf16.mxu1 %v2909_v47 }
 0x51c   : > { %1410 = vmatpush1.bf16.msra.mxu0 %v2913_v50  ;;  %1451 = vmatpush1.bf16.msra.mxu1 %v2917_v52 }
 0x51d   : > { %1411 = vmatprep.subr.bf16.mxu0 %v2921_v55  ;;  %1452 = vmatprep.subr.bf16.mxu1 %v2925_v58 }
 0x520   : > { %1412 = vmatpush1.bf16.msra.mxu0 %v2929_v59  ;;  %1453 = vmatpush1.bf16.msra.mxu1 %v2933_v61 }
 0x521   : > { %1413 = vmatprep.subr.bf16.mxu0 %v2937_v62  ;;  %1454 = vmatprep.subr.bf16.mxu1 %v2941_v63 }
 0x524   : > { %1414 = vmatpush1.bf16.msra.mxu0 %v2945_v0  ;;  %1455 = vmatpush1.bf16.msra.mxu1 %v2949_v1 }
 0x525   : > { %1415 = vmatprep.subr.bf16.mxu0 %v2953_v3  ;;  %1456 = vmatprep.subr.bf16.mxu1 %v2957_v4 }
 0x528   : > { %1416 = vmatpush1.bf16.msra.mxu0 %v2961_v5  ;;  %1457 = vmatpush1.bf16.msra.mxu1 %v2965_v6 }
 0x529   : > { %1532 = vmatprep.subr.bf16.mxu0 %v2826_v53  ;;  %1573 = vmatprep.subr.bf16.mxu1 %v2830_v57 }
 0x5cb   : > { %v1304_v12 = vpop.f32.mrf.mxu0  ;;  %v1345_v14 = vpop.f32.mrf.mxu1 }
 0x5cc   : > { %v1352_v15 = vadd.f32 %v1304_v12, %v1265_v9  ;;  %v1354_v24 = vadd.f32 %v1345_v14, %v1267_v19 }
 0x5cd   : > { %v1306_v16 = vpop.f32.mrf.mxu0  ;;  %v1347_v17 = vpop.f32.mrf.mxu1 }
 0x5ce   : > { %v1356_v18 = vmul.f32 0.5, %v1352_v15  ;;  %v1353_v20 = vadd.f32 %v1306_v16, %v1266_v11  ;;  %v1355_v31 = vadd.f32 %v1347_v17, %v1268_v25 }
 0x5cf   : > { %v1308_v21 = vpop.f32.mrf.mxu0  ;;  %v1349_v22 = vpop.f32.mrf.mxu1 }
 0x5d0   : > { %2145 = vtanh.f32 %v1356_v18  ;;  %v1360_v53 = vmul.f32 0.5, %v1353_v20  ;;  %v1365_v38 = vmul.f32 0.5, %v1355_v31 }
 0x5d1   : > { %v1309_v23 = vpop.f32.mrf.mxu0  ;;  %v1350_v57 = vpop.f32.mrf.mxu1 }
 0x5d2   : > { %2147 = vtanh.f32 %v1360_v53 }
 0x5d3   : > { %2149 = vtanh.f32 %v1354_v24 }
 0x5d4   : > { %2151 = vtanh.f32 %v1365_v38  ;;  %v1984_v38 = vld [vmem:[%s1829_s7 + $0x70] sm:$0xff] }
 0x5dd   : > { %v2146_v60 = vpop.eup %2145 }
 0x5de   : > { %v1358_v2 = vadd.f32 1.0, %v2146_v60  ;;  %v1527_v60 = vunpack.c.l.bf16 %v1984_v38 }
 0x5df   : > { %v2148_v51 = vpop.eup %2147 }
 0x5e0   : > { %v1359_v10 = vmul.f32 0.5, %v1358_v2  ;;  %v1362_v56 = vadd.f32 1.0, %v2148_v51  ;;  %v2150_v27 = vpop.eup %2149  ;;  %v1528_v2 = vunpack.c.h.bf16 %v1984_v38 }
 0x5e1   : > { %v2152_v11 = vpop.eup %2151 }
 0x5e2   : > { %v1363_v26 = vmul.f32 0.5, %v1362_v56  ;;  %v1370_v48 = vmul.f32 %v2150_v27, %v1359_v10  ;;  %v1367_v12 = vadd.f32 1.0, %v2152_v11  ;;  %v1985_v10 = vld [vmem:[%s1829_s7 + $0x78] sm:$0xff] }
 0x5e3   : > { %v1529_v29 = vunpack.c.l.bf16 %v1985_v10 }
 0x5e4   : > { %v1369_v28 = vmul.f32 %v1363_v26, %v2837_v7  ;;  %v1368_v13 = vmul.f32 0.5, %v1367_v12 }
 0x5e6   : > { %v1371_v8 = vadd.f32 %v1370_v48, %v1369_v28 }
 0x5e8   : > { %2153 = vtanh.f32 %v1371_v8  ;;  %v2974_v9 = vsel %vm1380_vm14, %v1371_v8, %v2837_v7 }
 0x5f5   : > { %v2154_v14 = vpop.eup %2153 }
 0x5f6   : > { %v1373_v15 = vmul.f32 %v2154_v14, %v1368_v13 }
 0x5f8   : > { %v1383_v16 = vsel %vm1380_vm14, %v1373_v15, 0.0  ;;  %v2979_v17 = vsel %vm1380_vm14, %v1373_v15, %v2842_v34 }
 0x5f9   : > { %v1384_v18 = vpack.c.bf16 %v1383_v16, %v1383_v16  ;;  %v1400_v19 = vpack.c.bf16 %v2979_v17, %v2979_v17  ;;  %v1530_v16 = vunpack.c.h.bf16 %v1985_v10 }
 0x5fb   : > { %1977 = vst [vmem:[%s1817_s27 + $0x14] sm:$0xf] %v1384_v18  ;;  %1434 = vmatmul.mubr.bf16.vlgmr.msra.gmra.mxu0 %v1400_v19  ;;  %1475 = vmatmul.mubr.bf16.vlgmr.msra.gmra.mxu1 %v1400_v19 }
 0x5fc   : > { %1533 = vmatpush1.bf16.msra.mxu0 %v2847_v32  ;;  %1574 = vmatpush1.bf16.msra.mxu1 %v2851_v33  ;;  %v1980_v33 = vld [vmem:[%s1821_s29 + $0x68] sm:$0xff] }
 0x5fd   : > { %1534 = vmatprep.subr.bf16.mxu0 %v2855_v35  ;;  %1575 = vmatprep.subr.bf16.mxu1 %v2859_v36 }
 0x5fe   : > { %1564 = vmatprep.mubr.bf16.mxu0 %v2247_v49  ;;  %1605 = vmatprep.mubr.bf16.mxu1 %v2247_v49  ;;  %v1979_v49 = vld [vmem:[%s1821_s29 + $0x60] sm:$0xff] }
 0x5ff   : > { %v1396_v7 = vunpack.c.l.bf16 %v1979_v49  ;;  %v1397_v34 = vunpack.c.h.bf16 %v1979_v49 }
 0x600   : > { %1535 = vmatpush1.bf16.msra.mxu0 %v2865_v37  ;;  %1576 = vmatpush1.bf16.msra.mxu1 %v2869_v39 }
 0x601   : > { %1536 = vmatprep.subr.bf16.mxu0 %v2873_v40  ;;  %1577 = vmatprep.subr.bf16.mxu1 %v2877_v41  ;;  %v1398_v41 = vunpack.c.l.bf16 %v1980_v33 }
 0x604   : > { %1537 = vmatpush1.bf16.msra.mxu0 %v2881_v54  ;;  %1578 = vmatpush1.bf16.msra.mxu1 %v2885_v30 }
 0x605   : > { %1538 = vmatprep.subr.bf16.mxu0 %v2889_v42  ;;  %1579 = vmatprep.subr.bf16.mxu1 %v2893_v43 }
 0x608   : > { %1539 = vmatpush1.bf16.msra.mxu0 %v2897_v44  ;;  %1580 = vmatpush1.bf16.msra.mxu1 %v2901_v45 }
 0x609   : > { %1540 = vmatprep.subr.bf16.mxu0 %v2905_v46  ;;  %1581 = vmatprep.subr.bf16.mxu1 %v2909_v47  ;;  %v1399_v47 = vunpack.c.h.bf16 %v1980_v33 }
 0x60c   : > { %1541 = vmatpush1.bf16.msra.mxu0 %v2913_v50  ;;  %1582 = vmatpush1.bf16.msra.mxu1 %v2917_v52 }
 0x60d   : > { %1542 = vmatprep.subr.bf16.mxu0 %v2921_v55  ;;  %1583 = vmatprep.subr.bf16.mxu1 %v2925_v58 }
 0x610   : > { %1543 = vmatpush1.bf16.msra.mxu0 %v2929_v59  ;;  %1584 = vmatpush1.bf16.msra.mxu1 %v2933_v61 }
 0x611   : > { %1544 = vmatprep.subr.bf16.mxu0 %v2937_v62  ;;  %1585 = vmatprep.subr.bf16.mxu1 %v2941_v63 }
 0x614   : > { %1545 = vmatpush1.bf16.msra.mxu0 %v2945_v0  ;;  %1586 = vmatpush1.bf16.msra.mxu1 %v2949_v1  ;;  %v1510_v1 = vpop.permute.xlu0 %1509 }
 0x615   : > { %1546 = vmatprep.subr.bf16.mxu0 %v2953_v3  ;;  %1587 = vmatprep.subr.bf16.mxu1 %v2957_v4  ;;  %vm1511_vm15 = vcmp.eq.s32.totalorder %v1510_v1, 1 }
 0x618   : > { %1547 = vmatpush1.bf16.msra.mxu0 %v2961_v5  ;;  %1588 = vmatpush1.bf16.msra.mxu1 %v2965_v6 }
 0x6bb   : > { %v1435_v32 = vpop.f32.mrf.mxu0  ;;  %v1476_v35 = vpop.f32.mrf.mxu1 }
 0x6bc   : > { %v1483_v36 = vadd.f32 %v1435_v32, %v1396_v7  ;;  %v1485_v46 = vadd.f32 %v1476_v35, %v1398_v41 }
 0x6bd   : > { %v1437_v37 = vpop.f32.mrf.mxu0  ;;  %v1478_v39 = vpop.f32.mrf.mxu1 }
 0x6be   : > { %v1487_v40 = vmul.f32 0.5, %v1483_v36  ;;  %v1484_v54 = vadd.f32 %v1437_v37, %v1397_v34  ;;  %v1486_v50 = vadd.f32 %v1478_v39, %v1399_v47 }
 0x6bf   : > { %v1439_v30 = vpop.f32.mrf.mxu0  ;;  %v1480_v42 = vpop.f32.mrf.mxu1 }
 0x6c0   : > { %2155 = vtanh.f32 %v1487_v40  ;;  %v1491_v43 = vmul.f32 0.5, %v1484_v54  ;;  %v1496_v52 = vmul.f32 0.5, %v1486_v50  ;;  %v1641_v54 = vpop.permute.xlu1 %1640 }
 0x6c1   : > { %v1440_v44 = vpop.f32.mrf.mxu0  ;;  %v1481_v45 = vpop.f32.mrf.mxu1  ;;  %vm1642_vm0 = vcmp.eq.s32.totalorder %v1641_v54, 1 }
 0x6c2   : > { %2157 = vtanh.f32 %v1491_v43 }
 0x6c3   : > { %2159 = vtanh.f32 %v1485_v46 }
 0x6c4   : > { %2161 = vtanh.f32 %v1496_v52 }
 0x6cd   : > { %v2156_v55 = vpop.eup %2155 }
 0x6ce   : > { %v1489_v58 = vadd.f32 1.0, %v2156_v55 }
 0x6cf   : > { %v2158_v59 = vpop.eup %2157 }
 0x6d0   : > { %v1490_v61 = vmul.f32 0.5, %v1489_v58  ;;  %v1493_v62 = vadd.f32 1.0, %v2158_v59  ;;  %v2160_v0 = vpop.eup %2159 }
 0x6d1   : > { %v2162_v20 = vpop.eup %2161 }
 0x6d2   : > { %v1494_v63 = vmul.f32 0.5, %v1493_v62  ;;  %v1501_v4 = vmul.f32 %v2160_v0, %v1490_v61  ;;  %v1498_v21 = vadd.f32 1.0, %v2162_v20 }
 0x6d4   : > { %v1500_v3 = vmul.f32 %v1494_v63, %v2974_v9  ;;  %v1499_v22 = vmul.f32 0.5, %v1498_v21 }
 0x6d6   : > { %v1502_v5 = vadd.f32 %v1501_v4, %v1500_v3 }
 0x6d8   : > { %2163 = vtanh.f32 %v1502_v5  ;;  %v1513_v6 = vsel %vm1511_vm15, %v1502_v5, %v2974_v9 }
 0x6e5   : > { %v2164_v53 = vpop.eup %2163 }
 0x6e6   : > { %v1504_v23 = vmul.f32 %v2164_v53, %v1499_v22 }
 0x6e8   : > { %v1514_v57 = vsel %vm1511_vm15, %v1504_v23, 0.0  ;;  %v1512_v24 = vsel %vm1511_vm15, %v1504_v23, %v2979_v17 }
 0x6e9   : > { %v1515_v25 = vpack.c.bf16 %v1514_v57, %v1514_v57  ;;  %v1531_v31 = vpack.c.bf16 %v1512_v24, %v1512_v24 }
 0x6eb   : > { %1982 = vst [vmem:[%s1825_s5 + $0x18] sm:$0xf] %v1515_v25  ;;  %1565 = vmatmul.mubr.bf16.vlgmr.msra.gmra.mxu0 %v1531_v31  ;;  %1606 = vmatmul.mubr.bf16.vlgmr.msra.gmra.mxu1 %v1531_v31 }
 0x7ab   : > { %v1566_v51 = vpop.f32.mrf.mxu0  ;;  %v1607_v56 = vpop.f32.mrf.mxu1 }
 0x7ac   : > { %v1614_v26 = vadd.f32 %v1566_v51, %v1527_v60  ;;  %v1616_v15 = vadd.f32 %v1607_v56, %v1529_v29 }
 0x7ad   : > { %v1568_v27 = vpop.f32.mrf.mxu0  ;;  %v1609_v28 = vpop.f32.mrf.mxu1 }
 0x7ae   : > { %v1618_v48 = vmul.f32 0.5, %v1614_v26  ;;  %v1615_v8 = vadd.f32 %v1568_v27, %v1528_v2  ;;  %v1617_v17 = vadd.f32 %v1609_v28, %v1530_v16 }
 0x7af   : > { %v1570_v9 = vpop.f32.mrf.mxu0  ;;  %v1611_v11 = vpop.f32.mrf.mxu1 }
 0x7b0   : > { %2165 = vtanh.f32 %v1618_v48  ;;  %v1622_v12 = vmul.f32 0.5, %v1615_v8  ;;  %v1627_v18 = vmul.f32 0.5, %v1617_v17 }
 0x7b1   : > { %v1571_v13 = vpop.f32.mrf.mxu0  ;;  %v1612_v14 = vpop.f32.mrf.mxu1 }
 0x7b2   : > { %2167 = vtanh.f32 %v1622_v12 }
 0x7b3   : > { %2169 = vtanh.f32 %v1616_v15 }
 0x7b4   : > { %2171 = vtanh.f32 %v1627_v18 }
 0x7bd   : > { %v2166_v19 = vpop.eup %2165 }
 0x7be   : > { %v1620_v49 = vadd.f32 1.0, %v2166_v19 }
 0x7bf   : > { %v2168_v7 = vpop.eup %2167 }
 0x7c0   : > { %v1621_v34 = vmul.f32 0.5, %v1620_v49  ;;  %v1624_v32 = vadd.f32 1.0, %v2168_v7  ;;  %v2170_v35 = vpop.eup %2169 }
 0x7c1   : > { %v2172_v40 = vpop.eup %2171 }
 0x7c2   : > { %v1625_v33 = vmul.f32 0.5, %v1624_v32  ;;  %v1632_v37 = vmul.f32 %v2170_v35, %v1621_v34  ;;  %v1629_v41 = vadd.f32 1.0, %v2172_v40 }
 0x7c4   : > { %v1631_v36 = vmul.f32 %v1625_v33, %v1513_v6  ;;  %v1630_v30 = vmul.f32 0.5, %v1629_v41 }
 0x7c6   : > { %v1633_v39 = vadd.f32 %v1632_v37, %v1631_v36 }
 0x7c8   : > { %2173 = vtanh.f32 %v1633_v39 }
 0x7d5   : > { %v2174_v42 = vpop.eup %2173 }
 0x7d6   : > { %v1635_v43 = vmul.f32 %v2174_v42, %v1630_v30 }
 0x7d7   : > { %1658 = sbr.rel (!%p2308_p6) target bundleno = 2024 (0x7e8), region = 86 }
 0x7d8   : > { %v1645_v44 = vsel %vm1642_vm0, %v1635_v43, 0.0 }
 0x7d9   : > { %v1646_v45 = vpack.c.bf16 %v1645_v44, %v1645_v44 }
 0x7db   : > { %1987 = vst [vmem:[%s1833_s9 + $0x1c] sm:$0xf] %v1646_v45 }
 0x7e2   : > { %v1686_v46 = vld [vmem:[%s2632_s8] sm:$0xf]  ;;  %v1688_v47 = vld [vmem:[%s2632_s8 + $0x4] sm:$0xf]  ;;  %v1690_v50 = vld [vmem:[%s2632_s8 + $0x8] sm:$0xf] }
 0x7e3   : > { %1687 = vst [vmem:[%s1669_s19] sm:$0xf] %v1686_v46  ;;  %1689 = vst [vmem:[%s1669_s19 + $0x8] sm:$0xf] %v1688_v47  ;;  %v1692_v52 = vld [vmem:[%s2632_s8 + $0xc] sm:$0xf] }
 0x7e4   : > { %1691 = vst [vmem:[%s1669_s19 + $0x10] sm:$0xf] %v1690_v50  ;;  %v1694_v55 = vld [vmem:[%s2632_s8 + $0x10] sm:$0xf]  ;;  %v1696_v58 = vld [vmem:[%s2632_s8 + $0x14] sm:$0xf] }
 0x7e5   : > { %1693 = vst [vmem:[%s1669_s19 + $0x18] sm:$0xf] %v1692_v52  ;;  %1695 = vst [vmem:[%s1669_s19 + $0x20] sm:$0xf] %v1694_v55  ;;  %v1698_v59 = vld [vmem:[%s2632_s8 + $0x18] sm:$0xf] }
 0x7e6   : > { %1697 = vst [vmem:[%s1669_s19 + $0x28] sm:$0xf] %v1696_v58  ;;  %v1700_v61 = vld [vmem:[%s2632_s8 + $0x1c] sm:$0xf]  ;;  %1699 = vst [vmem:[%s1669_s19 + $0x30] sm:$0xf] %v1698_v59 }
 0x7e7   : > { %1701 = vst [vmem:[%s1669_s19 + $0x38] sm:$0xf] %v1700_v61 }
 0x7e8 PF: > { %s13_s16 = sadd.s32 1, %s2245_s16   ;;  %s3062_s12 = smov %s2233_s13 }
 0x7e9   : > { %p10_p11 = scmp.ge.s32.totalorder %s13_s16, 4   ;;  %s3063_s13 = smov %s2313_s23 }
 0x7ea   : > { %s3064_s14 = smov %s2241_s15  ;;  %s3065_s15 = smov %s3067_s17 }
 0x7eb   :  { %12 = sbr.rel (!%p10_p11) target bundleno = 3 (0x3), region = 185 }

</bundles_post_ra>
